<compile_context>
chip_gen: v7x
topology: tpu7x:2x2x1
jax: 0.10.0
libtpu: 0.0.40
codegen_flags: <defaults>
</compile_context>

<pallas_src>
import jax
import jax.numpy as jnp
from jax.experimental import pallas as pl
from jax.experimental.pallas import tpu as pltpu


def _temporal_gcn_kernel(x_ref, prop_ref, sel_ref,
                         wc0_ref, wc1_ref, bc_ref,
                         wg_ref, bg_ref,
                         wlzr_ref, wlh_ref,
                         w1_ref, b1_ref, w2_ref, b2_ref,
                         out_ref, hid_ref):
    TN = x_ref.shape[0]                 # T * N rows (row = t*N + n)
    C = bc_ref.shape[1]                 # TGCN cell channels (256)

    x = x_ref[...]                                                     # (T*N, F)

    # Graph propagation for ALL periods in one push:
    #   prop = [I_T (x) L_hat ; I_T (x) A_gcn]  ->  px = [L X ; A X]
    px = jnp.dot(prop_ref[...], x, preferred_element_type=jnp.float32)  # (2*T*N, F)
    lx = px[:TN, :]
    ax = px[TN:, :]

    # ChebConv K=2 output; this module feeds it as the TGCN hidden state.
    hin = (jnp.dot(x, wc0_ref[...], preferred_element_type=jnp.float32)
           + jnp.dot(lx, wc1_ref[...], preferred_element_type=jnp.float32)
           + bc_ref[...])                                               # (T*N, C)

    # Pre-folded gate feature transforms: one (F, 3C) matmul, cols = [z | r | h].
    gates = jnp.dot(ax, wg_ref[...],
                    preferred_element_type=jnp.float32) + bg_ref[...]   # (T*N, 3C)

    # GRU-style gates; hidden-side matmuls on MXU in bf16, f32 accumulation,
    # element-wise math stays f32.
    hin_bf = hin.astype(jnp.bfloat16)
    zr = gates[:, :2 * C] + jnp.dot(hin_bf, wlzr_ref[...],
                                    preferred_element_type=jnp.float32)  # (T*N, 2C)
    z = jax.nn.sigmoid(zr[:, :C])
    r = jax.nn.sigmoid(zr[:, C:])
    htil = jnp.tanh(gates[:, 2 * C:]
                    + jnp.dot((hin * r).astype(jnp.bfloat16), wlh_ref[...],
                              preferred_element_type=jnp.float32))
    hout = z * hin + (1.0 - z) * htil                                   # (T*N, C)

    # Attention-weighted accumulation over periods as a single matmul:
    #   sel[n, t*N + n] = softmax(attention)[t]
    h_accum = jnp.dot(sel_ref[...], hout,
                      preferred_element_type=jnp.float32)               # (N, C)
    hid_ref[...] = h_accum.astype(hid_ref.dtype)                        # out_hidden

    # MLP head: relu -> linear1 -> relu -> linear2
    h = jnp.maximum(h_accum, 0.0)
    h = jnp.dot(h.astype(jnp.bfloat16), w1_ref[...],
                preferred_element_type=jnp.float32) + b1_ref[...]
    h = jnp.maximum(h, 0.0)
    h = jnp.dot(h, w2_ref[...], preferred_element_type=jnp.float32) + b2_ref[...]
    out_ref[...] = h.astype(out_ref.dtype)


def _build_dense_operators(edge_index, edge_weight, num_nodes):
    """Glue: dense GCN-normalized adjacency and Cheb scaled Laplacian."""
    src = edge_index[0]
    dst = edge_index[1]
    w = edge_weight.astype(jnp.float32)
    # messages flow src -> dst, aggregated at dst:  out = A @ x, A[dst, src] = w
    A = jnp.zeros((num_nodes, num_nodes), jnp.float32).at[dst, src].add(w)

    # GCNConv normalization (add self loops, symmetric)
    A_sl = A + jnp.eye(num_nodes, dtype=jnp.float32)
    deg = A_sl.sum(axis=1)
    dis = jnp.where(deg > 0, jax.lax.rsqrt(deg), 0.0)
    a_gcn = dis[:, None] * A_sl * dis[None, :]

    # ChebConv K=2 scaled Laplacian, lambda_max = 2:  L_hat = -D^{-1/2} A D^{-1/2}
    degc = A.sum(axis=1)
    dic = jnp.where(degc > 0, jax.lax.rsqrt(degc), 0.0)
    l_hat = -(dic[:, None] * A * dic[None, :])
    return a_gcn, l_hat


def init_params(key, node_features, periods, out_channels=256,
                hidden_dim=128, output_dim=8):
    ks = jax.random.split(key, 20)
    w = lambda k, shape, s=0.1: (s * jax.random.normal(k, shape)).astype(jnp.float32)
    F, C = node_features, out_channels
    return dict(
        # GCNConv gate feature transforms (F -> C)
        wz=w(ks[0], (F, C)), bz=w(ks[1], (1, C)),
        wr=w(ks[2], (F, C)), br=w(ks[3], (1, C)),
        wh=w(ks[4], (F, C)), bh=w(ks[5], (1, C)),
        # ChebConv K=2 (F -> C)
        wc0=w(ks[6], (F, C)), wc1=w(ks[7], (F, C)), bc=w(ks[8], (1, C)),
        # TGCN gate linears on concat([conv, H])  (2C -> C)
        wlz=w(ks[9], (2 * C, C)), blz=w(ks[10], (1, C)),
        wlr=w(ks[11], (2 * C, C)), blr=w(ks[12], (1, C)),
        wlh=w(ks[13], (2 * C, C)), blh=w(ks[14], (1, C)),
        # MLP head
        w1=w(ks[15], (C, hidden_dim)), b1=w(ks[16], (1, hidden_dim)),
        w2=w(ks[17], (hidden_dim, output_dim)), b2=w(ks[18], (1, output_dim)),
        # attention over periods (torch.nn.init.uniform_)
        att=jax.random.uniform(ks[19], (1, periods), jnp.float32),
    )
    # TODO(synk): A3TGCN also declares an unused Linear(64, out_channels); it is
    # never touched in forward() so it is intentionally omitted here.


def temporal_gcn_forward(x, edge_index, edge_attr, params):
    """x: (N, F, T) node features for T periods (matches X[:, :, period])."""
    N, F, T = x.shape
    C = params["bz"].shape[1]
    out_dim = params["w2"].shape[1]

    # Time-batched features: row t*N + n holds node n at period t.
    x_tn = jnp.transpose(x, (2, 0, 1)).reshape(T * N, F).astype(jnp.float32)

    a_gcn, l_hat = _build_dense_operators(edge_index, edge_attr, N)
    eye_t = jnp.eye(T, dtype=jnp.float32)
    # Block-diagonal propagation operator covering every period: [L ; A] stacked.
    prop = jnp.concatenate([jnp.kron(eye_t, l_hat),
                            jnp.kron(eye_t, a_gcn)], axis=0)          # (2*T*N, T*N)

    # softmax(attention) folded into the period-accumulation selection matrix.
    probs = jax.nn.softmax(params["att"][0])                           # (T,)
    sel = jnp.kron(probs[None, :], jnp.eye(N, dtype=jnp.float32))      # (N, T*N)

    # Pre-fold the static products  (ax@Wg + bg) @ Wlin[:C]  into (F, C) weights.
    wlzA, wlzB = params["wlz"][:C], params["wlz"][C:]
    wlrA, wlrB = params["wlr"][:C], params["wlr"][C:]
    wlhA, wlhB = params["wlh"][:C], params["wlh"][C:]
    wz_f = params["wz"] @ wlzA
    wr_f = params["wr"] @ wlrA
    wh_f = params["wh"] @ wlhA
    bz_f = params["bz"] @ wlzA + params["blz"]
    br_f = params["br"] @ wlrA + params["blr"]
    bh_f = params["bh"] @ wlhA + params["blh"]
    wg = jnp.concatenate([wz_f, wr_f, wh_f], axis=1)                   # (F, 3C)
    bg = jnp.concatenate([bz_f, br_f, bh_f], axis=1)                   # (1, 3C)

    # Large C->C weights run on the MXU in bf16 (f32 accumulation in-kernel).
    wlzr = jnp.concatenate([wlzB, wlrB], axis=1).astype(jnp.bfloat16)  # (C, 2C)
    wlh2 = wlhB.astype(jnp.bfloat16)                                   # (C, C)
    w1_bf = params["w1"].astype(jnp.bfloat16)                          # (C, hidden)

    flat_in = [x_tn, prop, sel,
               params["wc0"], params["wc1"], params["bc"],
               wg, bg, wlzr, wlh2,
               w1_bf, params["b1"], params["w2"], params["b2"]]

    vmem = pl.BlockSpec(memory_space=pltpu.MemorySpace.VMEM)
    out, out_hidden = pl.pallas_call(
        _temporal_gcn_kernel,
        out_shape=(jax.ShapeDtypeStruct((N, out_dim), jnp.float32),
                   jax.ShapeDtypeStruct((N, C), jnp.float32)),
        in_specs=[vmem] * len(flat_in),
        out_specs=(vmem, vmem),
    )(*flat_in)
    return out, out_hidden


if __name__ == "__main__":
    N, F, T, OUT = 16, 4, 8, 8          # nodes, node_features, periods, output_dim
    key = jax.random.PRNGKey(0)
    kx, kw, kp = jax.random.split(key, 3)

    x = jax.random.normal(kx, (N, F, T), jnp.float32)

    # deterministic bidirectional ring graph
    src = jnp.arange(N, dtype=jnp.int32)
    dst = (src + 1) % N
    edge_index = jnp.stack([jnp.concatenate([src, dst]),
                            jnp.concatenate([dst, src])])              # (2, 2N)
    edge_attr = jnp.abs(jax.random.normal(kw, (2 * N,), jnp.float32)) + 0.5

    params = init_params(kp, node_features=F, periods=T, output_dim=OUT)

    fwd = jax.jit(temporal_gcn_forward)
    out, hidden = fwd(x, edge_index, edge_attr, params)
    jax.block_until_ready((out, hidden))
    assert out.shape == (N, OUT) and hidden.shape == (N, 256)
    print("KERNEL_OK")
</pallas_src>

<mosaic_0001>
module attributes {stable_mosaic.version = 11 : i64} {
  func.func private @main(%arg0: i32) attributes {dimension_semantics = [#tpu.dimension_semantics<core_parallel>], iteration_bounds = array<i64: 2>, tpu.core_type = #tpu.core_type<sc_scalar_subcore>, window_params = []} {
    return
  }
}

module attributes {stable_mosaic.version = 11 : i64} {
  func.func private @main(%arg0: i32) attributes {dimension_semantics = [#tpu.dimension_semantics<core_parallel>], iteration_bounds = array<i64: 2>, tpu.core_type = #tpu.core_type<sc_scalar_subcore>, window_params = []} {
    return
  }
}

module attributes {stable_mosaic.version = 11 : i64} {
  func.func @_temporal_gcn_kernel(%arg0: memref<128x4xf32, #tpu.memory_space<vmem>>, %arg1: memref<256x128xf32, #tpu.memory_space<vmem>>, %arg2: memref<16x128xf32, #tpu.memory_space<vmem>>, %arg3: memref<4x256xf32, #tpu.memory_space<vmem>>, %arg4: memref<4x256xf32, #tpu.memory_space<vmem>>, %arg5: memref<1x256xf32, #tpu.memory_space<vmem>>, %arg6: memref<4x768xf32, #tpu.memory_space<vmem>>, %arg7: memref<1x768xf32, #tpu.memory_space<vmem>>, %arg8: memref<256x512xbf16, #tpu.memory_space<vmem>>, %arg9: memref<256x256xbf16, #tpu.memory_space<vmem>>, %arg10: memref<256x128xbf16, #tpu.memory_space<vmem>>, %arg11: memref<1x128xf32, #tpu.memory_space<vmem>>, %arg12: memref<128x8xf32, #tpu.memory_space<vmem>>, %arg13: memref<1x8xf32, #tpu.memory_space<vmem>>, %arg14: memref<16x8xf32, #tpu.memory_space<vmem>>, %arg15: memref<16x256xf32, #tpu.memory_space<vmem>>) attributes {dimension_semantics = [], scalar_prefetch = 0 : i64, scratch_operands = 0 : i64, tpu.core_type = #tpu.core_type<tc>} {
    %c0 = arith.constant 0 : index
    %c0_0 = arith.constant 0 : index
    %0 = vector.load %arg0[%c0, %c0_0] : memref<128x4xf32, #tpu.memory_space<vmem>>, vector<128x4xf32>
    %c0_1 = arith.constant 0 : index
    %c0_2 = arith.constant 0 : index
    %1 = vector.load %arg1[%c0_1, %c0_2] : memref<256x128xf32, #tpu.memory_space<vmem>>, vector<256x128xf32>
    %cst = arith.constant dense<0.000000e+00> : vector<256x4xf32>
    %2 = tpu.matmul %1, %0, %cst {dimension_numbers = #tpu.dot_dimension_numbers<[1], [0], [0], [1], [0, 0, 1, 1], [], []>} : vector<256x128xf32>, vector<128x4xf32>, vector<256x4xf32> -> vector<256x4xf32>
    %3 = vector.extract_strided_slice %2 {offsets = [0, 0], sizes = [128, 4], strides = [1, 1]} : vector<256x4xf32> to vector<128x4xf32>
    %4 = vector.extract_strided_slice %2 {offsets = [128, 0], sizes = [128, 4], strides = [1, 1]} : vector<256x4xf32> to vector<128x4xf32>
    %c0_3 = arith.constant 0 : index
    %c0_4 = arith.constant 0 : index
    %5 = vector.load %arg3[%c0_3, %c0_4] : memref<4x256xf32, #tpu.memory_space<vmem>>, vector<4x256xf32>
    %cst_5 = arith.constant dense<0.000000e+00> : vector<128x256xf32>
    %6 = tpu.matmul %0, %5, %cst_5 {dimension_numbers = #tpu.dot_dimension_numbers<[1], [0], [0], [1], [0, 0, 1, 1], [], []>} : vector<128x4xf32>, vector<4x256xf32>, vector<128x256xf32> -> vector<128x256xf32>
    %c0_6 = arith.constant 0 : index
    %c0_7 = arith.constant 0 : index
    %7 = vector.load %arg4[%c0_6, %c0_7] : memref<4x256xf32, #tpu.memory_space<vmem>>, vector<4x256xf32>
    %cst_8 = arith.constant dense<0.000000e+00> : vector<128x256xf32>
    %8 = tpu.matmul %3, %7, %cst_8 {dimension_numbers = #tpu.dot_dimension_numbers<[1], [0], [0], [1], [0, 0, 1, 1], [], []>} : vector<128x4xf32>, vector<4x256xf32>, vector<128x256xf32> -> vector<128x256xf32>
    %9 = arith.addf %6, %8 : vector<128x256xf32>
    %c0_9 = arith.constant 0 : index
    %c0_10 = arith.constant 0 : index
    %10 = vector.load %arg5[%c0_9, %c0_10] : memref<1x256xf32, #tpu.memory_space<vmem>>, vector<1x256xf32>
    %11 = vector.broadcast %10 : vector<1x256xf32> to vector<128x256xf32>
    %12 = arith.addf %9, %11 : vector<128x256xf32>
    %c0_11 = arith.constant 0 : index
    %c0_12 = arith.constant 0 : index
    %13 = vector.load %arg6[%c0_11, %c0_12] : memref<4x768xf32, #tpu.memory_space<vmem>>, vector<4x768xf32>
    %cst_13 = arith.constant dense<0.000000e+00> : vector<128x768xf32>
    %14 = tpu.matmul %4, %13, %cst_13 {dimension_numbers = #tpu.dot_dimension_numbers<[1], [0], [0], [1], [0, 0, 1, 1], [], []>} : vector<128x4xf32>, vector<4x768xf32>, vector<128x768xf32> -> vector<128x768xf32>
    %c0_14 = arith.constant 0 : index
    %c0_15 = arith.constant 0 : index
    %15 = vector.load %arg7[%c0_14, %c0_15] : memref<1x768xf32, #tpu.memory_space<vmem>>, vector<1x768xf32>
    %16 = vector.broadcast %15 : vector<1x768xf32> to vector<128x768xf32>
    %17 = arith.addf %14, %16 : vector<128x768xf32>
    %18 = arith.truncf %12 : vector<128x256xf32> to vector<128x256xbf16>
    %19 = vector.extract_strided_slice %17 {offsets = [0, 0], sizes = [128, 512], strides = [1, 1]} : vector<128x768xf32> to vector<128x512xf32>
    %c0_16 = arith.constant 0 : index
    %c0_17 = arith.constant 0 : index
    %20 = vector.load %arg8[%c0_16, %c0_17] : memref<256x512xbf16, #tpu.memory_space<vmem>>, vector<256x512xbf16>
    %cst_18 = arith.constant dense<0.000000e+00> : vector<128x512xf32>
    %21 = tpu.matmul %18, %20, %cst_18 {dimension_numbers = #tpu.dot_dimension_numbers<[1], [0], [0], [1], [0, 0, 1, 1], [], []>} : vector<128x256xbf16>, vector<256x512xbf16>, vector<128x512xf32> -> vector<128x512xf32>
    %22 = arith.addf %19, %21 : vector<128x512xf32>
    %23 = vector.extract_strided_slice %22 {offsets = [0, 0], sizes = [128, 256], strides = [1, 1]} : vector<128x512xf32> to vector<128x256xf32>
    %24 = arith.negf %23 : vector<128x256xf32>
    %25 = math.exp %24 : vector<128x256xf32>
    %cst_19 = arith.constant 1.000000e+00 : f32
    %26 = vector.broadcast %cst_19 : f32 to vector<128x256xf32>
    %27 = arith.addf %26, %25 : vector<128x256xf32>
    %28 = arith.divf %26, %27 : vector<128x256xf32>
    %29 = vector.extract_strided_slice %22 {offsets = [0, 256], sizes = [128, 256], strides = [1, 1]} : vector<128x512xf32> to vector<128x256xf32>
    %30 = arith.negf %29 : vector<128x256xf32>
    %31 = math.exp %30 : vector<128x256xf32>
    %cst_20 = arith.constant 1.000000e+00 : f32
    %32 = vector.broadcast %cst_20 : f32 to vector<128x256xf32>
    %33 = arith.addf %32, %31 : vector<128x256xf32>
    %34 = arith.divf %32, %33 : vector<128x256xf32>
    %35 = vector.extract_strided_slice %17 {offsets = [0, 512], sizes = [128, 256], strides = [1, 1]} : vector<128x768xf32> to vector<128x256xf32>
    %36 = arith.mulf %12, %34 : vector<128x256xf32>
    %37 = arith.truncf %36 : vector<128x256xf32> to vector<128x256xbf16>
    %c0_21 = arith.constant 0 : index
    %c0_22 = arith.constant 0 : index
    %38 = vector.load %arg9[%c0_21, %c0_22] : memref<256x256xbf16, #tpu.memory_space<vmem>>, vector<256x256xbf16>
    %cst_23 = arith.constant dense<0.000000e+00> : vector<128x256xf32>
    %39 = tpu.matmul %37, %38, %cst_23 {dimension_numbers = #tpu.dot_dimension_numbers<[1], [0], [0], [1], [0, 0, 1, 1], [], []>} : vector<128x256xbf16>, vector<256x256xbf16>, vector<128x256xf32> -> vector<128x256xf32>
    %40 = arith.addf %35, %39 : vector<128x256xf32>
    %41 = math.tanh %40 : vector<128x256xf32>
    %42 = arith.mulf %28, %12 : vector<128x256xf32>
    %cst_24 = arith.constant 1.000000e+00 : f32
    %43 = vector.broadcast %cst_24 : f32 to vector<128x256xf32>
    %44 = arith.subf %43, %28 : vector<128x256xf32>
    %45 = arith.mulf %44, %41 : vector<128x256xf32>
    %46 = arith.addf %42, %45 : vector<128x256xf32>
    %c0_25 = arith.constant 0 : index
    %c0_26 = arith.constant 0 : index
    %47 = vector.load %arg2[%c0_25, %c0_26] : memref<16x128xf32, #tpu.memory_space<vmem>>, vector<16x128xf32>
    %cst_27 = arith.constant dense<0.000000e+00> : vector<16x256xf32>
    %48 = tpu.matmul %47, %46, %cst_27 {dimension_numbers = #tpu.dot_dimension_numbers<[1], [0], [0], [1], [0, 0, 1, 1], [], []>} : vector<16x128xf32>, vector<128x256xf32>, vector<16x256xf32> -> vector<16x256xf32>
    %c0_28 = arith.constant 0 : index
    %c0_29 = arith.constant 0 : index
    %49 = vector.load %arg15[%c0_28, %c0_29] : memref<16x256xf32, #tpu.memory_space<vmem>>, vector<16x256xf32>
    tpu.vector_store %arg15[%c0_28, %c0_29], %48 {strides = array<i32>} : memref<16x256xf32, #tpu.memory_space<vmem>>, vector<16x256xf32>,
    %cst_30 = arith.constant 0.000000e+00 : f32
    %50 = vector.broadcast %cst_30 : f32 to vector<16x256xf32>
    %51 = arith.maximumf %48, %50 : vector<16x256xf32>
    %52 = arith.truncf %51 : vector<16x256xf32> to vector<16x256xbf16>
    %c0_31 = arith.constant 0 : index
    %c0_32 = arith.constant 0 : index
    %53 = vector.load %arg10[%c0_31, %c0_32] : memref<256x128xbf16, #tpu.memory_space<vmem>>, vector<256x128xbf16>
    %cst_33 = arith.constant dense<0.000000e+00> : vector<16x128xf32>
    %54 = tpu.matmul %52, %53, %cst_33 {dimension_numbers = #tpu.dot_dimension_numbers<[1], [0], [0], [1], [0, 0, 1, 1], [], []>} : vector<16x256xbf16>, vector<256x128xbf16>, vector<16x128xf32> -> vector<16x128xf32>
    %c0_34 = arith.constant 0 : index
    %c0_35 = arith.constant 0 : index
    %55 = vector.load %arg11[%c0_34, %c0_35] : memref<1x128xf32, #tpu.memory_space<vmem>>, vector<1x128xf32>
    %56 = vector.broadcast %55 : vector<1x128xf32> to vector<16x128xf32>
    %57 = arith.addf %54, %56 : vector<16x128xf32>
    %cst_36 = arith.constant 0.000000e+00 : f32
    %58 = vector.broadcast %cst_36 : f32 to vector<16x128xf32>
    %59 = arith.maximumf %57, %58 : vector<16x128xf32>
    %c0_37 = arith.constant 0 : index
    %c0_38 = arith.constant 0 : index
    %60 = vector.load %arg12[%c0_37, %c0_38] : memref<128x8xf32, #tpu.memory_space<vmem>>, vector<128x8xf32>
    %cst_39 = arith.constant dense<0.000000e+00> : vector<16x8xf32>
    %61 = tpu.matmul %59, %60, %cst_39 {dimension_numbers = #tpu.dot_dimension_numbers<[1], [0], [0], [1], [0, 0, 1, 1], [], []>} : vector<16x128xf32>, vector<128x8xf32>, vector<16x8xf32> -> vector<16x8xf32>
    %c0_40 = arith.constant 0 : index
    %c0_41 = arith.constant 0 : index
    %62 = vector.load %arg13[%c0_40, %c0_41] : memref<1x8xf32, #tpu.memory_space<vmem>>, vector<1x8xf32>
    %63 = vector.broadcast %62 : vector<1x8xf32> to vector<16x8xf32>
    %64 = arith.addf %61, %63 : vector<16x8xf32>
    %c0_42 = arith.constant 0 : index
    %c0_43 = arith.constant 0 : index
    %65 = vector.load %arg14[%c0_42, %c0_43] : memref<16x8xf32, #tpu.memory_space<vmem>>, vector<16x8xf32>
    tpu.vector_store %arg14[%c0_42, %c0_43], %64 {strides = array<i32>} : memref<16x8xf32, #tpu.memory_space<vmem>>, vector<16x8xf32>,
    return
  }
}

</mosaic_0001>

<bundles_post_ra>
// kernel: temporal_gcn_forward.1
= control target key start
LH: loop header
LB: loop body
LE: loop exit
PB: predicated region body
PF: predicated region fallthrough
CT: control target
= control target key end

     0   :  { %s6259_s0 = inlined_call_operand.vmem [shape: f32[128,4], index: 0, kind: input, shape index: {}]   ;;  %s6260_s1 = inlined_call_operand.vmem [shape: f32[256,128], index: 1, kind: input, shape index: {}]   ;;  %s6261_s2 = inlined_call_operand.vmem [shape: f32[16,128], index: 2, kind: input, shape index: {}]   ;;  %s6262_s3 = inlined_call_operand.vmem [shape: f32[4,256], index: 3, kind: input, shape index: {}]   ;;  %s6263_s4 = inlined_call_operand.vmem [shape: f32[4,256], index: 4, kind: input, shape index: {}]   ;;  %s6264_s5 = inlined_call_operand.vmem [shape: f32[1,256], index: 5, kind: input, shape index: {}]   ;;  %s6265_s6 = inlined_call_operand.vmem [shape: f32[4,768], index: 6, kind: input, shape index: {}]   ;;  %s6266_s7 = inlined_call_operand.vmem [shape: f32[1,768], index: 7, kind: input, shape index: {}]   ;;  %s6267_s8 = inlined_call_operand.vmem [shape: bf16[256,512], index: 8, kind: input, shape index: {}]   ;;  %s6268_s9 = inlined_call_operand.vmem [shape: bf16[256,256], index: 9, kind: input, shape index: {}]   ;;  %s6269_s10 = inlined_call_operand.vmem [shape: bf16[256,128], index: 10, kind: input, shape index: {}]   ;;  %s6270_s11 = inlined_call_operand.vmem [shape: f32[1,128], index: 11, kind: input, shape index: {}]   ;;  %s6271_s12 = inlined_call_operand.vmem [shape: f32[128,8], index: 12, kind: input, shape index: {}]   ;;  %s6272_s13 = inlined_call_operand.vmem [shape: f32[1,8], index: 13, kind: input, shape index: {}]   ;;  %s6273_s14 = inlined_call_operand.vmem [shape: f32[16,8], index: 14, kind: output, shape index: {0}]   ;;  %s6274_s15 = inlined_call_operand.hbm [shape: f32[16,256], index: 15, kind: output, shape index: {1}]  }
   0x1   :  { %v4592_v0 = vld [vmem:[%s6259_s0] sm:$0xff]  ;;  %v4597_v1 = vld [vmem:[%s6259_s0 + $0x8] sm:$0xff]  ;;  %v4602_v2 = vld [vmem:[%s6259_s0 + $0x10] sm:$0xff] }
   0x2   :  { %v3864_v3 = vpack.c.bf16 %v4597_v1, %v4592_v0  ;;  %v4609_v4 = vld [vmem:[%s6259_s0 + $0x18] sm:$0xff]  ;;  %v4616_v6 = vld [vmem:[%s6259_s0 + $0x20] sm:$0xff]  ;;  %v4621_v7 = vld [vmem:[%s6259_s0 + $0x28] sm:$0xff] }
   0x3   :  { %v3868_v5 = vpack.c.bf16 %v4609_v4, %v4602_v2  ;;  %v3872_v8 = vpack.c.bf16 %v4621_v7, %v4616_v6  ;;  %v67_v9 = vld [vmem:[%s6260_s1] sm:$0xff]  ;;  %v4631_v10 = vld [vmem:[%s6259_s0 + $0x30] sm:$0xff]  ;;  %v4636_v11 = vld [vmem:[%s6259_s0 + $0x38] sm:$0xff] }
   0x4   :  { %3865 = vmatprep.subr.bf16.mxu0 %v3864_v3  ;;  %3781 = vmatprep.mubr.f32.mxu0 %v67_v9  ;;  %v3876_v12 = vpack.c.bf16 %v4636_v11, %v4631_v10  ;;  %v4643_v13 = vld [vmem:[%s6259_s0 + $0x40] sm:$0xff]  ;;  %v4648_v14 = vld [vmem:[%s6259_s0 + $0x48] sm:$0xff]  ;;  %v4655_v16 = vld [vmem:[%s6259_s0 + $0x50] sm:$0xff] }
   0x5   :  { %3867 = vmatpush3.bf16.msra.mxu0 %v3864_v3  ;;  %v3880_v15 = vpack.c.bf16 %v4648_v14, %v4643_v13  ;;  %v4660_v17 = vld [vmem:[%s6259_s0 + $0x58] sm:$0xff]  ;;  %v4665_v18 = vld [vmem:[%s6259_s0 + $0x60] sm:$0xff]  ;;  %v4670_v19 = vld [vmem:[%s6259_s0 + $0x68] sm:$0xff] }
   0x6   :  { %3869 = vmatprep.subr.bf16.mxu0 %v3868_v5  ;;  %v3884_v20 = vpack.c.bf16 %v4660_v17, %v4655_v16  ;;  %v4677_v21 = vld [vmem:[%s6259_s0 + $0x70] sm:$0xff]  ;;  %v4682_v22 = vld [vmem:[%s6259_s0 + $0x78] sm:$0xff]  ;;  %v3888_v23 = vpack.c.bf16 %v4670_v19, %v4665_v18  ;;  %v68_v25 = vld [vmem:[%s6260_s1 + $0x8] sm:$0xff] }
   0x7   :  { %v3892_v24 = vpack.c.bf16 %v4682_v22, %v4677_v21  ;;  %v69_v26 = vld [vmem:[%s6260_s1 + $0x10] sm:$0xff]  ;;  %v70_v27 = vld [vmem:[%s6260_s1 + $0x18] sm:$0xff]  ;;  %v71_v28 = vld [vmem:[%s6260_s1 + $0x20] sm:$0xff] }
   0x8   :  { %v72_v29 = vld [vmem:[%s6260_s1 + $0x28] sm:$0xff]  ;;  %v73_v30 = vld [vmem:[%s6260_s1 + $0x30] sm:$0xff]  ;;  %v74_v31 = vld [vmem:[%s6260_s1 + $0x38] sm:$0xff] }
   0x9   :  { %3871 = vmatpush3.bf16.msra.mxu0 %v3868_v5  ;;  %v75_v32 = vld [vmem:[%s6260_s1 + $0x40] sm:$0xff]  ;;  %v76_v33 = vld [vmem:[%s6260_s1 + $0x48] sm:$0xff]  ;;  %v77_v34 = vld [vmem:[%s6260_s1 + $0x50] sm:$0xff] }
   0xa   :  { %3873 = vmatprep.subr.bf16.mxu0 %v3872_v8  ;;  %v78_v35 = vld [vmem:[%s6260_s1 + $0x58] sm:$0xff]  ;;  %v79_v36 = vld [vmem:[%s6260_s1 + $0x60] sm:$0xff]  ;;  %v80_v37 = vld [vmem:[%s6260_s1 + $0x68] sm:$0xff] }
   0xb   :  { %v81_v38 = vld [vmem:[%s6260_s1 + $0x70] sm:$0xff] }
   0xd   :  { %3875 = vmatpush3.bf16.msra.mxu0 %v3872_v8 }
   0xe   :  { %3877 = vmatprep.subr.bf16.mxu0 %v3876_v12 }
  0x11   :  { %3879 = vmatpush3.bf16.msra.mxu0 %v3876_v12 }
  0x12   :  { %3881 = vmatprep.subr.bf16.mxu0 %v3880_v15 }
  0x15   :  { %3883 = vmatpush3.bf16.msra.mxu0 %v3880_v15 }
  0x16   :  { %3885 = vmatprep.subr.bf16.mxu0 %v3884_v20 }
  0x19   :  { %3887 = vmatpush3.bf16.msra.mxu0 %v3884_v20 }
  0x1a   :  { %3889 = vmatprep.subr.bf16.mxu0 %v3888_v23 }
  0x1d   :  { %3891 = vmatpush3.bf16.msra.mxu0 %v3888_v23 }
  0x1e   :  { %3893 = vmatprep.subr.bf16.mxu0 %v3892_v24 }
  0x21   :  { %3895 = vmatpush3.bf16.msra.mxu0 %v3892_v24 }
  0x24   :  { %3782 = vmatmul.mubr.f32.vlgmr.msra.gmra.mrb[0].mxu0 %v68_v25 }
  0x25   :  { %3784 = vmatprep.mubr.f32.mxu0 %v69_v26 }
  0x28   :  { %3785 = vmatmul.mubr.f32.gmra.mrb[2].mxu0 %v70_v27 }
  0x29   :  { %3787 = vmatprep.mubr.f32.mxu0 %v71_v28 }
  0x2c   :  { %3788 = vmatmul.mubr.f32.gmra.mrb[4].mxu0 %v72_v29 }
  0x2d   :  { %3790 = vmatprep.mubr.f32.mxu0 %v73_v30 }
  0x30   :  { %3791 = vmatmul.mubr.f32.gmra.mrb[6].mxu0 %v74_v31 }
  0x31   :  { %3793 = vmatprep.mubr.f32.mxu0 %v75_v32 }
  0x34   :  { %3794 = vmatmul.mubr.f32.gmra.mrb[8].mxu0 %v76_v33 }
  0x35   :  { %3796 = vmatprep.mubr.f32.mxu0 %v77_v34 }
  0x38   :  { %3797 = vmatmul.mubr.f32.gmra.mrb[10].mxu0 %v78_v35 }
  0x39   :  { %3799 = vmatprep.mubr.f32.mxu0 %v79_v36 }
  0x3a   :  { %21 = vsyncpa [#allocation3], 0  ;;  %v82_v39 = vld [vmem:[%s6260_s1 + $0x78] sm:$0xff]  ;;  %v83_v40 = vld [vmem:[%s6260_s1 + $0x80] sm:$0xff]  ;;  %vm377_vm0 = vcmask 1043456   ;;  %v6275_v58 = vmov 0.0  }
  0x3b   :  { %v84_v41 = vld [vmem:[%s6260_s1 + $0x88] sm:$0xff]  ;;  %v85_v42 = vld [vmem:[%s6260_s1 + $0x90] sm:$0xff]  ;;  %v86_v43 = vld [vmem:[%s6260_s1 + $0x98] sm:$0xff]  ;;  %446 = vmatprep.mubr.f32.mxu1 %v6275_v58  ;;  %vm328_vm1 = vcmask 31744  }
  0x3c   :  { %3800 = vmatmul.mubr.f32.gmra.mrb[12].mxu0 %v80_v37  ;;  %v87_v44 = vld [vmem:[%s6260_s1 + $0xa0] sm:$0xff]  ;;  %v88_v45 = vld [vmem:[%s6260_s1 + $0xa8] sm:$0xff]  ;;  %v89_v46 = vld [vmem:[%s6260_s1 + $0xb0] sm:$0xff] }
  0x3d   :  { %3802 = vmatprep.mubr.f32.mxu0 %v81_v38  ;;  %v90_v47 = vld [vmem:[%s6260_s1 + $0xb8] sm:$0xff]  ;;  %v91_v48 = vld [vmem:[%s6260_s1 + $0xc0] sm:$0xff]  ;;  %v92_v49 = vld [vmem:[%s6260_s1 + $0xc8] sm:$0xff] }
  0x3e   :  { %v93_v50 = vld [vmem:[%s6260_s1 + $0xd0] sm:$0xff]  ;;  %v94_v51 = vld [vmem:[%s6260_s1 + $0xd8] sm:$0xff]  ;;  %v95_v52 = vld [vmem:[%s6260_s1 + $0xe0] sm:$0xff] }
  0x3f   :  { %v96_v53 = vld [vmem:[%s6260_s1 + $0xe8] sm:$0xff]  ;;  %v97_v54 = vld [vmem:[%s6260_s1 + $0xf0] sm:$0xff]  ;;  %v98_v55 = vld [vmem:[%s6260_s1 + $0xf8] sm:$0xff] }
  0x40   :  { %3803 = vmatmul.mubr.f32.gmra.mrb[14].mxu0 %v82_v39  ;;  %v325_v56 = vld [vmem:[%s6263_s4] sm:$0xff]  ;;  %v4800_v63 = vld [vmem:[%s6265_s6 + $0x8] sm:$0xff]  ;;  %v804_v3 = vld [vmem:[%s6265_s6 + $0x10] sm:$0xff] }
  0x41   :  { %3805 = vmatprep.mubr.f32.mxu0 %v83_v40  ;;  %v327_v57 = vcombine.high %v325_v56, %v325_v56  ;;  %v324_v59 = vld [vmem:[%s6262_s3] sm:$0xff]  ;;  %v842_v5 = vcombine.high %v804_v3, %v804_v3  ;;  %v841_v9 = vcombine.high %v4800_v63, %v4800_v63 }
  0x42   :  { %v544_v60 = vcombine.high %v324_v59, %v324_v59  ;;  %v802_v61 = vld [vmem:[%s6265_s6] sm:$0xff] }
  0x43   :  { %3393 = vmatprep.subr.msk.mxu1 %vm377_vm0, %v327_v57  ;;  %v840_v62 = vcombine.high %v802_v61, %v802_v61  ;;  %v4007_v57 = vld [vmem:[%s6267_s8 + $0x20] ss:$16 sps:$4 sm:$0xff]  }
  0x44   :  { %3806 = vmatmul.mubr.f32.gmra.mrb[16].mxu0 %v84_v41  ;;  %3394 = vmatpush1.msk.msra.mxu1 %vm377_vm0, %v325_v56  ;;  %v4060_v56 = vld [vmem:[%s6267_s8 + $0x12c] ss:$16 sps:$4 sm:$0xff]  }
  0x45   :  { %3808 = vmatprep.mubr.f32.mxu0 %v85_v42  ;;  %3411 = vmatprep.subr.msk.mxu1 %vm377_vm0, %v544_v60  ;;  %v4015_v60 = vld [vmem:[%s6267_s8 + $0x44] ss:$16 sps:$4 sm:$0xff]  }
  0x46   :  { %3429 = vmatprep.subr.msk.mxu0 %vm377_vm0, %v840_v62  ;;  %v4013_v62 = vld [vmem:[%s6267_s8 + $0x40] ss:$16 sps:$4 sm:$0xff]  }
  0x47   :  { %3430 = vmatpush1.msk.msra.mxu0 %vm377_vm0, %v802_v61  ;;  %v4066_v61 = vld [vmem:[%s6267_s8 + $0x14c] ss:$16 sps:$4 sm:$0xff]  }
  0x48   :  { %3809 = vmatmul.mubr.f32.gmra.mrb[18].mxu0 %v86_v43  ;;  %3465 = vmatprep.subr.msk.mxu0 %vm377_vm0, %v842_v5  ;;  %v4072_v5 = vld [vmem:[%s6267_s8 + $0x16c] ss:$16 sps:$4 sm:$0xff]  }
  0x49   :  { %3811 = vmatprep.mubr.f32.mxu0 %v87_v44 }
  0x4c   :  { %3812 = vmatmul.mubr.f32.gmra.mrb[20].mxu0 %v88_v45 }
  0x4d   :  { %3814 = vmatprep.mubr.f32.mxu0 %v89_v46 }
  0x50   :  { %3815 = vmatmul.mubr.f32.gmra.mrb[22].mxu0 %v90_v47 }
  0x51   :  { %3817 = vmatprep.mubr.f32.mxu0 %v91_v48 }
  0x54   :  { %3818 = vmatmul.mubr.f32.gmra.mrb[24].mxu0 %v92_v49 }
  0x55   :  { %3820 = vmatprep.mubr.f32.mxu0 %v93_v50 }
  0x58   :  { %3821 = vmatmul.mubr.f32.gmra.mrb[26].mxu0 %v94_v51  ;;  %v4006_v51 = vld [vmem:[%s6267_s8 + $0xc] ss:$16 sps:$4 sm:$0xff]  }
  0x59   :  { %3823 = vmatprep.mubr.f32.mxu0 %v95_v52  ;;  %v4003_v52 = vld [vmem:[%s6267_s8 + $0x4] ss:$16 sps:$4 sm:$0xff]  }
  0x5c   :  { %3824 = vmatmul.mubr.f32.gmra.mrb[28].mxu0 %v96_v53  ;;  %v4048_v53 = vld [vmem:[%s6267_s8 + $0xec] ss:$16 sps:$4 sm:$0xff]  }
  0x5d   :  { %3826 = vmatprep.mubr.f32.mxu0 %v97_v54  ;;  %v4054_v54 = vld [vmem:[%s6267_s8 + $0x10c] ss:$16 sps:$4 sm:$0xff]  }
  0x60   :  { %3827 = vmatmul.mubr.f32.gmra.mrb[30].mxu0 %v98_v55  ;;  %v4052_v55 = vld [vmem:[%s6267_s8 + $0x108] ss:$16 sps:$4 sm:$0xff]  }
  0x61   :  { %967 = vmatprep.mubr.f32.mxu0 %v6275_v58 }
  0xf7   :  { %v3783_v8 = vpop.f32.mrb[0].mxu0 }
  0xf8   :  { %v165_v12 = vpop.f32.mrb[1].mxu0 }
  0xf9   :  { %3395 = vmatmul.mubr.msk.f32.vlgmr.msra.gmra.mrb[0].mxu1 %vm328_vm1, %v165_v12  ;;  %v4027_v12 = vld [vmem:[%s6267_s8 + $0x84] ss:$16 sps:$4 sm:$0xff]  }
  0xfa   :  { %452 = vmatprep.mubr.f32.mxu1 %v6275_v58  ;;  %3412 = vmatpush1.msk.msra.mxu1 %vm377_vm0, %v324_v59  ;;  %v4058_v59 = vld [vmem:[%s6267_s8 + $0x128] ss:$16 sps:$4 sm:$0xff]  }
  0xfb   :  { %v3786_v15 = vpop.f32.mrb[2].mxu0  ;;  %3447 = vmatprep.subr.msk.mxu1 %vm377_vm0, %v841_v9  ;;  %v4070_v9 = vld [vmem:[%s6267_s8 + $0x168] ss:$16 sps:$4 sm:$0xff]  }
  0xfc   :  { %v175_v20 = vpop.f32.mrb[3].mxu0 }
  0xfd   :  { %3396 = vmatmul.mubr.msk.f32.gmra.mrb[2].mxu1 %vm328_vm1, %v3783_v8  ;;  %v4019_v8 = vld [vmem:[%s6267_s8 + $0x60] ss:$16 sps:$4 sm:$0xff]  }
  0xfe   :  { %458 = vmatprep.mubr.f32.mxu1 %v6275_v58 }
  0xff   :  { %v3789_v23 = vpop.f32.mrb[4].mxu0 }
 0x100   :  { %v185_v24 = vpop.f32.mrb[5].mxu0 }
 0x101   :  { %3397 = vmatmul.mubr.msk.f32.gmra.mrb[4].mxu1 %vm328_vm1, %v175_v20  ;;  %v4025_v20 = vld [vmem:[%s6267_s8 + $0x80] ss:$16 sps:$4 sm:$0xff]  }
 0x102   :  { %464 = vmatprep.mubr.f32.mxu1 %v6275_v58 }
 0x103   :  { %v3792_v25 = vpop.f32.mrb[6].mxu0 }
 0x104   :  { %v195_v26 = vpop.f32.mrb[7].mxu0 }
 0x105   :  { %3398 = vmatmul.mubr.msk.f32.gmra.mrb[6].mxu1 %vm328_vm1, %v3786_v15  ;;  %v4078_v15 = vld [vmem:[%s6267_s8 + $0x18c] ss:$16 sps:$4 sm:$0xff]  }
 0x106   :  { %470 = vmatprep.mubr.f32.mxu1 %v6275_v58 }
 0x107   :  { %v3795_v27 = vpop.f32.mrb[8].mxu0 }
 0x108   :  { %v205_v28 = vpop.f32.mrb[9].mxu0 }
 0x109   :  { %3399 = vmatmul.mubr.msk.f32.gmra.mrb[8].mxu1 %vm328_vm1, %v185_v24  ;;  %v4033_v24 = vld [vmem:[%s6267_s8 + $0xa4] ss:$16 sps:$4 sm:$0xff]  }
 0x10a   :  { %476 = vmatprep.mubr.f32.mxu1 %v6275_v58 }
 0x10b   :  { %v3798_v29 = vpop.f32.mrb[10].mxu0 }
 0x10c   :  { %v215_v30 = vpop.f32.mrb[11].mxu0 }
 0x10d   :  { %3400 = vmatmul.mubr.msk.f32.gmra.mrb[10].mxu1 %vm328_vm1, %v3789_v23  ;;  %v4076_v23 = vld [vmem:[%s6267_s8 + $0x188] ss:$16 sps:$4 sm:$0xff]  }
 0x10e   :  { %482 = vmatprep.mubr.f32.mxu1 %v6275_v58 }
 0x10f   :  { %v3801_v31 = vpop.f32.mrb[12].mxu0 }
 0x110   :  { %v225_v32 = vpop.f32.mrb[13].mxu0 }
 0x111   :  { %3401 = vmatmul.mubr.msk.f32.gmra.mrb[12].mxu1 %vm328_vm1, %v195_v26  ;;  %v4031_v26 = vld [vmem:[%s6267_s8 + $0xa0] ss:$16 sps:$4 sm:$0xff]  }
 0x112   :  { %488 = vmatprep.mubr.f32.mxu1 %v6275_v58 }
 0x113   :  { %v3804_v33 = vpop.f32.mrb[14].mxu0 }
 0x114   :  { %v235_v34 = vpop.f32.mrb[15].mxu0 }
 0x115   :  { %3402 = vmatmul.mubr.msk.f32.gmra.mrb[14].mxu1 %vm328_vm1, %v3792_v25  ;;  %v4084_v25 = vld [vmem:[%s6267_s8 + $0x1ac] ss:$16 sps:$4 sm:$0xff]  }
 0x116   :  { %494 = vmatprep.mubr.f32.mxu1 %v6275_v58 }
 0x117   :  { %v4826_v35 = vpop.f32.mrb[16].mxu0 }
 0x118   :  { %v4828_v36 = vpop.f32.mrb[17].mxu0 }
 0x119   :  { %3403 = vmatmul.mubr.msk.f32.gmra.mrb[16].mxu1 %vm328_vm1, %v205_v28  ;;  %3431 = vmatmul.mubr.msk.f32.vlgmr.msra.gmra.mrb[32].mxu0 %vm328_vm1, %v4828_v36  ;;  %v4039_v28 = vld [vmem:[%s6267_s8 + $0xc4] ss:$16 sps:$4 sm:$0xff]  }
 0x11a   :  { %500 = vmatprep.mubr.f32.mxu1 %v6275_v58  ;;  %973 = vmatprep.mubr.f32.mxu0 %v6275_v58 }
 0x11b   :  { %v4835_v37 = vpop.f32.mrb[18].mxu0  ;;  %3466 = vmatpush1.msk.msra.mxu0 %vm377_vm0, %v804_v3  ;;  %v4021_v3 = vld [vmem:[%s6267_s8 + $0x64] ss:$16 sps:$4 sm:$0xff]  }
 0x11c   :  { %v4838_v38 = vpop.f32.mrb[19].mxu0  ;;  %1899 = vmatprep.subr.bf16.mxu0 %v4006_v51  ;;  %v4081_v51 = vld [vmem:[%s6267_s8 + $0x1a4] ss:$16 sps:$4 sm:$0xff]  }
 0x11d   :  { %3404 = vmatmul.mubr.msk.f32.gmra.mrb[18].mxu1 %vm328_vm1, %v3795_v27  ;;  %3432 = vmatmul.mubr.msk.f32.gmra.mrb[34].mxu0 %vm328_vm1, %v4826_v35  ;;  %v4082_v27 = vld [vmem:[%s6267_s8 + $0x1a8] ss:$16 sps:$4 sm:$0xff]  }
 0x11e   :  { %506 = vmatprep.mubr.f32.mxu1 %v6275_v58  ;;  %979 = vmatprep.mubr.f32.mxu0 %v6275_v58 }
 0x11f   :  { %v4845_v39 = vpop.f32.mrb[20].mxu0 }
 0x120   :  { %v4847_v40 = vpop.f32.mrb[21].mxu0 }
 0x121   :  { %3405 = vmatmul.mubr.msk.f32.gmra.mrb[20].mxu1 %vm328_vm1, %v215_v30  ;;  %3433 = vmatmul.mubr.msk.f32.gmra.mrb[36].mxu0 %vm328_vm1, %v4838_v38  ;;  %v4037_v30 = vld [vmem:[%s6267_s8 + $0xc0] ss:$16 sps:$4 sm:$0xff]  }
 0x122   :  { %512 = vmatprep.mubr.f32.mxu1 %v6275_v58  ;;  %985 = vmatprep.mubr.f32.mxu0 %v6275_v58 }
 0x123   :  { %v4854_v41 = vpop.f32.mrb[22].mxu0 }
 0x124   :  { %v4856_v42 = vpop.f32.mrb[23].mxu0 }
 0x125   :  { %3406 = vmatmul.mubr.msk.f32.gmra.mrb[22].mxu1 %vm328_vm1, %v3798_v29  ;;  %3434 = vmatmul.mubr.msk.f32.gmra.mrb[38].mxu0 %vm328_vm1, %v4835_v37  ;;  %v4090_v29 = vld [vmem:[%s6267_s8 + $0x1cc] ss:$16 sps:$4 sm:$0xff]  }
 0x126   :  { %518 = vmatprep.mubr.f32.mxu1 %v6275_v58  ;;  %991 = vmatprep.mubr.f32.mxu0 %v6275_v58 }
 0x127   :  { %v4863_v43 = vpop.f32.mrb[24].mxu0 }
 0x128   :  { %v4865_v44 = vpop.f32.mrb[25].mxu0 }
 0x129   :  { %3407 = vmatmul.mubr.msk.f32.gmra.mrb[24].mxu1 %vm328_vm1, %v225_v32  ;;  %3435 = vmatmul.mubr.msk.f32.gmra.mrb[40].mxu0 %vm328_vm1, %v4847_v40  ;;  %v4045_v32 = vld [vmem:[%s6267_s8 + $0xe4] ss:$16 sps:$4 sm:$0xff]  }
 0x12a   :  { %524 = vmatprep.mubr.f32.mxu1 %v6275_v58  ;;  %997 = vmatprep.mubr.f32.mxu0 %v6275_v58 }
 0x12b   :  { %v4872_v45 = vpop.f32.mrb[26].mxu0 }
 0x12c   :  { %v4874_v46 = vpop.f32.mrb[27].mxu0 }
 0x12d   :  { %3408 = vmatmul.mubr.msk.f32.gmra.mrb[26].mxu1 %vm328_vm1, %v3801_v31  ;;  %3436 = vmatmul.mubr.msk.f32.gmra.mrb[42].mxu0 %vm328_vm1, %v4845_v39  ;;  %v4088_v31 = vld [vmem:[%s6267_s8 + $0x1c8] ss:$16 sps:$4 sm:$0xff]  }
 0x12e   :  { %530 = vmatprep.mubr.f32.mxu1 %v6275_v58  ;;  %1003 = vmatprep.mubr.f32.mxu0 %v6275_v58 }
 0x12f   :  { %v4881_v47 = vpop.f32.mrb[28].mxu0 }
 0x130   :  { %v4883_v48 = vpop.f32.mrb[29].mxu0 }
 0x131   :  { %3409 = vmatmul.mubr.msk.f32.gmra.mrb[28].mxu1 %vm328_vm1, %v235_v34  ;;  %3437 = vmatmul.mubr.msk.f32.gmra.mrb[44].mxu0 %vm328_vm1, %v4856_v42  ;;  %v4043_v34 = vld [vmem:[%s6267_s8 + $0xe0] ss:$16 sps:$4 sm:$0xff]  }
 0x132   :  { %536 = vmatprep.mubr.f32.mxu1 %v6275_v58  ;;  %1009 = vmatprep.mubr.f32.mxu0 %v6275_v58 }
 0x133   :  { %v4890_v49 = vpop.f32.mrb[30].mxu0 }
 0x134   :  { %v4892_v50 = vpop.f32.mrb[31].mxu0 }
 0x135   :  { %3410 = vmatmul.mubr.msk.f32.gmra.mrb[30].mxu1 %vm328_vm1, %v3804_v33  ;;  %3438 = vmatmul.mubr.msk.f32.gmra.mrb[46].mxu0 %vm328_vm1, %v4854_v41  ;;  %v4096_v33 = vld [vmem:[%s6267_s8 + $0x1ec] ss:$16 sps:$4 sm:$0xff]  }
 0x136   :  { %661 = vmatprep.mubr.f32.mxu1 %v6275_v58  ;;  %1015 = vmatprep.mubr.f32.mxu0 %v6275_v58 }
 0x139   :  { %3413 = vmatmul.mubr.msk.f32.vlgmr.msra.gmra.mrb[0].mxu1 %vm328_vm1, %v4592_v0  ;;  %3439 = vmatmul.mubr.msk.f32.gmra.mrb[48].mxu0 %vm328_vm1, %v4865_v44  ;;  %v4004_v0 = vld [vmem:[%s6267_s8 + $0x8] ss:$16 sps:$4 sm:$0xff]  }
 0x13a   :  { %667 = vmatprep.mubr.f32.mxu1 %v6275_v58  ;;  %1021 = vmatprep.mubr.f32.mxu0 %v6275_v58 }
 0x13b   :  { %3448 = vmatpush1.msk.msra.mxu1 %vm377_vm0, %v4800_v63  ;;  %v4064_v63 = vld [vmem:[%s6267_s8 + $0x148] ss:$16 sps:$4 sm:$0xff]  }
 0x13c   :  { %1786 = vmatprep.subr.bf16.mxu1 %v4003_v52  ;;  %v4087_v52 = vld [vmem:[%s6267_s8 + $0x1c4] ss:$16 sps:$4 sm:$0xff]  }
 0x13d   :  { %3414 = vmatmul.mubr.msk.f32.gmra.mrb[2].mxu1 %vm328_vm1, %v4597_v1  ;;  %3440 = vmatmul.mubr.msk.f32.gmra.mrb[50].mxu0 %vm328_vm1, %v4863_v43  ;;  %v4012_v1 = vld [vmem:[%s6267_s8 + $0x2c] ss:$16 sps:$4 sm:$0xff]  }
 0x13e   :  { %673 = vmatprep.mubr.f32.mxu1 %v6275_v58  ;;  %1027 = vmatprep.mubr.f32.mxu0 %v6275_v58 }
 0x141   :  { %3415 = vmatmul.mubr.msk.f32.gmra.mrb[4].mxu1 %vm328_vm1, %v4602_v2  ;;  %3441 = vmatmul.mubr.msk.f32.gmra.mrb[52].mxu0 %vm328_vm1, %v4874_v46  ;;  %v4010_v2 = vld [vmem:[%s6267_s8 + $0x28] ss:$16 sps:$4 sm:$0xff]  }
 0x142   :  { %679 = vmatprep.mubr.f32.mxu1 %v6275_v58  ;;  %1033 = vmatprep.mubr.f32.mxu0 %v6275_v58 }
 0x145   :  { %3416 = vmatmul.mubr.msk.f32.gmra.mrb[6].mxu1 %vm328_vm1, %v4609_v4  ;;  %3442 = vmatmul.mubr.msk.f32.gmra.mrb[54].mxu0 %vm328_vm1, %v4872_v45  ;;  %v4018_v4 = vld [vmem:[%s6267_s8 + $0x4c] ss:$16 sps:$4 sm:$0xff]  }
 0x146   :  { %685 = vmatprep.mubr.f32.mxu1 %v6275_v58  ;;  %1039 = vmatprep.mubr.f32.mxu0 %v6275_v58 }
 0x149   :  { %3417 = vmatmul.mubr.msk.f32.gmra.mrb[8].mxu1 %vm328_vm1, %v4616_v6  ;;  %3443 = vmatmul.mubr.msk.f32.gmra.mrb[56].mxu0 %vm328_vm1, %v4883_v48  ;;  %v4016_v6 = vld [vmem:[%s6267_s8 + $0x48] ss:$16 sps:$4 sm:$0xff]  }
 0x14a   :  { %691 = vmatprep.mubr.f32.mxu1 %v6275_v58  ;;  %1045 = vmatprep.mubr.f32.mxu0 %v6275_v58 }
 0x14d   :  { %3418 = vmatmul.mubr.msk.f32.gmra.mrb[10].mxu1 %vm328_vm1, %v4621_v7  ;;  %3444 = vmatmul.mubr.msk.f32.gmra.mrb[58].mxu0 %vm328_vm1, %v4881_v47  ;;  %v4024_v7 = vld [vmem:[%s6267_s8 + $0x6c] ss:$16 sps:$4 sm:$0xff]  }
 0x14e   :  { %697 = vmatprep.mubr.f32.mxu1 %v6275_v58  ;;  %1051 = vmatprep.mubr.f32.mxu0 %v6275_v58 }
 0x151   :  { %3419 = vmatmul.mubr.msk.f32.gmra.mrb[12].mxu1 %vm328_vm1, %v4631_v10  ;;  %3445 = vmatmul.mubr.msk.f32.gmra.mrb[60].mxu0 %vm328_vm1, %v4892_v50  ;;  %v4022_v10 = vld [vmem:[%s6267_s8 + $0x68] ss:$16 sps:$4 sm:$0xff]  }
 0x152   :  { %703 = vmatprep.mubr.f32.mxu1 %v6275_v58  ;;  %1057 = vmatprep.mubr.f32.mxu0 %v6275_v58 }
 0x155   :  { %3420 = vmatmul.mubr.msk.f32.gmra.mrb[14].mxu1 %vm328_vm1, %v4636_v11  ;;  %3446 = vmatmul.mubr.msk.f32.gmra.mrb[62].mxu0 %vm328_vm1, %v4890_v49  ;;  %v4030_v11 = vld [vmem:[%s6267_s8 + $0x8c] ss:$16 sps:$4 sm:$0xff]  }
 0x156   :  { %709 = vmatprep.mubr.f32.mxu1 %v6275_v58  ;;  %1289 = vmatprep.mubr.f32.mxu0 %v6275_v58 }
 0x159   :  { %3421 = vmatmul.mubr.msk.f32.gmra.mrb[16].mxu1 %vm328_vm1, %v4643_v13  ;;  %3467 = vmatmul.mubr.msk.f32.vlgmr.msra.gmra.mrb[64].mxu0 %vm328_vm1, %v4828_v36  ;;  %v4028_v13 = vld [vmem:[%s6267_s8 + $0x88] ss:$16 sps:$4 sm:$0xff]  }
 0x15a   :  { %715 = vmatprep.mubr.f32.mxu1 %v6275_v58  ;;  %1295 = vmatprep.mubr.f32.mxu0 %v6275_v58 }
 0x15b   :  { %1900 = vmatpush1.bf16.msra.mxu0 %v4004_v0  ;;  %v4093_v0 = vld [vmem:[%s6267_s8 + $0x1e4] ss:$16 sps:$4 sm:$0xff]  }
 0x15c   :  { %1901 = vmatprep.subr.bf16.mxu0 %v4012_v1  ;;  %v760_v1 = vlaneseq }
 0x15d   :  { %3422 = vmatmul.mubr.msk.f32.gmra.mrb[18].mxu1 %vm328_vm1, %v4648_v14  ;;  %3468 = vmatmul.mubr.msk.f32.gmra.mrb[66].mxu0 %vm328_vm1, %v4826_v35  ;;  %v4036_v14 = vld [vmem:[%s6267_s8 + $0xac] ss:$16 sps:$4 sm:$0xff]  }
 0x15e   :  { %721 = vmatprep.mubr.f32.mxu1 %v6275_v58  ;;  %1301 = vmatprep.mubr.f32.mxu0 %v6275_v58 }
 0x15f   :  { %1902 = vmatpush1.bf16.msra.mxu0 %v4010_v2  ;;  %v5259_v2 = vshrl.u32 %v760_v1, 7 }
 0x160   :  { %1903 = vmatprep.subr.bf16.mxu0 %v4018_v4 }
 0x161   :  { %3423 = vmatmul.mubr.msk.f32.gmra.mrb[20].mxu1 %vm328_vm1, %v4655_v16  ;;  %3469 = vmatmul.mubr.msk.f32.gmra.mrb[68].mxu0 %vm328_vm1, %v4838_v38  ;;  %v4034_v16 = vld [vmem:[%s6267_s8 + $0xa8] ss:$16 sps:$4 sm:$0xff]   ;;  %v762_v4 = vsub.s32 0, %v5259_v2 }
 0x162   :  { %727 = vmatprep.mubr.f32.mxu1 %v6275_v58  ;;  %1307 = vmatprep.mubr.f32.mxu0 %v6275_v58 }
 0x163   :  { %1904 = vmatpush1.bf16.msra.mxu0 %v4016_v6  ;;  %v766_v6 = vsub.s32 1, %v5259_v2 }
 0x164   :  { %1905 = vmatprep.subr.bf16.mxu0 %v4024_v7 }
 0x165   :  { %3424 = vmatmul.mubr.msk.f32.gmra.mrb[22].mxu1 %vm328_vm1, %v4660_v17  ;;  %3470 = vmatmul.mubr.msk.f32.gmra.mrb[70].mxu0 %vm328_vm1, %v4835_v37  ;;  %v4042_v17 = vld [vmem:[%s6267_s8 + $0xcc] ss:$16 sps:$4 sm:$0xff]  }
 0x166   :  { %733 = vmatprep.mubr.f32.mxu1 %v6275_v58  ;;  %1313 = vmatprep.mubr.f32.mxu0 %v6275_v58 }
 0x167   :  { %1906 = vmatpush1.bf16.msra.mxu0 %v4022_v10 }
 0x168   :  { %1907 = vmatprep.subr.bf16.mxu0 %v4030_v11 }
 0x169   :  { %3425 = vmatmul.mubr.msk.f32.gmra.mrb[24].mxu1 %vm328_vm1, %v4665_v18  ;;  %3471 = vmatmul.mubr.msk.f32.gmra.mrb[72].mxu0 %vm328_vm1, %v4847_v40  ;;  %v4040_v18 = vld [vmem:[%s6267_s8 + $0xc8] ss:$16 sps:$4 sm:$0xff]  }
 0x16a   :  { %739 = vmatprep.mubr.f32.mxu1 %v6275_v58  ;;  %1319 = vmatprep.mubr.f32.mxu0 %v6275_v58 }
 0x16b   :  { %1908 = vmatpush1.bf16.msra.mxu0 %v4028_v13 }
 0x16c   :  { %1909 = vmatprep.subr.bf16.mxu0 %v4036_v14 }
 0x16d   :  { %3426 = vmatmul.mubr.msk.f32.gmra.mrb[26].mxu1 %vm328_vm1, %v4670_v19  ;;  %3472 = vmatmul.mubr.msk.f32.gmra.mrb[74].mxu0 %vm328_vm1, %v4845_v39  ;;  %v4046_v19 = vld [vmem:[%s6267_s8 + $0xe8] ss:$16 sps:$4 sm:$0xff]  }
 0x16e   :  { %745 = vmatprep.mubr.f32.mxu1 %v6275_v58  ;;  %1325 = vmatprep.mubr.f32.mxu0 %v6275_v58 }
 0x16f   :  { %1910 = vmatpush1.bf16.msra.mxu0 %v4034_v16 }
 0x170   :  { %1911 = vmatprep.subr.bf16.mxu0 %v4042_v17 }
 0x171   :  { %3427 = vmatmul.mubr.msk.f32.gmra.mrb[28].mxu1 %vm328_vm1, %v4677_v21  ;;  %3473 = vmatmul.mubr.msk.f32.gmra.mrb[76].mxu0 %vm328_vm1, %v4856_v42  ;;  %v4001_v21 = vld [vmem:[%s6267_s8] ss:$16 sps:$4 sm:$0xff]  }
 0x172   :  { %751 = vmatprep.mubr.f32.mxu1 %v6275_v58  ;;  %1331 = vmatprep.mubr.f32.mxu0 %v6275_v58 }
 0x173   :  { %1912 = vmatpush1.bf16.msra.mxu0 %v4040_v18 }
 0x174   :  { %1913 = vmatprep.subr.bf16.mxu0 %v4048_v53 }
 0x175   :  { %3428 = vmatmul.mubr.msk.f32.gmra.mrb[30].mxu1 %vm328_vm1, %v4682_v22  ;;  %3474 = vmatmul.mubr.msk.f32.gmra.mrb[78].mxu0 %vm328_vm1, %v4854_v41  ;;  %v4009_v22 = vld [vmem:[%s6267_s8 + $0x24] ss:$16 sps:$4 sm:$0xff]  }
 0x176   :  { %1128 = vmatprep.mubr.f32.mxu1 %v6275_v58  ;;  %1337 = vmatprep.mubr.f32.mxu0 %v6275_v58 }
 0x177   :  { %1914 = vmatpush1.bf16.msra.mxu0 %v4046_v19 }
 0x178   :  { %1915 = vmatprep.subr.bf16.mxu0 %v4054_v54 }
 0x179   :  { %3449 = vmatmul.mubr.msk.f32.vlgmr.msra.gmra.mrb[32].mxu1 %vm328_vm1, %v4828_v36  ;;  %3475 = vmatmul.mubr.msk.f32.gmra.mrb[80].mxu0 %vm328_vm1, %v4865_v44  ;;  %v4051_v36 = vld [vmem:[%s6267_s8 + $0x104] ss:$16 sps:$4 sm:$0xff]  }
 0x17a   :  { %1134 = vmatprep.mubr.f32.mxu1 %v6275_v58  ;;  %1343 = vmatprep.mubr.f32.mxu0 %v6275_v58 }
 0x17b   :  { %1787 = vmatpush1.bf16.msra.mxu1 %v4001_v21  ;;  %1916 = vmatpush1.bf16.msra.mxu0 %v4052_v55 }
 0x17c   :  { %1788 = vmatprep.subr.bf16.mxu1 %v4009_v22  ;;  %1917 = vmatprep.subr.bf16.mxu0 %v4060_v56 }
 0x17d   :  { %3450 = vmatmul.mubr.msk.f32.gmra.mrb[34].mxu1 %vm328_vm1, %v4826_v35  ;;  %3476 = vmatmul.mubr.msk.f32.gmra.mrb[82].mxu0 %vm328_vm1, %v4863_v43  ;;  %v4094_v35 = vld [vmem:[%s6267_s8 + $0x1e8] ss:$16 sps:$4 sm:$0xff]  }
 0x17e   :  { %1140 = vmatprep.mubr.f32.mxu1 %v6275_v58  ;;  %1349 = vmatprep.mubr.f32.mxu0 %v6275_v58 }
 0x17f   :  { %1789 = vmatpush1.bf16.msra.mxu1 %v4007_v57  ;;  %1918 = vmatpush1.bf16.msra.mxu0 %v4058_v59 }
 0x180   :  { %1790 = vmatprep.subr.bf16.mxu1 %v4015_v60  ;;  %1919 = vmatprep.subr.bf16.mxu0 %v4066_v61 }
 0x181   :  { %3451 = vmatmul.mubr.msk.f32.gmra.mrb[36].mxu1 %vm328_vm1, %v4838_v38  ;;  %3477 = vmatmul.mubr.msk.f32.gmra.mrb[84].mxu0 %vm328_vm1, %v4874_v46  ;;  %v4057_v38 = vld [vmem:[%s6267_s8 + $0x124] ss:$16 sps:$4 sm:$0xff]  }
 0x182   :  { %1146 = vmatprep.mubr.f32.mxu1 %v6275_v58  ;;  %1355 = vmatprep.mubr.f32.mxu0 %v6275_v58 }
 0x183   :  { %1791 = vmatpush1.bf16.msra.mxu1 %v4013_v62  ;;  %1920 = vmatpush1.bf16.msra.mxu0 %v4064_v63 }
 0x184   :  { %1792 = vmatprep.subr.bf16.mxu1 %v4021_v3  ;;  %1921 = vmatprep.subr.bf16.mxu0 %v4072_v5 }
 0x185   :  { %3452 = vmatmul.mubr.msk.f32.gmra.mrb[38].mxu1 %vm328_vm1, %v4835_v37  ;;  %3478 = vmatmul.mubr.msk.f32.gmra.mrb[86].mxu0 %vm328_vm1, %v4872_v45  ;;  %v4049_v37 = vld [vmem:[%s6267_s8 + $0x100] ss:$16 sps:$4 sm:$0xff]  }
 0x186   :  { %1152 = vmatprep.mubr.f32.mxu1 %v6275_v58  ;;  %1361 = vmatprep.mubr.f32.mxu0 %v6275_v58 }
 0x187   :  { %1793 = vmatpush1.bf16.msra.mxu1 %v4019_v8  ;;  %1922 = vmatpush1.bf16.msra.mxu0 %v4070_v9 }
 0x188   :  { %1794 = vmatprep.subr.bf16.mxu1 %v4027_v12  ;;  %1923 = vmatprep.subr.bf16.mxu0 %v4078_v15 }
 0x189   :  { %3453 = vmatmul.mubr.msk.f32.gmra.mrb[40].mxu1 %vm328_vm1, %v4847_v40  ;;  %3479 = vmatmul.mubr.msk.f32.gmra.mrb[88].mxu0 %vm328_vm1, %v4883_v48  ;;  %v4063_v40 = vld [vmem:[%s6267_s8 + $0x144] ss:$16 sps:$4 sm:$0xff]  }
 0x18a   :  { %1158 = vmatprep.mubr.f32.mxu1 %v6275_v58  ;;  %1367 = vmatprep.mubr.f32.mxu0 %v6275_v58 }
 0x18b   :  { %1795 = vmatpush1.bf16.msra.mxu1 %v4025_v20  ;;  %1924 = vmatpush1.bf16.msra.mxu0 %v4076_v23 }
 0x18c   :  { %1796 = vmatprep.subr.bf16.mxu1 %v4033_v24  ;;  %1925 = vmatprep.subr.bf16.mxu0 %v4084_v25 }
 0x18d   :  { %3454 = vmatmul.mubr.msk.f32.gmra.mrb[42].mxu1 %vm328_vm1, %v4845_v39  ;;  %3480 = vmatmul.mubr.msk.f32.gmra.mrb[90].mxu0 %vm328_vm1, %v4881_v47  ;;  %v4055_v39 = vld [vmem:[%s6267_s8 + $0x120] ss:$16 sps:$4 sm:$0xff]  }
 0x18e   :  { %1164 = vmatprep.mubr.f32.mxu1 %v6275_v58  ;;  %1373 = vmatprep.mubr.f32.mxu0 %v6275_v58 }
 0x18f   :  { %1797 = vmatpush1.bf16.msra.mxu1 %v4031_v26  ;;  %1926 = vmatpush1.bf16.msra.mxu0 %v4082_v27 }
 0x190   :  { %1798 = vmatprep.subr.bf16.mxu1 %v4039_v28  ;;  %1927 = vmatprep.subr.bf16.mxu0 %v4090_v29  ;;  %v4099_v28 = vld [vmem:[%s6268_s9 + $0x4] ss:$8 sps:$4 sm:$0xff]   ;;  %v758_v29 = vld [vmem:[%s6264_s5] sm:$0x3] }
 0x191   :  { %3455 = vmatmul.mubr.msk.f32.gmra.mrb[44].mxu1 %vm328_vm1, %v4856_v42  ;;  %3481 = vmatmul.mubr.msk.f32.gmra.mrb[92].mxu0 %vm328_vm1, %v4892_v50  ;;  %v4069_v42 = vld [vmem:[%s6267_s8 + $0x164] ss:$16 sps:$4 sm:$0xff]  }
 0x192   :  { %1170 = vmatprep.mubr.f32.mxu1 %v6275_v58  ;;  %1379 = vmatprep.mubr.f32.mxu0 %v6275_v58 }
 0x193   :  { %1799 = vmatpush1.bf16.msra.mxu1 %v4037_v30  ;;  %1928 = vmatpush1.bf16.msra.mxu0 %v4088_v31 }
 0x194   :  { %1800 = vmatprep.subr.bf16.mxu1 %v4045_v32  ;;  %1929 = vmatprep.subr.bf16.mxu0 %v4096_v33 }
 0x195   :  { %3456 = vmatmul.mubr.msk.f32.gmra.mrb[46].mxu1 %vm328_vm1, %v4854_v41  ;;  %3482 = vmatmul.mubr.msk.f32.gmra.mrb[94].mxu0 %vm328_vm1, %v4890_v49  ;;  %v4061_v41 = vld [vmem:[%s6267_s8 + $0x140] ss:$16 sps:$4 sm:$0xff]  }
 0x196   :  { %1176 = vmatprep.mubr.f32.mxu1 %v6275_v58 }
 0x197   :  { %1801 = vmatpush1.bf16.msra.mxu1 %v4043_v34  ;;  %1930 = vmatpush1.bf16.msra.mxu0 %v4094_v35  ;;  %v5331_v35 = vrot.slane %v758_v29, %v766_v6 }
 0x198   :  { %1802 = vmatprep.subr.bf16.mxu1 %v4051_v36 }
 0x199   :  { %3457 = vmatmul.mubr.msk.f32.gmra.mrb[48].mxu1 %vm328_vm1, %v4865_v44  ;;  %v4075_v44 = vld [vmem:[%s6267_s8 + $0x184] ss:$16 sps:$4 sm:$0xff]  }
 0x19a   :  { %1182 = vmatprep.mubr.f32.mxu1 %v6275_v58 }
 0x19b   :  { %1803 = vmatpush1.bf16.msra.mxu1 %v4049_v37  ;;  %v5336_v37 = vrot.slane %v758_v29, %v762_v4 }
 0x19c   :  { %1804 = vmatprep.subr.bf16.mxu1 %v4057_v38 }
 0x19d   :  { %3458 = vmatmul.mubr.msk.f32.gmra.mrb[50].mxu1 %vm328_vm1, %v4863_v43  ;;  %v4067_v43 = vld [vmem:[%s6267_s8 + $0x160] ss:$16 sps:$4 sm:$0xff]  }
 0x19e   :  { %1188 = vmatprep.mubr.f32.mxu1 %v6275_v58 }
 0x19f   :  { %1805 = vmatpush1.bf16.msra.mxu1 %v4055_v39 }
 0x1a0   :  { %1806 = vmatprep.subr.bf16.mxu1 %v4063_v40 }
 0x1a1   :  { %3459 = vmatmul.mubr.msk.f32.gmra.mrb[52].mxu1 %vm328_vm1, %v4874_v46  ;;  %v4073_v46 = vld [vmem:[%s6267_s8 + $0x180] ss:$16 sps:$4 sm:$0xff]  }
 0x1a2   :  { %1194 = vmatprep.mubr.f32.mxu1 %v6275_v58 }
 0x1a3   :  { %1807 = vmatpush1.bf16.msra.mxu1 %v4061_v41 }
 0x1a4   :  { %1808 = vmatprep.subr.bf16.mxu1 %v4069_v42 }
 0x1a5   :  { %3460 = vmatmul.mubr.msk.f32.gmra.mrb[54].mxu1 %vm328_vm1, %v4872_v45  ;;  %v4079_v45 = vld [vmem:[%s6267_s8 + $0x1a0] ss:$16 sps:$4 sm:$0xff]  }
 0x1a6   :  { %1200 = vmatprep.mubr.f32.mxu1 %v6275_v58 }
 0x1a7   :  { %1809 = vmatpush1.bf16.msra.mxu1 %v4067_v43 }
 0x1a8   :  { %1810 = vmatprep.subr.bf16.mxu1 %v4075_v44 }
 0x1a9   :  { %3461 = vmatmul.mubr.msk.f32.gmra.mrb[56].mxu1 %vm328_vm1, %v4883_v48  ;;  %v4085_v48 = vld [vmem:[%s6267_s8 + $0x1c0] ss:$16 sps:$4 sm:$0xff]  }
 0x1aa   :  { %1206 = vmatprep.mubr.f32.mxu1 %v6275_v58 }
 0x1ab   :  { %1811 = vmatpush1.bf16.msra.mxu1 %v4073_v46 }
 0x1ac   :  { %1812 = vmatprep.subr.bf16.mxu1 %v4081_v51 }
 0x1ad   :  { %3462 = vmatmul.mubr.msk.f32.gmra.mrb[58].mxu1 %vm328_vm1, %v4881_v47  ;;  %v4091_v47 = vld [vmem:[%s6267_s8 + $0x1e0] ss:$16 sps:$4 sm:$0xff]  }
 0x1ae   :  { %1212 = vmatprep.mubr.f32.mxu1 %v6275_v58 }
 0x1af   :  { %1813 = vmatpush1.bf16.msra.mxu1 %v4079_v45 }
 0x1b0   :  { %1814 = vmatprep.subr.bf16.mxu1 %v4087_v52 }
 0x1b1   :  { %3463 = vmatmul.mubr.msk.f32.gmra.mrb[60].mxu1 %vm328_vm1, %v4892_v50  ;;  %v5266_v50 = vld [vmem:[%s6266_s7] sm:$0x3f] }
 0x1b2   :  { %1218 = vmatprep.mubr.f32.mxu1 %v6275_v58  ;;  %v5269_v7 = vrot.slane %v5266_v50, %v762_v4  ;;  %v5272_v10 = vrot.slane %v5266_v50, %v766_v6 }
 0x1b3   :  { %1815 = vmatpush1.bf16.msra.mxu1 %v4085_v48 }
 0x1b4   :  { %1816 = vmatprep.subr.bf16.mxu1 %v4093_v0 }
 0x1b5   :  { %3464 = vmatmul.mubr.msk.f32.gmra.mrb[62].mxu1 %vm328_vm1, %v4890_v49 }
 0x1b7   :  { %1817 = vmatpush1.bf16.msra.mxu1 %v4091_v47  ;;  %v4097_v47 = vld [vmem:[%s6268_s9] ss:$8 sps:$4 sm:$0xff]  }
 0x1b8   :  { %2700 = vmatprep.subr.bf16.mxu1 %v4099_v28 }
 0x1ec   :  { %v969_v49 = vpop.f32.mrb[32].mxu0 }
 0x1ed   :  { %v5275_v11 = vadd.f32 %v969_v49, %v5269_v7  ;;  %v971_v13 = vpop.f32.mrb[33].mxu0 }
 0x1ee   :  { %v5278_v14 = vadd.f32 %v971_v13, %v5272_v10  ;;  %v4102_v13 = vld [vmem:[%s6268_s9 + $0x14] ss:$8 sps:$4 sm:$0xff]  }
 0x1f0   :  { %v975_v16 = vpop.f32.mrb[34].mxu0 }
 0x1f1   :  { %v5281_v17 = vadd.f32 %v975_v16, %v5269_v7  ;;  %v977_v18 = vpop.f32.mrb[35].mxu0 }
 0x1f2   :  { %v5284_v53 = vadd.f32 %v977_v18, %v5272_v10 }
 0x1f4   :  { %v981_v19 = vpop.f32.mrb[36].mxu0 }
 0x1f5   :  { %v5287_v54 = vadd.f32 %v981_v19, %v5269_v7  ;;  %v983_v21 = vpop.f32.mrb[37].mxu0 }
 0x1f6   :  { %v5290_v55 = vadd.f32 %v983_v21, %v5272_v10  ;;  %v4100_v21 = vld [vmem:[%s6268_s9 + $0x10] ss:$8 sps:$4 sm:$0xff]  }
 0x1f8   :  { %v987_v22 = vpop.f32.mrb[38].mxu0 }
 0x1f9   :  { %v5293_v56 = vadd.f32 %v987_v22, %v5269_v7  ;;  %v989_v57 = vpop.f32.mrb[39].mxu0 }
 0x1fa   :  { %v5296_v59 = vadd.f32 %v989_v57, %v5272_v10 }
 0x1fc   :  { %v993_v60 = vpop.f32.mrb[40].mxu0 }
 0x1fd   :  { %v5299_v61 = vadd.f32 %v993_v60, %v5269_v7  ;;  %v995_v62 = vpop.f32.mrb[41].mxu0 }
 0x1fe   :  { %v5302_v63 = vadd.f32 %v995_v62, %v5272_v10 }
 0x200   :  { %v999_v3 = vpop.f32.mrb[42].mxu0 }
 0x201   :  { %v5305_v5 = vadd.f32 %v999_v3, %v5269_v7  ;;  %v1001_v8 = vpop.f32.mrb[43].mxu0  ;;  %v4105_v3 = vld [vmem:[%s6268_s9 + $0x24] ss:$8 sps:$4 sm:$0xff]  }
 0x202   :  { %v5308_v9 = vadd.f32 %v1001_v8, %v5272_v10 }
 0x204   :  { %v1005_v12 = vpop.f32.mrb[44].mxu0 }
 0x205   :  { %v5311_v15 = vadd.f32 %v1005_v12, %v5269_v7  ;;  %v1007_v20 = vpop.f32.mrb[45].mxu0 }
 0x206   :  { %v5314_v23 = vadd.f32 %v1007_v20, %v5272_v10 }
 0x208   :  { %v1011_v24 = vpop.f32.mrb[46].mxu0 }
 0x209   :  { %v5317_v25 = vadd.f32 %v1011_v24, %v5269_v7  ;;  %v1013_v26 = vpop.f32.mrb[47].mxu0 }
 0x20a   :  { %v5320_v27 = vadd.f32 %v1013_v26, %v5272_v10 }
 0x20c   :  { %v663_v30 = vpop.f32.mrb[0].mxu1  ;;  %v1017_v31 = vpop.f32.mrb[48].mxu0 }
 0x20d   :  { %v665_v32 = vpop.f32.mrb[1].mxu1  ;;  %v5329_v33 = vadd.f32 %v1017_v31, %v5269_v7  ;;  %v1019_v34 = vpop.f32.mrb[49].mxu0  ;;  %v5354_v45 = vadd.f32 %v5336_v37, %v663_v30  ;;  %v4103_v30 = vld [vmem:[%s6268_s9 + $0x20] ss:$8 sps:$4 sm:$0xff]  }
 0x20e   :  { %v5334_v36 = vadd.f32 %v1019_v34, %v5272_v10  ;;  %v5345_v44 = vadd.f32 %v5331_v35, %v665_v32 }
 0x210   :  { %v669_v38 = vpop.f32.mrb[2].mxu1  ;;  %v1023_v39 = vpop.f32.mrb[50].mxu0 }
 0x211   :  { %v5339_v40 = vadd.f32 %v5336_v37, %v669_v38  ;;  %v671_v41 = vpop.f32.mrb[3].mxu1  ;;  %v5342_v42 = vadd.f32 %v1023_v39, %v5269_v7  ;;  %v1025_v43 = vpop.f32.mrb[51].mxu0  ;;  %v4108_v39 = vld [vmem:[%s6268_s9 + $0x34] ss:$8 sps:$4 sm:$0xff]  }
 0x212   :  { %v5348_v46 = vadd.f32 %v5331_v35, %v671_v41  ;;  %v5351_v51 = vadd.f32 %v1025_v43, %v5272_v10 }
 0x213   :  { %v1386_v1 = vpack.c.bf16 %v5339_v40, %v5354_v45 }
 0x214   :  { %v675_v52 = vpop.f32.mrb[4].mxu1  ;;  %v1387_v48 = vpack.c.bf16 %v5348_v46, %v5345_v44  ;;  %v1029_v0 = vpop.f32.mrb[52].mxu0 }
 0x215   :  { %v677_v4 = vpop.f32.mrb[5].mxu1  ;;  %v5364_v6 = vadd.f32 %v1029_v0, %v5269_v7  ;;  %v1031_v49 = vpop.f32.mrb[53].mxu0  ;;  %v5394_v24 = vadd.f32 %v5336_v37, %v675_v52 }
 0x216   :  { %1818 = vmatprep.mubr.bf16.mxu1 %v1387_v48  ;;  %1931 = vmatprep.mubr.bf16.mxu0 %v1387_v48  ;;  %v5370_v16 = vadd.f32 %v1031_v49, %v5272_v10  ;;  %v5385_v8 = vadd.f32 %v5331_v35, %v677_v4  ;;  %v4106_v48 = vld [vmem:[%s6268_s9 + $0x30] ss:$8 sps:$4 sm:$0xff]   ;;  %v4111_v49 = vld [vmem:[%s6268_s9 + $0x44] ss:$8 sps:$4 sm:$0xff]  }
 0x217   :  { %1819 = vmatmul.mubr.bf16.vlgmr.msra.gmra.mrb[64].mxu1 %v1386_v1  ;;  %1932 = vmatmul.mubr.bf16.vlgmr.msra.gmra.mrb[96].mxu0 %v1386_v1  ;;  %6338 = vst [vmem:[#allocation10_spill] sm:$0xff] %v5394_v24 }
 0x218   :  { %v681_v18 = vpop.f32.mrb[6].mxu1  ;;  %v1035_v19 = vpop.f32.mrb[54].mxu0  ;;  %2701 = vmatpush1.bf16.msra.mxu1 %v4097_v47  ;;  %6335 = vst [vmem:[#allocation7_spill] sm:$0xff] %v5385_v8 }
 0x219   :  { %v5376_v22 = vadd.f32 %v5336_v37, %v681_v18  ;;  %v683_v57 = vpop.f32.mrb[7].mxu1  ;;  %v5379_v60 = vadd.f32 %v1035_v19, %v5269_v7  ;;  %v1037_v62 = vpop.f32.mrb[55].mxu0  ;;  %2702 = vmatprep.subr.bf16.mxu1 %v4102_v13 }
 0x21a   :  { %v5388_v12 = vadd.f32 %v5331_v35, %v683_v57  ;;  %v5391_v20 = vadd.f32 %v1037_v62, %v5272_v10 }
 0x21b   :  { %6333 = vst [vmem:[#allocation5_spill] sm:$0xff] %v5376_v22  ;;  %6334 = vst [vmem:[#allocation6_spill] sm:$0xff] %v5379_v60  ;;  %v1388_v32 = vpack.c.bf16 %v5376_v22, %v5394_v24 }
 0x21c   :  { %6336 = vst [vmem:[#allocation8_spill] sm:$0xff] %v5388_v12  ;;  %6337 = vst [vmem:[#allocation9_spill] sm:$0xff] %v5391_v20  ;;  %v687_v26 = vpop.f32.mrb[8].mxu1  ;;  %v1389_v28 = vpack.c.bf16 %v5388_v12, %v5385_v8  ;;  %v1041_v29 = vpop.f32.mrb[56].mxu0  ;;  %2703 = vmatpush1.bf16.msra.mxu1 %v4100_v21 }
 0x21d   :  { %v689_v31 = vpop.f32.mrb[9].mxu1  ;;  %v5404_v34 = vadd.f32 %v1041_v29, %v5269_v7  ;;  %v1043_v38 = vpop.f32.mrb[57].mxu0  ;;  %2704 = vmatprep.subr.bf16.mxu1 %v4105_v3  ;;  %v5434_v21 = vadd.f32 %v5336_v37, %v687_v26  ;;  %v825_v26 = vsub.s32 4, %v5259_v2 }
 0x21e   :  { %1828 = vmatprep.mubr.bf16.mxu1 %v1389_v28  ;;  %1941 = vmatprep.mubr.bf16.mxu0 %v1389_v28  ;;  %v5410_v41 = vadd.f32 %v1043_v38, %v5272_v10  ;;  %v5425_v13 = vadd.f32 %v5331_v35, %v689_v31  ;;  %v4109_v28 = vld [vmem:[%s6268_s9 + $0x40] ss:$8 sps:$4 sm:$0xff]   ;;  %v4114_v38 = vld [vmem:[%s6268_s9 + $0x54] ss:$8 sps:$4 sm:$0xff]  }
 0x21f   :  { %6339 = vst [vmem:[#allocation11_spill] sm:$0xff] %v5404_v34  ;;  %1829 = vmatmul.mubr.bf16.gmra.mrb[68].mxu1 %v1388_v32  ;;  %1942 = vmatmul.mubr.bf16.gmra.mrb[100].mxu0 %v1388_v32  ;;  %6346 = vst [vmem:[#allocation18_spill] sm:$0xff] %v5434_v21 }
 0x220   :  { %6340 = vst [vmem:[#allocation12_spill] sm:$0xff] %v5410_v41  ;;  %v693_v43 = vpop.f32.mrb[10].mxu1  ;;  %v1047_v52 = vpop.f32.mrb[58].mxu0  ;;  %2705 = vmatpush1.bf16.msra.mxu1 %v4103_v30  ;;  %6343 = vst [vmem:[#allocation15_spill] sm:$0xff] %v5425_v13 }
 0x221   :  { %v5416_v0 = vadd.f32 %v5336_v37, %v693_v43  ;;  %v695_v47 = vpop.f32.mrb[11].mxu1  ;;  %v5419_v1 = vadd.f32 %v1047_v52, %v5269_v7  ;;  %v1049_v4 = vpop.f32.mrb[59].mxu0  ;;  %2706 = vmatprep.subr.bf16.mxu1 %v4108_v39  ;;  %v829_v43 = vsub.s32 5, %v5259_v2 }
 0x222   :  { %v5428_v18 = vadd.f32 %v5331_v35, %v695_v47  ;;  %v5431_v19 = vadd.f32 %v1049_v4, %v5272_v10  ;;  %v4112_v47 = vld [vmem:[%s6268_s9 + $0x50] ss:$8 sps:$4 sm:$0xff]  }
 0x223   :  { %6341 = vst [vmem:[#allocation13_spill] sm:$0xff] %v5416_v0  ;;  %6342 = vst [vmem:[#allocation14_spill] sm:$0xff] %v5419_v1  ;;  %v1390_v30 = vpack.c.bf16 %v5416_v0, %v5434_v21 }
 0x224   :  { %6344 = vst [vmem:[#allocation16_spill] sm:$0xff] %v5428_v18  ;;  %6345 = vst [vmem:[#allocation17_spill] sm:$0xff] %v5431_v19  ;;  %v699_v57 = vpop.f32.mrb[12].mxu1  ;;  %v1391_v62 = vpack.c.bf16 %v5428_v18, %v5425_v13  ;;  %v1053_v3 = vpop.f32.mrb[60].mxu0  ;;  %2707 = vmatpush1.bf16.msra.mxu1 %v4106_v48 }
 0x225   :  { %v701_v29 = vpop.f32.mrb[13].mxu1  ;;  %v5444_v31 = vadd.f32 %v1053_v3, %v5269_v7  ;;  %v1055_v32 = vpop.f32.mrb[61].mxu0  ;;  %2708 = vmatprep.subr.bf16.mxu1 %v4111_v49 }
 0x226   :  { %1838 = vmatprep.mubr.bf16.mxu1 %v1391_v62  ;;  %1951 = vmatprep.mubr.bf16.mxu0 %v1391_v62  ;;  %v5451_v39 = vadd.f32 %v1055_v32, %v5272_v10  ;;  %v5464_v32 = vrot.slane %v5266_v50, %v825_v26  ;;  %v5482_v26 = vadd.f32 %v5336_v37, %v699_v57 }
 0x227   :  { %6347 = vst [vmem:[#allocation19_spill] sm:$0xff] %v5444_v31  ;;  %1839 = vmatmul.mubr.bf16.gmra.mrb[72].mxu1 %v1390_v30  ;;  %1952 = vmatmul.mubr.bf16.gmra.mrb[104].mxu0 %v1390_v30  ;;  %v5470_v30 = vadd.f32 %v5331_v35, %v701_v29  ;;  %v4115_v29 = vld [vmem:[%s6268_s9 + $0x60] ss:$8 sps:$4 sm:$0xff]  }
 0x228   :  { %6348 = vst [vmem:[#allocation20_spill] sm:$0xff] %v5451_v39  ;;  %v705_v52 = vpop.f32.mrb[14].mxu1  ;;  %v1059_v48 = vpop.f32.mrb[62].mxu0  ;;  %2709 = vmatpush1.bf16.msra.mxu1 %v4109_v28  ;;  %v4117_v28 = vld [vmem:[%s6268_s9 + $0x64] ss:$8 sps:$4 sm:$0xff]   ;;  %6354 = vst [vmem:[#allocation26_spill] sm:$0xff] %v5482_v26 }
 0x229   :  { %v5458_v4 = vadd.f32 %v5336_v37, %v705_v52  ;;  %v707_v49 = vpop.f32.mrb[15].mxu1  ;;  %v5461_v62 = vadd.f32 %v1059_v48, %v5269_v7  ;;  %v1061_v3 = vpop.f32.mrb[63].mxu0  ;;  %2710 = vmatprep.subr.bf16.mxu1 %v4114_v38  ;;  %6351 = vst [vmem:[#allocation23_spill] sm:$0xff] %v5470_v30  ;;  %v5479_v7 = vrot.slane %v5266_v50, %v829_v43  ;;  %v817_v39 = vsub.s32 2, %v5259_v2 }
 0x22a   :  { %v5473_v58 = vadd.f32 %v5331_v35, %v707_v49  ;;  %v5476_v52 = vadd.f32 %v1061_v3, %v5272_v10 }
 0x22b   :  { %6349 = vst [vmem:[#allocation21_spill] sm:$0xff] %v5458_v4  ;;  %6350 = vst [vmem:[#allocation22_spill] sm:$0xff] %v5461_v62  ;;  %v1392_v10 = vpack.c.bf16 %v5458_v4, %v5482_v26 }
 0x22c   :  { %6352 = vst [vmem:[#allocation24_spill] sm:$0xff] %v5473_v58  ;;  %6353 = vst [vmem:[#allocation25_spill] sm:$0xff] %v5476_v52  ;;  %v711_v38 = vpop.f32.mrb[16].mxu1  ;;  %v1393_v48 = vpack.c.bf16 %v5473_v58, %v5470_v30  ;;  %v1291_v18 = vpop.f32.mrb[64].mxu0  ;;  %2711 = vmatpush1.bf16.msra.mxu1 %v4112_v47 }
 0x22d   :  { %v713_v49 = vpop.f32.mrb[17].mxu1  ;;  %v5492_v43 = vadd.f32 %v1291_v18, %v5464_v32  ;;  %v1293_v3 = vpop.f32.mrb[65].mxu0  ;;  %2712 = vmatprep.subr.bf16.mxu1 %v4117_v28 }
 0x22e   :  { %1848 = vmatprep.mubr.bf16.mxu1 %v1393_v48  ;;  %1961 = vmatprep.mubr.bf16.mxu0 %v1393_v48  ;;  %v5495_v57 = vadd.f32 %v1293_v3, %v5479_v7  ;;  %v5504_v28 = vadd.f32 %v5331_v35, %v713_v49 }
 0x22f   :  { %6355 = vst [vmem:[#allocation27_spill] sm:$0xff] %v5492_v43  ;;  %1849 = vmatmul.mubr.bf16.gmra.mrb[76].mxu1 %v1392_v10  ;;  %1962 = vmatmul.mubr.bf16.gmra.mrb[108].mxu0 %v1392_v10  ;;  %v5513_v10 = vadd.f32 %v5336_v37, %v711_v38 }
 0x230   :  { %6356 = vst [vmem:[#allocation28_spill] sm:$0xff] %v5495_v57  ;;  %v717_v47 = vpop.f32.mrb[18].mxu1  ;;  %v1297_v58 = vpop.f32.mrb[66].mxu0  ;;  %2713 = vmatpush1.bf16.msra.mxu1 %v4115_v29  ;;  %6359 = vst [vmem:[#allocation31_spill] sm:$0xff] %v5504_v28 }
 0x231   :  { %v5498_v30 = vadd.f32 %v5336_v37, %v717_v47  ;;  %v719_v13 = vpop.f32.mrb[19].mxu1  ;;  %v5501_v4 = vadd.f32 %v1297_v58, %v5464_v32  ;;  %v1299_v18 = vpop.f32.mrb[67].mxu0  ;;  %6362 = vst [vmem:[#allocation34_spill] sm:$0xff] %v5513_v10 }
 0x232   :  { %v5507_v48 = vadd.f32 %v5331_v35, %v719_v13  ;;  %v5510_v3 = vadd.f32 %v1299_v18, %v5479_v7 }
 0x233   :  { %6357 = vst [vmem:[#allocation29_spill] sm:$0xff] %v5498_v30  ;;  %6358 = vst [vmem:[#allocation30_spill] sm:$0xff] %v5501_v4  ;;  %v1394_v4 = vpack.c.bf16 %v5498_v30, %v5513_v10 }
 0x234   :  { %6360 = vst [vmem:[#allocation32_spill] sm:$0xff] %v5507_v48  ;;  %6361 = vst [vmem:[#allocation33_spill] sm:$0xff] %v5510_v3  ;;  %v723_v29 = vpop.f32.mrb[20].mxu1  ;;  %v1395_v47 = vpack.c.bf16 %v5507_v48, %v5504_v28  ;;  %v1303_v57 = vpop.f32.mrb[68].mxu0 }
 0x235   :  { %v725_v58 = vpop.f32.mrb[21].mxu1  ;;  %v5520_v49 = vadd.f32 %v1303_v57, %v5464_v32  ;;  %v1305_v13 = vpop.f32.mrb[69].mxu0 }
 0x236   :  { %1858 = vmatprep.mubr.bf16.mxu1 %v1395_v47  ;;  %1971 = vmatprep.mubr.bf16.mxu0 %v1395_v47  ;;  %v5523_v18 = vadd.f32 %v1305_v13, %v5479_v7  ;;  %v5532_v57 = vadd.f32 %v5331_v35, %v725_v58 }
 0x237   :  { %6363 = vst [vmem:[#allocation35_spill] sm:$0xff] %v5520_v49  ;;  %1859 = vmatmul.mubr.bf16.gmra.mrb[80].mxu1 %v1394_v4  ;;  %1972 = vmatmul.mubr.bf16.gmra.mrb[112].mxu0 %v1394_v4  ;;  %v5541_v4 = vadd.f32 %v5336_v37, %v723_v29 }
 0x238   :  { %6364 = vst [vmem:[#allocation36_spill] sm:$0xff] %v5523_v18  ;;  %v729_v38 = vpop.f32.mrb[22].mxu1  ;;  %v1309_v3 = vpop.f32.mrb[70].mxu0  ;;  %6367 = vst [vmem:[#allocation39_spill] sm:$0xff] %v5532_v57 }
 0x239   :  { %v5526_v43 = vadd.f32 %v5336_v37, %v729_v38  ;;  %v731_v48 = vpop.f32.mrb[23].mxu1  ;;  %v5529_v28 = vadd.f32 %v1309_v3, %v5464_v32  ;;  %v1311_v30 = vpop.f32.mrb[71].mxu0  ;;  %6370 = vst [vmem:[#allocation42_spill] sm:$0xff] %v5541_v4 }
 0x23a   :  { %v5535_v47 = vadd.f32 %v5331_v35, %v731_v48  ;;  %v5538_v13 = vadd.f32 %v1311_v30, %v5479_v7 }
 0x23b   :  { %6365 = vst [vmem:[#allocation37_spill] sm:$0xff] %v5526_v43  ;;  %6366 = vst [vmem:[#allocation38_spill] sm:$0xff] %v5529_v28  ;;  %v1396_v28 = vpack.c.bf16 %v5526_v43, %v5541_v4 }
 0x23c   :  { %6368 = vst [vmem:[#allocation40_spill] sm:$0xff] %v5535_v47  ;;  %6369 = vst [vmem:[#allocation41_spill] sm:$0xff] %v5538_v13  ;;  %v735_v18 = vpop.f32.mrb[24].mxu1  ;;  %v1397_v38 = vpack.c.bf16 %v5535_v47, %v5532_v57  ;;  %v1315_v49 = vpop.f32.mrb[72].mxu0 }
 0x23d   :  { %v737_v3 = vpop.f32.mrb[25].mxu1  ;;  %v5548_v58 = vadd.f32 %v1315_v49, %v5464_v32  ;;  %v1317_v48 = vpop.f32.mrb[73].mxu0 }
 0x23e   :  { %1868 = vmatprep.mubr.bf16.mxu1 %v1397_v38  ;;  %1981 = vmatprep.mubr.bf16.mxu0 %v1397_v38  ;;  %v5551_v30 = vadd.f32 %v1317_v48, %v5479_v7  ;;  %v5560_v49 = vadd.f32 %v5331_v35, %v737_v3 }
 0x23f   :  { %6371 = vst [vmem:[#allocation43_spill] sm:$0xff] %v5548_v58  ;;  %1869 = vmatmul.mubr.bf16.gmra.mrb[84].mxu1 %v1396_v28  ;;  %1982 = vmatmul.mubr.bf16.gmra.mrb[116].mxu0 %v1396_v28  ;;  %v5569_v28 = vadd.f32 %v5336_v37, %v735_v18 }
 0x240   :  { %6372 = vst [vmem:[#allocation44_spill] sm:$0xff] %v5551_v30  ;;  %v741_v29 = vpop.f32.mrb[26].mxu1  ;;  %v1321_v13 = vpop.f32.mrb[74].mxu0  ;;  %6375 = vst [vmem:[#allocation47_spill] sm:$0xff] %v5560_v49 }
 0x241   :  { %v5554_v47 = vadd.f32 %v5336_v37, %v741_v29  ;;  %v743_v57 = vpop.f32.mrb[27].mxu1  ;;  %v5557_v10 = vadd.f32 %v1321_v13, %v5464_v32  ;;  %v1323_v43 = vpop.f32.mrb[75].mxu0  ;;  %6378 = vst [vmem:[#allocation50_spill] sm:$0xff] %v5569_v28 }
 0x242   :  { %v5563_v38 = vadd.f32 %v5331_v35, %v743_v57  ;;  %v5566_v48 = vadd.f32 %v1323_v43, %v5479_v7 }
 0x243   :  { %6373 = vst [vmem:[#allocation45_spill] sm:$0xff] %v5554_v47  ;;  %6374 = vst [vmem:[#allocation46_spill] sm:$0xff] %v5557_v10  ;;  %v1398_v10 = vpack.c.bf16 %v5554_v47, %v5569_v28 }
 0x244   :  { %6376 = vst [vmem:[#allocation48_spill] sm:$0xff] %v5563_v38  ;;  %6377 = vst [vmem:[#allocation49_spill] sm:$0xff] %v5566_v48  ;;  %v747_v30 = vpop.f32.mrb[28].mxu1  ;;  %v1399_v29 = vpack.c.bf16 %v5563_v38, %v5560_v49  ;;  %v1327_v58 = vpop.f32.mrb[76].mxu0 }
 0x245   :  { %v749_v13 = vpop.f32.mrb[29].mxu1  ;;  %v5576_v3 = vadd.f32 %v1327_v58, %v5464_v32  ;;  %v1329_v57 = vpop.f32.mrb[77].mxu0 }
 0x246   :  { %1878 = vmatprep.mubr.bf16.mxu1 %v1399_v29  ;;  %1991 = vmatprep.mubr.bf16.mxu0 %v1399_v29  ;;  %v5579_v43 = vadd.f32 %v1329_v57, %v5479_v7  ;;  %v5588_v58 = vadd.f32 %v5331_v35, %v749_v13 }
 0x247   :  { %6379 = vst [vmem:[#allocation51_spill] sm:$0xff] %v5576_v3  ;;  %1879 = vmatmul.mubr.bf16.gmra.mrb[88].mxu1 %v1398_v10  ;;  %1992 = vmatmul.mubr.bf16.gmra.mrb[120].mxu0 %v1398_v10  ;;  %v5597_v10 = vadd.f32 %v5336_v37, %v747_v30 }
 0x248   :  { %6380 = vst [vmem:[#allocation52_spill] sm:$0xff] %v5579_v43  ;;  %v753_v18 = vpop.f32.mrb[30].mxu1  ;;  %v1333_v48 = vpop.f32.mrb[78].mxu0  ;;  %6383 = vst [vmem:[#allocation55_spill] sm:$0xff] %v5588_v58 }
 0x249   :  { %v5582_v38 = vadd.f32 %v5336_v37, %v753_v18  ;;  %v755_v49 = vpop.f32.mrb[31].mxu1  ;;  %v5585_v4 = vadd.f32 %v1333_v48, %v5464_v32  ;;  %v1335_v47 = vpop.f32.mrb[79].mxu0  ;;  %6386 = vst [vmem:[#allocation58_spill] sm:$0xff] %v5597_v10 }
 0x24a   :  { %v5591_v29 = vadd.f32 %v5331_v35, %v755_v49  ;;  %v5594_v57 = vadd.f32 %v1335_v47, %v5479_v7 }
 0x24b   :  { %6381 = vst [vmem:[#allocation53_spill] sm:$0xff] %v5582_v38  ;;  %6382 = vst [vmem:[#allocation54_spill] sm:$0xff] %v5585_v4  ;;  %v1400_v4 = vpack.c.bf16 %v5582_v38, %v5597_v10 }
 0x24c   :  { %6384 = vst [vmem:[#allocation56_spill] sm:$0xff] %v5591_v29  ;;  %6385 = vst [vmem:[#allocation57_spill] sm:$0xff] %v5594_v57  ;;  %v1401_v18 = vpack.c.bf16 %v5591_v29, %v5588_v58  ;;  %v5601_v43 = vpop.f32.mrb[32].mxu1  ;;  %v1339_v48 = vpop.f32.mrb[80].mxu0  ;;  %v6389_v57 = vmov 0.0  }
 0x24d   :  { %v5605_v13 = vpop.f32.mrb[33].mxu1  ;;  %v5608_v35 = vadd.f32 %v1339_v48, %v5464_v32  ;;  %v1341_v49 = vpop.f32.mrb[81].mxu0 }
 0x24e   :  { %1888 = vmatprep.mubr.bf16.mxu1 %v1401_v18  ;;  %2001 = vmatprep.mubr.bf16.mxu0 %v1401_v18  ;;  %v5611_v37 = vadd.f32 %v1341_v49, %v5479_v7 }
 0x24f   :  { %6387 = vst [vmem:[#allocation59_spill] sm:$0xff] %v5608_v35  ;;  %1889 = vmatmul.mubr.bf16.gmra.mrb[92].mxu1 %v1400_v4  ;;  %2002 = vmatmul.mubr.bf16.gmra.mrb[124].mxu0 %v1400_v4 }
 0x250   :  { %6388 = vst [vmem:[#allocation60_spill] sm:$0xff] %v5611_v37  ;;  %v5613_v47 = vpop.f32.mrb[34].mxu1  ;;  %v1345_v30 = vpop.f32.mrb[82].mxu0  ;;  %3071 = vmatprep.mubr.f32.mxu0 %v6389_v57 }
 0x251   :  { %v5616_v3 = vpop.f32.mrb[35].mxu1  ;;  %v5619_v29 = vadd.f32 %v1345_v30, %v5464_v32  ;;  %v1347_v48 = vpop.f32.mrb[83].mxu0 }
 0x252   :  { %v5622_v35 = vadd.f32 %v1347_v48, %v5479_v7 }
 0x253   :  { %6390 = vst [vmem:[#allocation61_spill] sm:$0xff] %v5619_v29 }
 0x254   :  { %6391 = vst [vmem:[#allocation62_spill] sm:$0xff] %v5622_v35  ;;  %v5624_v18 = vpop.f32.mrb[36].mxu1  ;;  %v1351_v49 = vpop.f32.mrb[84].mxu0 }
 0x255   :  { %v5626_v37 = vpop.f32.mrb[37].mxu1  ;;  %v5629_v4 = vadd.f32 %v1351_v49, %v5464_v32  ;;  %v1353_v58 = vpop.f32.mrb[85].mxu0 }
 0x256   :  { %v5632_v57 = vadd.f32 %v1353_v58, %v5479_v7 }
 0x257   :  { %6392 = vst [vmem:[#allocation63_spill] sm:$0xff] %v5629_v4 }
 0x258   :  { %6393 = vst [vmem:[#allocation64_spill] sm:$0xff] %v5632_v57  ;;  %v5634_v38 = vpop.f32.mrb[38].mxu1  ;;  %v1357_v30 = vpop.f32.mrb[86].mxu0 }
 0x259   :  { %v5636_v29 = vpop.f32.mrb[39].mxu1  ;;  %v5639_v48 = vadd.f32 %v1357_v30, %v5464_v32  ;;  %v1359_v35 = vpop.f32.mrb[87].mxu0 }
 0x25a   :  { %v5642_v10 = vadd.f32 %v1359_v35, %v5479_v7 }
 0x25b   :  { %6394 = vst [vmem:[#allocation65_spill] sm:$0xff] %v5639_v48 }
 0x25c   :  { %6395 = vst [vmem:[#allocation66_spill] sm:$0xff] %v5642_v10  ;;  %v5644_v28 = vpop.f32.mrb[40].mxu1  ;;  %v1363_v49 = vpop.f32.mrb[88].mxu0 }
 0x25d   :  { %v5646_v4 = vpop.f32.mrb[41].mxu1  ;;  %v5649_v58 = vadd.f32 %v1363_v49, %v5464_v32  ;;  %v1365_v57 = vpop.f32.mrb[89].mxu0 }
 0x25e   :  { %v5652_v26 = vadd.f32 %v1365_v57, %v5479_v7 }
 0x25f   :  { %6396 = vst [vmem:[#allocation67_spill] sm:$0xff] %v5649_v58 }
 0x260   :  { %6397 = vst [vmem:[#allocation68_spill] sm:$0xff] %v5652_v26  ;;  %v5654_v0 = vpop.f32.mrb[42].mxu1  ;;  %v1369_v30 = vpop.f32.mrb[90].mxu0 }
 0x261   :  { %v5656_v48 = vpop.f32.mrb[43].mxu1  ;;  %v5659_v35 = vadd.f32 %v1369_v30, %v5464_v32  ;;  %v1371_v10 = vpop.f32.mrb[91].mxu0  ;;  %v821_v30 = vsub.s32 3, %v5259_v2 }
 0x262   :  { %v5662_v21 = vadd.f32 %v1371_v10, %v5479_v7 }
 0x263   :  { %6398 = vst [vmem:[#allocation69_spill] sm:$0xff] %v5659_v35  ;;  %v5693_v2 = vrot.slane %v5266_v50, %v821_v30  ;;  %v4123_v30 = vld [vmem:[%s6268_s9 + $0x84] ss:$8 sps:$4 sm:$0xff]  }
 0x264   :  { %6399 = vst [vmem:[#allocation70_spill] sm:$0xff] %v5662_v21  ;;  %v5664_v52 = vpop.f32.mrb[44].mxu1  ;;  %v1375_v49 = vpop.f32.mrb[92].mxu0 }
 0x265   :  { %v5666_v58 = vpop.f32.mrb[45].mxu1  ;;  %v5669_v57 = vadd.f32 %v1375_v49, %v5464_v32  ;;  %v1377_v26 = vpop.f32.mrb[93].mxu0 }
 0x266   :  { %v5672_v62 = vadd.f32 %v1377_v26, %v5479_v7  ;;  %v4120_v26 = vld [vmem:[%s6268_s9 + $0x74] ss:$8 sps:$4 sm:$0xff]  }
 0x267   :  { %6400 = vst [vmem:[#allocation71_spill] sm:$0xff] %v5669_v57  ;;  %v5687_v57 = vrot.slane %v5266_v50, %v817_v39  ;;  %2714 = vmatprep.subr.bf16.mxu1 %v4120_v26 }
 0x268   :  { %6401 = vst [vmem:[#allocation72_spill] sm:$0xff] %v5672_v62  ;;  %v5676_v35 = vpop.f32.mrb[46].mxu1  ;;  %v1381_v10 = vpop.f32.mrb[94].mxu0 }
 0x269   :  { %v5678_v21 = vpop.f32.mrb[47].mxu1  ;;  %v5681_v31 = vadd.f32 %v1381_v10, %v5464_v32  ;;  %v1383_v12 = vpop.f32.mrb[95].mxu0  ;;  %v4118_v32 = vld [vmem:[%s6268_s9 + $0x70] ss:$8 sps:$4 sm:$0xff]  }
 0x26a   :  { %v5684_v49 = vadd.f32 %v1383_v12, %v5479_v7  ;;  %2715 = vmatpush1.bf16.msra.mxu1 %v4118_v32 }
 0x26b   :  { %6402 = vst [vmem:[#allocation73_spill] sm:$0xff] %v5681_v31  ;;  %2716 = vmatprep.subr.bf16.mxu1 %v4123_v30 }
 0x26c   :  { %6403 = vst [vmem:[#allocation74_spill] sm:$0xff] %v5684_v49  ;;  %v1178_v62 = vpop.f32.mrb[48].mxu1 }
 0x26d   :  { %v5699_v10 = vadd.f32 %v1178_v62, %v5687_v57  ;;  %v1180_v12 = vpop.f32.mrb[49].mxu1  ;;  %v4121_v62 = vld [vmem:[%s6268_s9 + $0x80] ss:$8 sps:$4 sm:$0xff]  }
 0x26e   :  { %v5702_v39 = vadd.f32 %v1180_v12, %v5693_v2  ;;  %2717 = vmatpush1.bf16.msra.mxu1 %v4121_v62 }
 0x270   :  { %v1184_v7 = vpop.f32.mrb[50].mxu1 }
 0x271   :  { %v5705_v49 = vadd.f32 %v1184_v7, %v5687_v57  ;;  %v1186_v50 = vpop.f32.mrb[51].mxu1  ;;  %v4126_v7 = vld [vmem:[%s6268_s9 + $0x94] ss:$8 sps:$4 sm:$0xff]  }
 0x272   :  { %v5711_v31 = vadd.f32 %v1186_v50, %v5693_v2  ;;  %v4124_v50 = vld [vmem:[%s6268_s9 + $0x90] ss:$8 sps:$4 sm:$0xff]   ;;  %2718 = vmatprep.subr.bf16.mxu1 %v4126_v7 }
 0x273   :  { %2719 = vmatpush1.bf16.msra.mxu1 %v4124_v50 }
 0x274   :  { %v1190_v26 = vpop.f32.mrb[52].mxu1 }
 0x275   :  { %v5717_v32 = vadd.f32 %v1190_v26, %v5687_v57  ;;  %v1192_v12 = vpop.f32.mrb[53].mxu1 }
 0x276   :  { %v5723_v8 = vadd.f32 %v1192_v12, %v5693_v2 }
 0x278   :  { %6404 = vst [vmem:[#allocation75_spill] sm:$0xff] %v5723_v8  ;;  %v1196_v22 = vpop.f32.mrb[54].mxu1 }
 0x279   :  { %v5729_v30 = vadd.f32 %v1196_v22, %v5687_v57  ;;  %v1198_v62 = vpop.f32.mrb[55].mxu1 }
 0x27a   :  { %v5732_v26 = vadd.f32 %v1198_v62, %v5693_v2 }
 0x27b   :  { %6405 = vst [vmem:[#allocation76_spill] sm:$0xff] %v5729_v30 }
 0x27c   :  { %6406 = vst [vmem:[#allocation77_spill] sm:$0xff] %v5732_v26  ;;  %v1202_v24 = vpop.f32.mrb[56].mxu1 }
 0x27d   :  { %v5735_v19 = vadd.f32 %v1202_v24, %v5687_v57  ;;  %v1204_v12 = vpop.f32.mrb[57].mxu1 }
 0x27e   :  { %v5738_v1 = vadd.f32 %v1204_v12, %v5693_v2  ;;  %v4129_v12 = vld [vmem:[%s6268_s9 + $0xa4] ss:$8 sps:$4 sm:$0xff]  }
 0x27f   :  { %6407 = vst [vmem:[#allocation78_spill] sm:$0xff] %v5735_v19  ;;  %2720 = vmatprep.subr.bf16.mxu1 %v4129_v12  ;;  %v4133_v12 = vld [vmem:[%s6268_s9 + $0xc0] ss:$8 sps:$4 sm:$0xff]  }
 0x280   :  { %6408 = vst [vmem:[#allocation79_spill] sm:$0xff] %v5738_v1  ;;  %v1208_v41 = vpop.f32.mrb[58].mxu1 }
 0x281   :  { %v5741_v7 = vadd.f32 %v1208_v41, %v5687_v57  ;;  %v1210_v50 = vpop.f32.mrb[59].mxu1  ;;  %v4127_v41 = vld [vmem:[%s6268_s9 + $0xa0] ss:$8 sps:$4 sm:$0xff]  }
 0x282   :  { %v5744_v22 = vadd.f32 %v1210_v50, %v5693_v2  ;;  %2721 = vmatpush1.bf16.msra.mxu1 %v4127_v41  ;;  %v4136_v41 = vld [vmem:[%s6268_s9 + $0xd0] ss:$8 sps:$4 sm:$0xff]  }
 0x283   :  { %6409 = vst [vmem:[#allocation80_spill] sm:$0xff] %v5741_v7 }
 0x284   :  { %6410 = vst [vmem:[#allocation81_spill] sm:$0xff] %v5744_v22  ;;  %v1214_v34 = vpop.f32.mrb[60].mxu1 }
 0x285   :  { %v5747_v62 = vadd.f32 %v1214_v34, %v5687_v57  ;;  %v1216_v26 = vpop.f32.mrb[61].mxu1 }
 0x286   :  { %v5750_v24 = vadd.f32 %v1216_v26, %v5693_v2  ;;  %v4132_v26 = vld [vmem:[%s6268_s9 + $0xb4] ss:$8 sps:$4 sm:$0xff]  }
 0x287   :  { %6411 = vst [vmem:[#allocation82_spill] sm:$0xff] %v5747_v62  ;;  %2722 = vmatprep.subr.bf16.mxu1 %v4132_v26  ;;  %v4139_v26 = vld [vmem:[%s6268_s9 + $0xe0] ss:$8 sps:$4 sm:$0xff]  }
 0x288   :  { %6412 = vst [vmem:[#allocation83_spill] sm:$0xff] %v5750_v24  ;;  %v1220_v7 = vpop.f32.mrb[62].mxu1  ;;  %v4130_v24 = vld [vmem:[%s6268_s9 + $0xb0] ss:$8 sps:$4 sm:$0xff]  }
 0x289   :  { %v5759_v50 = vadd.f32 %v1220_v7, %v5687_v57  ;;  %v1222_v22 = vpop.f32.mrb[63].mxu1  ;;  %2723 = vmatpush1.bf16.msra.mxu1 %v4130_v24  ;;  %v4135_v7 = vld [vmem:[%s6268_s9 + $0xc4] ss:$8 sps:$4 sm:$0xff]  }
 0x28a   :  { %v5762_v34 = vadd.f32 %v1222_v22, %v5693_v2  ;;  %2724 = vmatprep.subr.bf16.mxu1 %v4135_v7  ;;  %v4138_v22 = vld [vmem:[%s6268_s9 + $0xd4] ss:$8 sps:$4 sm:$0xff]   ;;  %v4141_v24 = vld [vmem:[%s6268_s9 + $0xe4] ss:$8 sps:$4 sm:$0xff]  }
 0x28b   :  { %6413 = vst [vmem:[#allocation84_spill] sm:$0xff] %v5759_v50  ;;  %v4144_v7 = vld [vmem:[%s6268_s9 + $0xf4] ss:$8 sps:$4 sm:$0xff]  }
 0x28c   :  { %6414 = vst [vmem:[#allocation85_spill] sm:$0xff] %v5762_v34 }
 0x28d   :  { %2725 = vmatpush1.bf16.msra.mxu1 %v4133_v12  ;;  %v4142_v12 = vld [vmem:[%s6268_s9 + $0xf0] ss:$8 sps:$4 sm:$0xff]  }
 0x28e   :  { %2726 = vmatprep.subr.bf16.mxu1 %v4138_v22  ;;  %v1131_v22 = vadd.f32 %v5601_v43, %v5687_v57 }
 0x291   :  { %2727 = vmatpush1.bf16.msra.mxu1 %v4136_v41  ;;  %v1133_v41 = vadd.f32 %v5605_v13, %v5693_v2 }
 0x292   :  { %2728 = vmatprep.subr.bf16.mxu1 %v4141_v24  ;;  %v1137_v24 = vadd.f32 %v5613_v47, %v5687_v57 }
 0x295   :  { %2729 = vmatpush1.bf16.msra.mxu1 %v4139_v26 }
 0x296   :  { %2730 = vmatprep.subr.bf16.mxu1 %v4144_v7  ;;  %v1139_v7 = vadd.f32 %v5616_v3, %v5693_v2 }
 0x299   :  { %2731 = vmatpush1.bf16.msra.mxu1 %v4142_v12 }
 0x2ea   :  { %v1820_v34 = vpop.f32.mrb[64].mxu1  ;;  %v1933_v50 = vpop.f32.mrb[96].mxu0 }
 0x2eb   :  { %v5801_v26 = vadd.f32 %v1820_v34, %v5275_v11  ;;  %v2014_v62 = vadd.f32 %v1933_v50, %v1131_v22  ;;  %v1822_v1 = vpop.f32.mrb[65].mxu1  ;;  %v1935_v19 = vpop.f32.mrb[97].mxu0 }
 0x2ec   :  { %v5806_v12 = vadd.f32 %v1822_v1, %v5278_v14  ;;  %v2015_v43 = vadd.f32 %v1935_v19, %v1133_v41  ;;  %v1824_v20 = vpop.f32.mrb[66].mxu1  ;;  %v1937_v13 = vpop.f32.mrb[98].mxu0  ;;  %v1143_v14 = vadd.f32 %v5624_v18, %v5687_v57  ;;  %v1145_v1 = vadd.f32 %v5626_v37, %v5693_v2 }
 0x2ed   :  { %v3579_v30 = vmul.f32 -1.442695, %v2014_v62  ;;  %v5809_v60 = vadd.f32 %v1824_v20, %v5281_v17  ;;  %v2018_v47 = vadd.f32 %v1937_v13, %v1137_v24  ;;  %v1826_v8 = vpop.f32.mrb[67].mxu1  ;;  %v1939_v11 = vpop.f32.mrb[99].mxu0 }
 0x2ee   :  { %v3580_v34 = vmul.f32 -1.442695, %v2015_v43  ;;  %v5812_v50 = vadd.f32 %v1826_v8, %v5284_v53  ;;  %v2019_v22 = vadd.f32 %v1939_v11, %v1139_v7  ;;  %v1149_v8 = vadd.f32 %v5634_v38, %v5687_v57 }
 0x2ef   :  { %4161 = vpow2.f32 %v3579_v30  ;;  %v3581_v3 = vmul.f32 -1.442695, %v2018_v47  ;;  %v1151_v43 = vadd.f32 %v5636_v29, %v5693_v2 }
 0x2f0   :  { %4163 = vpow2.f32 %v3580_v34  ;;  %v3582_v19 = vmul.f32 -1.442695, %v2019_v22 }
 0x2f1   :  { %4165 = vpow2.f32 %v3581_v3  ;;  %v1157_v3 = vadd.f32 %v5646_v4, %v5693_v2  ;;  %v1161_v4 = vadd.f32 %v5654_v0, %v5687_v57 }
 0x2f2   :  { %v1830_v17 = vpop.f32.mrb[68].mxu1  ;;  %v1943_v20 = vpop.f32.mrb[100].mxu0  ;;  %4167 = vpow2.f32 %v3582_v19 }
 0x2f3   :  { %v5819_v62 = vadd.f32 %v1830_v17, %v5287_v54  ;;  %v2022_v41 = vadd.f32 %v1943_v20, %v1143_v14  ;;  %v1832_v24 = vpop.f32.mrb[69].mxu1  ;;  %v1945_v53 = vpop.f32.mrb[101].mxu0 }
 0x2f4   :  { %v5824_v30 = vadd.f32 %v1832_v24, %v5290_v55  ;;  %v2023_v18 = vadd.f32 %v1945_v53, %v1145_v1  ;;  %v1834_v7 = vpop.f32.mrb[70].mxu1  ;;  %v1947_v37 = vpop.f32.mrb[102].mxu0  ;;  %v1155_v55 = vadd.f32 %v5644_v28, %v5687_v57 }
 0x2f5   :  { %v5829_v13 = vadd.f32 %v1834_v7, %v5293_v56  ;;  %v1836_v54 = vpop.f32.mrb[71].mxu1  ;;  %v1949_v47 = vpop.f32.mrb[103].mxu0  ;;  %v2026_v11 = vadd.f32 %v1947_v37, %v1149_v8  ;;  %v3583_v1 = vmul.f32 -1.442695, %v2022_v41 }
 0x2f6   :  { %v5832_v34 = vadd.f32 %v1836_v54, %v5296_v59  ;;  %v2027_v38 = vadd.f32 %v1949_v47, %v1151_v43 }
 0x2f7   :  { %4169 = vpow2.f32 %v3583_v1  ;;  %v1169_v1 = vadd.f32 %v5666_v58, %v5693_v2 }
 0x2f9   :  { %v4162_v22 = vpop.eup %4161 }
 0x2fa   :  { %v1840_v14 = vpop.f32.mrb[72].mxu1  ;;  %v1953_v29 = vpop.f32.mrb[104].mxu0  ;;  %v2364_v59 = vadd.f32 1.0, %v4162_v22 }
 0x2fb   :  { %v5839_v56 = vadd.f32 %v1840_v14, %v5299_v61  ;;  %v2030_v17 = vadd.f32 %v1953_v29, %v1155_v55  ;;  %v1842_v19 = vpop.f32.mrb[73].mxu1  ;;  %v1955_v20 = vpop.f32.mrb[105].mxu0  ;;  %v1163_v61 = vadd.f32 %v5656_v48, %v5693_v2  ;;  %v1167_v48 = vadd.f32 %v5664_v52, %v5687_v57 }
 0x2fc   :  { %v4164_v24 = vpop.eup %4163  ;;  %v5842_v53 = vadd.f32 %v1842_v19, %v5302_v63  ;;  %v2031_v8 = vadd.f32 %v1955_v20, %v1157_v3  ;;  %v1844_v28 = vpop.f32.mrb[74].mxu1  ;;  %4171 = vrcp.f32 %v2364_v59  ;;  %v3584_v3 = vmul.f32 -1.442695, %v2023_v18 }
 0x2fd   :  { %v1957_v7 = vpop.f32.mrb[106].mxu0  ;;  %v1846_v37 = vpop.f32.mrb[75].mxu1  ;;  %v2365_v41 = vadd.f32 1.0, %v4164_v24  ;;  %v5849_v55 = vadd.f32 %v1844_v28, %v5305_v5  ;;  %v1173_v52 = vadd.f32 %v5676_v35, %v5687_v57  ;;  %v3587_v57 = vmul.f32 -1.442695, %v2030_v17 }
 0x2fe   :  { %v4166_v43 = vpop.eup %4165  ;;  %v1959_v54 = vpop.f32.mrb[107].mxu0  ;;  %v2034_v63 = vadd.f32 %v1957_v7, %v1161_v4  ;;  %v5852_v14 = vadd.f32 %v1846_v37, %v5308_v9  ;;  %v3585_v7 = vmul.f32 -1.442695, %v2026_v11 }
 0x2ff   :  { %v2366_v47 = vadd.f32 1.0, %v4166_v43  ;;  %v4168_v22 = vpop.eup %4167  ;;  %v2035_v0 = vadd.f32 %v1959_v54, %v1163_v61  ;;  %v3586_v61 = vmul.f32 -1.442695, %v2027_v38 }
 0x300   :  { %v2367_v29 = vadd.f32 1.0, %v4168_v22 }
 0x301   :  { %4173 = vrcp.f32 %v2366_v47  ;;  %v4170_v35 = vpop.eup %4169 }
 0x302   :  { %4175 = vrcp.f32 %v2365_v41  ;;  %v1850_v19 = vpop.f32.mrb[76].mxu1  ;;  %v1963_v20 = vpop.f32.mrb[108].mxu0 }
 0x303   :  { %4177 = vrcp.f32 %v2367_v29  ;;  %v5859_v5 = vadd.f32 %v1850_v19, %v5311_v15  ;;  %v1852_v18 = vpop.f32.mrb[77].mxu1  ;;  %v5861_v9 = vadd.f32 %v1963_v20, %v1167_v48  ;;  %v1965_v59 = vpop.f32.mrb[109].mxu0  ;;  %v1175_v15 = vadd.f32 %v5678_v21, %v5693_v2 }
 0x304   :  { %4179 = vpow2.f32 %v3584_v3  ;;  %v5864_v24 = vadd.f32 %v1852_v18, %v5314_v23  ;;  %v1854_v28 = vpop.f32.mrb[78].mxu1  ;;  %v5868_v4 = vadd.f32 %v1965_v59, %v1169_v1  ;;  %v1967_v58 = vpop.f32.mrb[110].mxu0  ;;  %v3588_v21 = vmul.f32 -1.442695, %v2031_v8 }
 0x305   :  { %v1856_v37 = vpop.f32.mrb[79].mxu1  ;;  %v1969_v43 = vpop.f32.mrb[111].mxu0  ;;  %v5873_v41 = vadd.f32 %v1854_v28, %v5317_v25  ;;  %v5875_v23 = vadd.f32 %v1967_v58, %v1173_v52  ;;  %4181 = vpow2.f32 %v3585_v7 }
 0x306   :  { %v5878_v54 = vadd.f32 %v1856_v37, %v5320_v27  ;;  %v5880_v47 = vadd.f32 %v1969_v43, %v1175_v15  ;;  %v4172_v11 = vpop.eup %4171  ;;  %4183 = vpow2.f32 %v3586_v61 }
 0x307   :  { %4185 = vpow2.f32 %v3587_v57 }
 0x308   :  { %4187 = vpow2.f32 %v3588_v21  ;;  %v6418_v21 = vld [vmem:[#allocation75_spill] sm:$0xff] }
 0x30a   :  { %v1860_v22 = vpop.f32.mrb[80].mxu1  ;;  %v1973_v3 = vpop.f32.mrb[112].mxu0 }
 0x30b   :  { %v4174_v29 = vpop.eup %4173  ;;  %v5883_v2 = vadd.f32 %v1860_v22, %v5329_v33  ;;  %v5886_v25 = vadd.f32 %v1973_v3, %v5699_v10  ;;  %v1862_v38 = vpop.f32.mrb[81].mxu1  ;;  %v3589_v33 = vmul.f32 -1.442695, %v2034_v63  ;;  %v2368_v63 = vadd.f32 1.0, %v4170_v35 }
 0x30c   :  { %v1975_v27 = vpop.f32.mrb[113].mxu0  ;;  %v4176_v48 = vpop.eup %4175  ;;  %v5889_v19 = vadd.f32 %v1862_v38, %v5334_v36  ;;  %v2462_v18 = vmul.f32 %v4174_v29, %v5339_v40  ;;  %v2460_v36 = vmul.f32 %v4172_v11, %v5354_v45 }
 0x30d   :  { %v5892_v17 = vadd.f32 %v1975_v27, %v5702_v39  ;;  %v1864_v1 = vpop.f32.mrb[82].mxu1  ;;  %v1977_v20 = vpop.f32.mrb[114].mxu0  ;;  %v3590_v39 = vmul.f32 -1.442695, %v2035_v0  ;;  %4189 = vpow2.f32 %v3589_v33 }
 0x30e   :  { %v4178_v8 = vpop.eup %4177  ;;  %v5896_v59 = vadd.f32 %v1864_v1, %v5342_v42  ;;  %v1866_v10 = vpop.f32.mrb[83].mxu1  ;;  %v5899_v7 = vadd.f32 %v1977_v20, %v5705_v49  ;;  %v2461_v42 = vmul.f32 %v4176_v48, %v5345_v44  ;;  %v2492_v43 = vpack.c.bf16 %v2462_v18, %v2460_v36 }
 0x30f   :  { %v1979_v28 = vpop.f32.mrb[115].mxu0  ;;  %v4180_v52 = vpop.eup %4179  ;;  %v5903_v58 = vadd.f32 %v1866_v10, %v5351_v51  ;;  %v2463_v15 = vmul.f32 %v4178_v8, %v5348_v46  ;;  %4191 = vpow2.f32 %v3590_v39  ;;  %v6419_v8 = vld [vmem:[#allocation6_spill] sm:$0xff]  ;;  %v6421_v10 = vld [vmem:[#allocation76_spill] sm:$0xff]  ;;  %v6424_v39 = vld [vmem:[#allocation77_spill] sm:$0xff] }
 0x310   :  { %v5906_v37 = vadd.f32 %v1979_v28, %v5711_v31  ;;  %v2369_v61 = vadd.f32 1.0, %v4180_v52  ;;  %v4182_v11 = vpop.eup %4181  ;;  %4193 = vrcp.f32 %v2368_v63  ;;  %v6422_v52 = vld [vmem:[#allocation9_spill] sm:$0xff] }
 0x311   :  { %6415 = vst [vmem:[#allocation86_spill] sm:$0xff] %v5903_v58  ;;  %v2493_v49 = vpack.c.bf16 %v2463_v15, %v2461_v42  ;;  %v2370_v3 = vadd.f32 1.0, %v4182_v11  ;;  %v4184_v1 = vpop.eup %4183 }
 0x312   :  { %v1870_v57 = vpop.f32.mrb[84].mxu1  ;;  %v1983_v22 = vpop.f32.mrb[116].mxu0  ;;  %4195 = vrcp.f32 %v2369_v61 }
 0x313   :  { %v5911_v0 = vadd.f32 %v1870_v57, %v5364_v6  ;;  %v5914_v51 = vadd.f32 %v1983_v22, %v5717_v32  ;;  %v1872_v31 = vpop.f32.mrb[85].mxu1  ;;  %v1985_v35 = vpop.f32.mrb[117].mxu0  ;;  %2732 = vmatprep.mubr.bf16.mxu1 %v2493_v49  ;;  %4197 = vrcp.f32 %v2370_v3  ;;  %v2371_v32 = vadd.f32 1.0, %v4184_v1  ;;  %v6425_v57 = vld [vmem:[#allocation11_spill] sm:$0xff]  ;;  %v6427_v3 = vld [vmem:[#allocation78_spill] sm:$0xff] }
 0x314   :  { %v5917_v29 = vadd.f32 %v1872_v31, %v5370_v16  ;;  %v5920_v38 = vadd.f32 %v1985_v35, %v6418_v21  ;;  %v1874_v27 = vpop.f32.mrb[86].mxu1  ;;  %v1987_v48 = vpop.f32.mrb[118].mxu0  ;;  %2733 = vmatmul.mubr.bf16.vlgmr.msra.gmra.mrb[96].mxu1 %v2492_v43  ;;  %v3591_v49 = vmul.f32 -1.442695, %v5861_v9 }
 0x315   :  { %6416 = vst [vmem:[#allocation87_spill] sm:$0xff] %v5911_v0  ;;  %v1876_v6 = vpop.f32.mrb[87].mxu1  ;;  %v1989_v20 = vpop.f32.mrb[119].mxu0  ;;  %v5923_v33 = vadd.f32 %v1874_v27, %v6419_v8  ;;  %v5926_v28 = vadd.f32 %v1987_v48, %v6421_v10  ;;  %4199 = vrcp.f32 %v2371_v32  ;;  %v6428_v27 = vld [vmem:[#allocation12_spill] sm:$0xff]  ;;  %v6446_v0 = vld [vmem:[#allocation83_spill] sm:$0xff] }
 0x316   :  { %6417 = vst [vmem:[#allocation88_spill] sm:$0xff] %v5917_v29  ;;  %v4186_v18 = vpop.eup %4185  ;;  %v5929_v36 = vadd.f32 %v1876_v6, %v6422_v52  ;;  %v5932_v63 = vadd.f32 %v1989_v20, %v6424_v39  ;;  %v6430_v20 = vld [vmem:[#allocation79_spill] sm:$0xff] }
 0x317   :  { %6420 = vst [vmem:[#allocation75_spill] sm:$0xff] %v5923_v33  ;;  %v2372_v16 = vadd.f32 1.0, %v4186_v18  ;;  %v4188_v42 = vpop.eup %4187 }
 0x318   :  { %6423 = vst [vmem:[#allocation6_spill] sm:$0xff] %v5929_v36  ;;  %v2373_v15 = vadd.f32 1.0, %v4188_v42  ;;  %v4190_v61 = vpop.eup %4189  ;;  %v6431_v42 = vld [vmem:[#allocation14_spill] sm:$0xff]  ;;  %v6444_v36 = vld [vmem:[#allocation20_spill] sm:$0xff] }
 0x319   :  { %4201 = vrcp.f32 %v2372_v16  ;;  %v2374_v35 = vadd.f32 1.0, %v4190_v61  ;;  %v4192_v32 = vpop.eup %4191 }
 0x31a   :  { %v1880_v43 = vpop.f32.mrb[88].mxu1  ;;  %v1993_v11 = vpop.f32.mrb[120].mxu0  ;;  %4203 = vrcp.f32 %v2373_v15  ;;  %v2375_v52 = vadd.f32 1.0, %v4192_v32 }
 0x31b   :  { %v5936_v22 = vadd.f32 %v1880_v43, %v6425_v57  ;;  %v1882_v31 = vpop.f32.mrb[89].mxu1  ;;  %v5939_v21 = vadd.f32 %v1993_v11, %v6427_v3  ;;  %v1995_v1 = vpop.f32.mrb[121].mxu0  ;;  %4205 = vrcp.f32 %v2374_v35  ;;  %v3592_v57 = vmul.f32 -1.442695, %v5868_v4  ;;  %v6433_v11 = vld [vmem:[#allocation80_spill] sm:$0xff]  ;;  %v6437_v35 = vld [vmem:[#allocation5_spill] sm:$0xff] }
 0x31c   :  { %v5942_v48 = vadd.f32 %v1882_v31, %v6428_v27  ;;  %v1884_v6 = vpop.f32.mrb[90].mxu1  ;;  %v5945_v18 = vadd.f32 %v1995_v1, %v6430_v20  ;;  %v1997_v9 = vpop.f32.mrb[122].mxu0  ;;  %4207 = vpow2.f32 %v3591_v49  ;;  %v6434_v31 = vld [vmem:[#allocation17_spill] sm:$0xff]  ;;  %v6436_v27 = vld [vmem:[#allocation10_spill] sm:$0xff]  ;;  %v3594_v4 = vmul.f32 -1.442695, %v5880_v47 }
 0x31d   :  { %6426 = vst [vmem:[#allocation76_spill] sm:$0xff] %v5936_v22  ;;  %v1886_v8 = vpop.f32.mrb[91].mxu1  ;;  %v4194_v10 = vpop.eup %4193  ;;  %v5948_v43 = vadd.f32 %v1884_v6, %v6431_v42  ;;  %4209 = vrcp.f32 %v2375_v52  ;;  %v5952_v15 = vadd.f32 %v1997_v9, %v6433_v11  ;;  %v6438_v20 = vld [vmem:[#allocation81_spill] sm:$0xff]  ;;  %v3593_v6 = vmul.f32 -1.442695, %v5875_v23  ;;  %v6440_v11 = vld [vmem:[#allocation8_spill] sm:$0xff] }
 0x31e   :  { %6429 = vst [vmem:[#allocation9_spill] sm:$0xff] %v5942_v48  ;;  %v1999_v16 = vpop.f32.mrb[123].mxu0  ;;  %v4196_v39 = vpop.eup %4195  ;;  %v5955_v3 = vadd.f32 %v1886_v8, %v6434_v31  ;;  %v2464_v1 = vmul.f32 %v4194_v10, %v6436_v27  ;;  %4211 = vpow2.f32 %v3592_v57  ;;  %v6441_v10 = vld [vmem:[#allocation19_spill] sm:$0xff]  ;;  %v3595_v57 = vmul.f32 -1.442695, %v5886_v25 }
 0x31f   :  { %6432 = vst [vmem:[#allocation77_spill] sm:$0xff] %v5948_v43  ;;  %v4198_v61 = vpop.eup %4197  ;;  %v5960_v48 = vadd.f32 %v1999_v16, %v6438_v20  ;;  %v6439_v43 = vld [vmem:[#allocation7_spill] sm:$0xff]  ;;  %v6443_v16 = vld [vmem:[#allocation82_spill] sm:$0xff]  ;;  %4213 = vpow2.f32 %v3593_v6 }
 0x320   :  { %6435 = vst [vmem:[#allocation11_spill] sm:$0xff] %v5955_v3  ;;  %v2466_v32 = vmul.f32 %v4198_v61, %v6437_v35  ;;  %v4200_v49 = vpop.eup %4199  ;;  %v2465_v9 = vmul.f32 %v4196_v39, %v6439_v43  ;;  %4215 = vpow2.f32 %v3594_v4  ;;  %v6454_v4 = vld [vmem:[#allocation15_spill] sm:$0xff] }
 0x321   :  { %v2467_v22 = vmul.f32 %v4200_v49, %v6440_v11  ;;  %4217 = vpow2.f32 %v3595_v57 }
 0x322   :  { %v1890_v42 = vpop.f32.mrb[92].mxu1  ;;  %v2003_v52 = vpop.f32.mrb[124].mxu0  ;;  %v2494_v8 = vpack.c.bf16 %v2466_v32, %v2464_v1 }
 0x323   :  { %v1892_v31 = vpop.f32.mrb[93].mxu1  ;;  %v2005_v3 = vpop.f32.mrb[125].mxu0  ;;  %v5967_v61 = vadd.f32 %v1890_v42, %v6441_v10  ;;  %v5970_v20 = vadd.f32 %v2003_v52, %v6443_v16  ;;  %v2495_v47 = vpack.c.bf16 %v2467_v22, %v2465_v9  ;;  %v6447_v10 = vld [vmem:[#allocation22_spill] sm:$0xff]  ;;  %v6450_v22 = vld [vmem:[#allocation25_spill] sm:$0xff] }
 0x324   :  { %v5973_v23 = vadd.f32 %v1892_v31, %v6444_v36  ;;  %v1894_v33 = vpop.f32.mrb[94].mxu1  ;;  %v2007_v29 = vpop.f32.mrb[126].mxu0  ;;  %v5976_v39 = vadd.f32 %v2005_v3, %v6446_v0  ;;  %v6449_v36 = vld [vmem:[#allocation84_spill] sm:$0xff]  ;;  %v6451_v3 = vld [vmem:[#allocation85_spill] sm:$0xff] }
 0x325   :  { %6442 = vst [vmem:[#allocation78_spill] sm:$0xff] %v5967_v61  ;;  %v1896_v49 = vpop.f32.mrb[95].mxu1  ;;  %v2009_v1 = vpop.f32.mrb[127].mxu0  ;;  %2742 = vmatprep.mubr.bf16.mxu1 %v2495_v47  ;;  %v5980_v52 = vadd.f32 %v1894_v33, %v6447_v10  ;;  %v5983_v31 = vadd.f32 %v2007_v29, %v6449_v36  ;;  %v6453_v61 = vld [vmem:[#allocation13_spill] sm:$0xff]  ;;  %v3597_v33 = vmul.f32 -1.442695, %v5899_v7 }
 0x326   :  { %6445 = vst [vmem:[#allocation12_spill] sm:$0xff] %v5973_v23  ;;  %v4202_v32 = vpop.eup %4201  ;;  %2743 = vmatmul.mubr.bf16.gmra.mrb[100].mxu1 %v2494_v8  ;;  %v5986_v0 = vadd.f32 %v1896_v49, %v6450_v22  ;;  %v5989_v9 = vadd.f32 %v2009_v1, %v6451_v3  ;;  %v6452_v23 = vld [vmem:[#allocation18_spill] sm:$0xff]  ;;  %v6455_v10 = vld [vmem:[#allocation16_spill] sm:$0xff]  ;;  %v3596_v7 = vmul.f32 -1.442695, %v5892_v17 }
 0x327   :  { %v4204_v42 = vpop.eup %4203  ;;  %6448 = vst [vmem:[#allocation79_spill] sm:$0xff] %v5980_v52  ;;  %v2468_v25 = vmul.f32 %v4202_v32, %v6452_v23  ;;  %4219 = vpow2.f32 %v3597_v33 }
 0x328   :  { %v4206_v16 = vpop.eup %4205  ;;  %v2469_v8 = vmul.f32 %v4204_v42, %v6454_v4 }
 0x329   :  { %v4208_v6 = vpop.eup %4207  ;;  %v2470_v47 = vmul.f32 %v4206_v16, %v6453_v61 }
 0x32a   :  { %v4210_v58 = vpop.eup %4209  ;;  %v2376_v52 = vadd.f32 1.0, %v4208_v6 }
 0x32b   :  { %v2471_v29 = vmul.f32 %v4210_v58, %v6455_v10  ;;  %v2496_v36 = vpack.c.bf16 %v2470_v47, %v2468_v25  ;;  %v4212_v22 = vpop.eup %4211  ;;  %v3598_v47 = vmul.f32 -1.442695, %v5906_v37  ;;  %v6459_v37 = vld [vmem:[#allocation24_spill] sm:$0xff] }
 0x32c   :  { %v2377_v1 = vadd.f32 1.0, %v4212_v22  ;;  %v4214_v3 = vpop.eup %4213  ;;  %4221 = vrcp.f32 %v2376_v52  ;;  %v3599_v52 = vmul.f32 -1.442695, %v5914_v51  ;;  %v6457_v22 = vld [vmem:[#allocation21_spill] sm:$0xff]  ;;  %v3602_v51 = vmul.f32 -1.442695, %v5932_v63 }
 0x32d   :  { %v2497_v49 = vpack.c.bf16 %v2471_v29, %v2469_v8  ;;  %v2378_v32 = vadd.f32 1.0, %v4214_v3  ;;  %v4216_v16 = vpop.eup %4215 }
 0x32e   :  { %4223 = vrcp.f32 %v2377_v1  ;;  %v2379_v57 = vadd.f32 1.0, %v4216_v16  ;;  %v4218_v42 = vpop.eup %4217  ;;  %v6458_v16 = vld [vmem:[#allocation23_spill] sm:$0xff] }
 0x32f   :  { %2752 = vmatprep.mubr.bf16.mxu1 %v2497_v49  ;;  %4225 = vrcp.f32 %v2378_v32  ;;  %v2380_v58 = vadd.f32 1.0, %v4218_v42  ;;  %v6456_v49 = vld [vmem:[#allocation26_spill] sm:$0xff]  ;;  %v3601_v32 = vmul.f32 -1.442695, %v5926_v28  ;;  %v6461_v28 = vld [vmem:[#allocation29_spill] sm:$0xff] }
 0x330   :  { %2753 = vmatmul.mubr.bf16.gmra.mrb[104].mxu1 %v2496_v36  ;;  %4227 = vrcp.f32 %v2379_v57  ;;  %v3600_v36 = vmul.f32 -1.442695, %v5920_v38 }
 0x331   :  { %4229 = vpow2.f32 %v3596_v7  ;;  %v4220_v6 = vpop.eup %4219 }
 0x332   :  { %4231 = vrcp.f32 %v2380_v58  ;;  %v2382_v25 = vadd.f32 1.0, %v4220_v6 }
 0x334   :  { %4233 = vrcp.f32 %v2382_v25 }
 0x335   :  { %4235 = vpow2.f32 %v3598_v47 }
 0x336   :  { %v4222_v33 = vpop.eup %4221  ;;  %4237 = vpow2.f32 %v3599_v52 }
 0x337   :  { %v2472_v17 = vmul.f32 %v4222_v33, %v6456_v49  ;;  %4239 = vpow2.f32 %v3600_v36  ;;  %v6460_v33 = vld [vmem:[#allocation34_spill] sm:$0xff] }
 0x338   :  { %v4224_v8 = vpop.eup %4223  ;;  %4241 = vpow2.f32 %v3601_v32  ;;  %v3603_v32 = vmul.f32 -1.442695, %v5939_v21  ;;  %v3606_v21 = vmul.f32 -1.442695, %v5960_v48  ;;  %v3609_v48 = vmul.f32 -1.442695, %v5983_v31 }
 0x339   :  { %v4226_v29 = vpop.eup %4225  ;;  %v2473_v57 = vmul.f32 %v4224_v8, %v6458_v16  ;;  %4243 = vpow2.f32 %v3602_v51 }
 0x33a   :  { %v2474_v1 = vmul.f32 %v4226_v29, %v6457_v22  ;;  %v4228_v3 = vpop.eup %4227 }
 0x33b   :  { %v2475_v7 = vmul.f32 %v4228_v3, %v6459_v37  ;;  %v4230_v58 = vpop.eup %4229 }
 0x33c   :  { %v2498_v42 = vpack.c.bf16 %v2474_v1, %v2472_v17  ;;  %v4232_v25 = vpop.eup %4231  ;;  %v2381_v38 = vadd.f32 1.0, %v4230_v58 }
 0x33d   :  { %v2499_v6 = vpack.c.bf16 %v2475_v7, %v2473_v57  ;;  %v2476_v52 = vmul.f32 %v4232_v25, %v6460_v33 }
 0x33e   :  { %v4234_v47 = vpop.eup %4233  ;;  %4245 = vrcp.f32 %v2381_v38 }
 0x33f   :  { %2762 = vmatprep.mubr.bf16.mxu1 %v2499_v6  ;;  %v2478_v29 = vmul.f32 %v4234_v47, %v6461_v28  ;;  %v4236_v8 = vpop.eup %4235  ;;  %v3605_v47 = vmul.f32 -1.442695, %v5952_v15  ;;  %v6464_v15 = vld [vmem:[#allocation42_spill] sm:$0xff] }
 0x340   :  { %2763 = vmatmul.mubr.bf16.gmra.mrb[108].mxu1 %v2498_v42  ;;  %v2383_v3 = vadd.f32 1.0, %v4236_v8  ;;  %v4238_v1 = vpop.eup %4237  ;;  %v3604_v42 = vmul.f32 -1.442695, %v5945_v18  ;;  %v6463_v8 = vld [vmem:[#allocation32_spill] sm:$0xff]  ;;  %v3607_v18 = vmul.f32 -1.442695, %v5970_v20 }
 0x341   :  { %v2500_v17 = vpack.c.bf16 %v2478_v29, %v2476_v52  ;;  %v2384_v36 = vadd.f32 1.0, %v4238_v1  ;;  %v4240_v63 = vpop.eup %4239  ;;  %v6462_v52 = vld [vmem:[#allocation31_spill] sm:$0xff]  ;;  %v6467_v20 = vld [vmem:[#allocation40_spill] sm:$0xff] }
 0x342   :  { %4247 = vrcp.f32 %v2383_v3  ;;  %v2385_v57 = vadd.f32 1.0, %v4240_v63  ;;  %v4242_v7 = vpop.eup %4241 }
 0x343   :  { %4249 = vrcp.f32 %v2384_v36  ;;  %v2386_v58 = vadd.f32 1.0, %v4242_v7  ;;  %v4244_v51 = vpop.eup %4243  ;;  %v3608_v7 = vmul.f32 -1.442695, %v5976_v39 }
 0x344   :  { %4251 = vrcp.f32 %v2385_v57  ;;  %v2387_v6 = vadd.f32 1.0, %v4244_v51  ;;  %v6465_v51 = vld [vmem:[#allocation37_spill] sm:$0xff] }
 0x345   :  { %4253 = vrcp.f32 %v2386_v58 }
 0x346   :  { %4255 = vpow2.f32 %v3603_v32 }
 0x347   :  { %4257 = vrcp.f32 %v2387_v6 }
 0x348   :  { %v4246_v25 = vpop.eup %4245  ;;  %4259 = vpow2.f32 %v3604_v42 }
 0x349   :  { %v2477_v29 = vmul.f32 %v4246_v25, %v6462_v52  ;;  %4261 = vpow2.f32 %v3605_v47 }
 0x34a   :  { %4263 = vpow2.f32 %v3606_v21  ;;  %v3610_v21 = vmul.f32 -1.442695, %v5989_v9 }
 0x34b   :  { %4265 = vpow2.f32 %v3607_v18 }
 0x34c   :  { %v4248_v38 = vpop.eup %4247  ;;  %4267 = vpow2.f32 %v3608_v7 }
 0x34d   :  { %v2479_v3 = vmul.f32 %v4248_v38, %v6463_v8  ;;  %v4250_v36 = vpop.eup %4249  ;;  %v6466_v38 = vld [vmem:[#allocation39_spill] sm:$0xff]  ;;  %4269 = vpow2.f32 %v3609_v48 }
 0x34e   :  { %v4252_v63 = vpop.eup %4251  ;;  %v2480_v58 = vmul.f32 %v4250_v36, %v6464_v15  ;;  %4271 = vpow2.f32 %v3610_v21 }
 0x34f   :  { %v2501_v1 = vpack.c.bf16 %v2479_v3, %v2477_v29  ;;  %v4254_v57 = vpop.eup %4253  ;;  %v2481_v47 = vmul.f32 %v4252_v63, %v6466_v38 }
 0x350   :  { %v4256_v32 = vpop.eup %4255  ;;  %v2482_v42 = vmul.f32 %v4254_v57, %v6465_v51 }
 0x351   :  { %2772 = vmatprep.mubr.bf16.mxu1 %v2501_v1  ;;  %v4258_v6 = vpop.eup %4257  ;;  %v2388_v39 = vadd.f32 1.0, %v4256_v32 }
 0x352   :  { %2773 = vmatmul.mubr.bf16.gmra.mrb[112].mxu1 %v2500_v17  ;;  %v4260_v25 = vpop.eup %4259  ;;  %v2483_v29 = vmul.f32 %v4258_v6, %v6467_v20  ;;  %v2502_v3 = vpack.c.bf16 %v2482_v42, %v2480_v58  ;;  %v6473_v20 = vld [vmem:[#allocation53_spill] sm:$0xff] }
 0x353   :  { %v2389_v1 = vadd.f32 1.0, %v4260_v25  ;;  %v4262_v36 = vpop.eup %4261  ;;  %4273 = vrcp.f32 %v2388_v39  ;;  %v6469_v39 = vld [vmem:[#allocation45_spill] sm:$0xff] }
 0x354   :  { %v2503_v17 = vpack.c.bf16 %v2483_v29, %v2481_v47  ;;  %v2390_v18 = vadd.f32 1.0, %v4262_v36  ;;  %v4264_v31 = vpop.eup %4263  ;;  %v6470_v36 = vld [vmem:[#allocation47_spill] sm:$0xff] }
 0x355   :  { %4275 = vrcp.f32 %v2389_v1  ;;  %v2391_v63 = vadd.f32 1.0, %v4264_v31  ;;  %v4266_v57 = vpop.eup %4265  ;;  %v6471_v31 = vld [vmem:[#allocation48_spill] sm:$0xff] }
 0x356   :  { %2782 = vmatprep.mubr.bf16.mxu1 %v2503_v17  ;;  %4277 = vrcp.f32 %v2390_v18  ;;  %v2392_v58 = vadd.f32 1.0, %v4266_v57  ;;  %v4268_v7 = vpop.eup %4267 }
 0x357   :  { %4279 = vrcp.f32 %v2391_v63  ;;  %v2393_v42 = vadd.f32 1.0, %v4268_v7  ;;  %v4270_v9 = vpop.eup %4269 }
 0x358   :  { %4281 = vrcp.f32 %v2392_v58  ;;  %v2394_v32 = vadd.f32 1.0, %v4270_v9  ;;  %v4272_v6 = vpop.eup %4271 }
 0x359   :  { %4283 = vrcp.f32 %v2393_v42  ;;  %v2395_v25 = vadd.f32 1.0, %v4272_v6 }
 0x35a   :  { %2783 = vmatmul.mubr.bf16.gmra.mrb[116].mxu1 %v2502_v3  ;;  %4285 = vrcp.f32 %v2394_v32  ;;  %v6468_v3 = vld [vmem:[#allocation50_spill] sm:$0xff] }
 0x35b   :  { %4287 = vrcp.f32 %v2395_v25  ;;  %v6472_v32 = vld [vmem:[#allocation58_spill] sm:$0xff] }
 0x35d   :  { %v4274_v48 = vpop.eup %4273 }
 0x35e   :  { %v2484_v21 = vmul.f32 %v4274_v48, %v6468_v3  ;;  %v6474_v48 = vld [vmem:[#allocation55_spill] sm:$0xff] }
 0x35f   :  { %v4276_v47 = vpop.eup %4275 }
 0x360   :  { %v4278_v29 = vpop.eup %4277  ;;  %v2485_v18 = vmul.f32 %v4276_v47, %v6470_v36 }
 0x361   :  { %v2486_v17 = vmul.f32 %v4278_v29, %v6469_v39  ;;  %v4280_v1 = vpop.eup %4279  ;;  %v6475_v29 = vld [vmem:[#allocation56_spill] sm:$0xff] }
 0x362   :  { %v2487_v63 = vmul.f32 %v4280_v1, %v6471_v31  ;;  %v4282_v7 = vpop.eup %4281  ;;  %v3549_v1 = vmul.f32 -1.442695, %v5809_v60 }
 0x363   :  { %v2504_v57 = vpack.c.bf16 %v2486_v17, %v2484_v21  ;;  %v4284_v9 = vpop.eup %4283  ;;  %v2488_v6 = vmul.f32 %v4282_v7, %v6472_v32  ;;  %v3547_v21 = vmul.f32 -1.442695, %v5801_v26  ;;  %v3548_v17 = vmul.f32 -1.442695, %v5806_v12 }
 0x364   :  { %v2505_v58 = vpack.c.bf16 %v2487_v63, %v2485_v18  ;;  %v4286_v42 = vpop.eup %4285  ;;  %v2489_v3 = vmul.f32 %v4284_v9, %v6474_v48  ;;  %v3550_v18 = vmul.f32 -1.442695, %v5812_v50  ;;  %v3554_v7 = vmul.f32 -1.442695, %v5832_v34 }
 0x365   :  { %v2490_v25 = vmul.f32 %v4286_v42, %v6473_v20  ;;  %v4288_v51 = vpop.eup %4287  ;;  %4289 = vpow2.f32 %v3547_v21  ;;  %v6476_v42 = vld [vmem:[#allocation27_spill] sm:$0xff]  ;;  %v6477_v21 = vld [vmem:[#allocation28_spill] sm:$0xff] }
 0x366   :  { %2792 = vmatprep.mubr.bf16.mxu1 %v2505_v58  ;;  %v2491_v39 = vmul.f32 %v4288_v51, %v6475_v29  ;;  %4291 = vpow2.f32 %v3548_v17 }
 0x367   :  { %2793 = vmatmul.mubr.bf16.gmra.mrb[120].mxu1 %v2504_v57  ;;  %v2506_v38 = vpack.c.bf16 %v2490_v25, %v2488_v6  ;;  %4293 = vpow2.f32 %v3549_v1  ;;  %v3551_v57 = vmul.f32 -1.442695, %v5819_v62  ;;  %v3555_v62 = vmul.f32 -1.442695, %v5839_v56  ;;  %v6478_v56 = vld [vmem:[#allocation30_spill] sm:$0xff] }
 0x368   :  { %v2507_v47 = vpack.c.bf16 %v2491_v39, %v2489_v3  ;;  %4295 = vpow2.f32 %v3550_v18  ;;  %v3552_v3 = vmul.f32 -1.442695, %v5824_v30  ;;  %v3556_v30 = vmul.f32 -1.442695, %v5842_v53 }
 0x369   :  { %4297 = vpow2.f32 %v3551_v57 }
 0x36a   :  { %2802 = vmatprep.mubr.bf16.mxu1 %v2507_v47  ;;  %4299 = vpow2.f32 %v3552_v3  ;;  %v3558_v3 = vmul.f32 -1.442695, %v5852_v14  ;;  %v3559_v14 = vmul.f32 -1.442695, %v5859_v5 }
 0x36f   :  { %2803 = vmatmul.mubr.bf16.gmra.mrb[124].mxu1 %v2506_v38  ;;  %v4290_v63 = vpop.eup %4289  ;;  %v3553_v38 = vmul.f32 -1.442695, %v5829_v13  ;;  %v3557_v13 = vmul.f32 -1.442695, %v5849_v55  ;;  %v6479_v55 = vld [vmem:[#allocation33_spill] sm:$0xff] }
 0x370   :  { %v4292_v51 = vpop.eup %4291  ;;  %v2172_v58 = vadd.f32 1.0, %v4290_v63 }
 0x371   :  { %v4294_v39 = vpop.eup %4293  ;;  %v2173_v12 = vadd.f32 1.0, %v4292_v51  ;;  %4301 = vpow2.f32 %v3553_v38 }
 0x372   :  { %v4296_v26 = vpop.eup %4295  ;;  %v2174_v60 = vadd.f32 1.0, %v4294_v39  ;;  %4303 = vrcp.f32 %v2172_v58 }
 0x373   :  { %v2175_v50 = vadd.f32 1.0, %v4296_v26  ;;  %4305 = vrcp.f32 %v2173_v12  ;;  %v4298_v47 = vpop.eup %4297 }
 0x374   :  { %4307 = vrcp.f32 %v2174_v60  ;;  %v4300_v1 = vpop.eup %4299  ;;  %v2176_v26 = vadd.f32 1.0, %v4298_v47 }
 0x375   :  { %4309 = vrcp.f32 %v2175_v50  ;;  %v2177_v12 = vadd.f32 1.0, %v4300_v1 }
 0x376   :  { %4311 = vpow2.f32 %v3554_v7 }
 0x377   :  { %4313 = vpow2.f32 %v3555_v62 }
 0x378   :  { %4315 = vpow2.f32 %v3556_v30 }
 0x379   :  { %4317 = vpow2.f32 %v3557_v13 }
 0x37b   :  { %v4302_v63 = vpop.eup %4301 }
 0x37c   :  { %v4304_v51 = vpop.eup %4303  ;;  %v2178_v50 = vadd.f32 1.0, %v4302_v63 }
 0x37d   :  { %v4306_v39 = vpop.eup %4305  ;;  %v2909_v13 = vsub.f32 1.0, %v4304_v51 }
 0x37e   :  { %v4308_v38 = vpop.eup %4307 }
 0x37f   :  { %v4310_v58 = vpop.eup %4309 }
 0x380   :  { %v4312_v60 = vpop.eup %4311 }
 0x381   :  { %v4314_v7 = vpop.eup %4313  ;;  %v2179_v47 = vadd.f32 1.0, %v4312_v60 }
 0x382   :  { %v4316_v62 = vpop.eup %4315 }
 0x383   :  { %v4318_v30 = vpop.eup %4317 }
 0x3e7   :  { %v2734_v9 = vpop.f32.mrb[96].mxu1 }
 0x3e8   :  { %v2813_v6 = vadd.f32 %v2734_v9, %v6476_v42  ;;  %v2736_v25 = vpop.f32.mrb[97].mxu1  ;;  %v2878_v42 = vmul.f32 %v4306_v39, %v5345_v44  ;;  %v2182_v44 = vadd.f32 1.0, %v4318_v30 }
 0x3e9   :  { %v2814_v34 = vadd.f32 %v2736_v25, %v6477_v21  ;;  %v2738_v17 = vpop.f32.mrb[98].mxu1  ;;  %v2877_v21 = vmul.f32 %v4304_v51, %v5354_v45 }
 0x3ea   :  { %4319 = vtanh.f32 %v2813_v6  ;;  %v2815_v18 = vadd.f32 %v2738_v17, %v6478_v56  ;;  %v2740_v53 = vpop.f32.mrb[99].mxu1  ;;  %v2910_v6 = vsub.f32 1.0, %v4306_v39  ;;  %v2180_v56 = vadd.f32 1.0, %v4314_v7 }
 0x3eb   :  { %4321 = vtanh.f32 %v2814_v34  ;;  %v2816_v57 = vadd.f32 %v2740_v53, %v6479_v55  ;;  %v2911_v34 = vsub.f32 1.0, %v4308_v38  ;;  %v2912_v53 = vsub.f32 1.0, %v4310_v58 }
 0x3ec   :  { %4323 = vtanh.f32 %v2815_v18  ;;  %v2880_v18 = vmul.f32 %v4310_v58, %v5348_v46  ;;  %v6480_v46 = vld [vmem:[#allocation35_spill] sm:$0xff] }
 0x3ed   :  { %4325 = vtanh.f32 %v2816_v57  ;;  %v2181_v57 = vadd.f32 1.0, %v4316_v62 }
 0x3ee   :  { %4327 = vpow2.f32 %v3558_v3  ;;  %v2879_v3 = vmul.f32 %v4308_v38, %v5339_v40  ;;  %v6481_v40 = vld [vmem:[#allocation36_spill] sm:$0xff] }
 0x3ef   :  { %4329 = vrcp.f32 %v2176_v26 }
 0x3f0   :  { %4331 = vrcp.f32 %v2177_v12 }
 0x3f1   :  { %4333 = vrcp.f32 %v2178_v50 }
 0x3f2   :  { %4335 = vpow2.f32 %v3559_v14 }
 0x3f3   :  { %4337 = vrcp.f32 %v2179_v47 }
 0x3f4   :  { %v4320_v9 = vpop.eup %4319  ;;  %4339 = vrcp.f32 %v2180_v56  ;;  %v3561_v56 = vmul.f32 -1.442695, %v5873_v41 }
 0x3f5   :  { %v4322_v25 = vpop.eup %4321  ;;  %v2941_v17 = vmul.f32 %v4320_v9, %v2909_v13  ;;  %4341 = vrcp.f32 %v2181_v57  ;;  %v6484_v57 = vld [vmem:[#allocation43_spill] sm:$0xff] }
 0x3f6   :  { %v4324_v1 = vpop.eup %4323  ;;  %v2942_v63 = vmul.f32 %v4322_v25, %v2910_v6  ;;  %4343 = vrcp.f32 %v2182_v44 }
 0x3f7   :  { %v4326_v55 = vpop.eup %4325  ;;  %v2943_v5 = vmul.f32 %v4324_v1, %v2911_v34  ;;  %v2973_v26 = vadd.f32 %v2941_v17, %v2877_v21  ;;  %v3560_v34 = vmul.f32 -1.442695, %v5864_v24  ;;  %v6483_v17 = vld [vmem:[#allocation41_spill] sm:$0xff] }
 0x3f8   :  { %v2944_v39 = vmul.f32 %v4326_v55, %v2912_v53  ;;  %v2974_v12 = vadd.f32 %v2942_v63, %v2878_v42  ;;  %v4328_v51 = vpop.eup %4327  ;;  %v6482_v42 = vld [vmem:[#allocation38_spill] sm:$0xff] }
 0x3f9   :  { %v2975_v45 = vadd.f32 %v2943_v5, %v2879_v3  ;;  %v2744_v60 = vpop.f32.mrb[100].mxu1  ;;  %v4330_v62 = vpop.eup %4329  ;;  %v2183_v6 = vadd.f32 1.0, %v4328_v51 }
 0x3fa   :  { %v2976_v50 = vadd.f32 %v2944_v39, %v2880_v18  ;;  %v2817_v58 = vadd.f32 %v2744_v60, %v6480_v46  ;;  %v2746_v7 = vpop.f32.mrb[101].mxu1  ;;  %v4332_v14 = vpop.eup %4331  ;;  %v3562_v18 = vmul.f32 -1.442695, %v5878_v54  ;;  %v6487_v60 = vld [vmem:[#allocation49_spill] sm:$0xff]  ;;  %v2913_v46 = vsub.f32 1.0, %v4330_v62 }
 0x3fb   :  { %v3898_v13 = vpack.c.bf16 %v2975_v45, %v2973_v26  ;;  %v2818_v38 = vadd.f32 %v2746_v7, %v6481_v40  ;;  %v2748_v9 = vpop.f32.mrb[102].mxu1  ;;  %v4334_v21 = vpop.eup %4333  ;;  %v6485_v26 = vld [vmem:[#allocation44_spill] sm:$0xff]  ;;  %v2914_v7 = vsub.f32 1.0, %v4332_v14  ;;  %v2881_v40 = vmul.f32 %v4330_v62, %v6436_v27 }
 0x3fc   :  { %v3896_v30 = vpack.c.bf16 %v2976_v50, %v2974_v12  ;;  %4345 = vtanh.f32 %v2817_v58  ;;  %v2819_v25 = vadd.f32 %v2748_v9, %v6482_v42  ;;  %v2750_v47 = vpop.f32.mrb[103].mxu1  ;;  %v4336_v53 = vpop.eup %4335  ;;  %v6486_v12 = vld [vmem:[#allocation46_spill] sm:$0xff]  ;;  %v2882_v42 = vmul.f32 %v4332_v14, %v6439_v43 }
 0x3fd   :  { %4347 = vtanh.f32 %v2818_v38  ;;  %v2820_v1 = vadd.f32 %v2750_v47, %v6483_v17  ;;  %v4338_v55 = vpop.eup %4337  ;;  %v2915_v38 = vsub.f32 1.0, %v4334_v21  ;;  %v3563_v17 = vmul.f32 -1.442695, %v5883_v2 }
 0x3fe   :  { %3897 = vmatprep.subr.bf16.mxu0 %v3896_v30  ;;  %4349 = vtanh.f32 %v2819_v25  ;;  %v4340_v5 = vpop.eup %4339  ;;  %v2916_v25 = vsub.f32 1.0, %v4338_v55  ;;  %v2884_v27 = vmul.f32 %v4338_v55, %v6440_v11 }
 0x3ff   :  { %3899 = vmatpush1.bf16.msra.mxu0 %v3898_v13  ;;  %4351 = vtanh.f32 %v2820_v1  ;;  %v4342_v41 = vpop.eup %4341  ;;  %v2883_v1 = vmul.f32 %v4334_v21, %v6437_v35  ;;  %v2917_v35 = vsub.f32 1.0, %v4340_v5  ;;  %v2885_v55 = vmul.f32 %v4340_v5, %v6452_v23 }
 0x400   :  { %4353 = vrcp.f32 %v2183_v6  ;;  %v4344_v51 = vpop.eup %4343  ;;  %v2184_v6 = vadd.f32 1.0, %v4336_v53  ;;  %v3565_v53 = vmul.f32 -1.442695, %v5896_v59 }
 0x401   :  { %4355 = vpow2.f32 %v3560_v34 }
 0x402   :  { %4357 = vpow2.f32 %v3561_v56 }
 0x403   :  { %v2754_v63 = vpop.f32.mrb[104].mxu1  ;;  %4359 = vpow2.f32 %v3562_v18 }
 0x404   :  { %v2821_v3 = vadd.f32 %v2754_v63, %v6484_v57  ;;  %v2756_v24 = vpop.f32.mrb[105].mxu1  ;;  %v3564_v57 = vmul.f32 -1.442695, %v5889_v19 }
 0x405   :  { %v2822_v44 = vadd.f32 %v2756_v24, %v6485_v26  ;;  %v2758_v39 = vpop.f32.mrb[106].mxu1 }
 0x406   :  { %4361 = vtanh.f32 %v2821_v3  ;;  %v2823_v45 = vadd.f32 %v2758_v39, %v6486_v12  ;;  %v2760_v54 = vpop.f32.mrb[107].mxu1  ;;  %v4346_v58 = vpop.eup %4345  ;;  %v6488_v39 = vld [vmem:[#allocation86_spill] sm:$0xff] }
 0x407   :  { %4363 = vtanh.f32 %v2822_v44  ;;  %v2824_v50 = vadd.f32 %v2760_v54, %v6487_v60  ;;  %v4348_v13 = vpop.eup %4347  ;;  %v2945_v9 = vmul.f32 %v4346_v58, %v2913_v46  ;;  %v3566_v12 = vmul.f32 -1.442695, %v6488_v39 }
 0x408   :  { %4365 = vtanh.f32 %v2823_v45  ;;  %v4350_v30 = vpop.eup %4349  ;;  %v2946_v47 = vmul.f32 %v4348_v13, %v2914_v7  ;;  %v2918_v45 = vsub.f32 1.0, %v4342_v41  ;;  %v2919_v54 = vsub.f32 1.0, %v4344_v51 }
 0x409   :  { %4367 = vtanh.f32 %v2824_v50  ;;  %v4352_v34 = vpop.eup %4351  ;;  %v2947_v56 = vmul.f32 %v4350_v30, %v2915_v38  ;;  %v2977_v18 = vadd.f32 %v2945_v9, %v2881_v40  ;;  %v2886_v46 = vmul.f32 %v4342_v41, %v6454_v4  ;;  %v6490_v4 = vld [vmem:[#allocation88_spill] sm:$0xff] }
 0x40a   :  { %v4354_v63 = vpop.eup %4353  ;;  %v2948_v62 = vmul.f32 %v4352_v34, %v2916_v25  ;;  %v2978_v3 = vadd.f32 %v2946_v47, %v2882_v42  ;;  %4369 = vrcp.f32 %v2184_v6  ;;  %v2887_v38 = vmul.f32 %v4344_v51, %v6453_v61  ;;  %v6489_v25 = vld [vmem:[#allocation87_spill] sm:$0xff] }
 0x40b   :  { %v4356_v24 = vpop.eup %4355  ;;  %v2979_v43 = vadd.f32 %v2947_v56, %v2883_v1  ;;  %4371 = vpow2.f32 %v3563_v17  ;;  %v2920_v58 = vsub.f32 1.0, %v4354_v63  ;;  %v2888_v42 = vmul.f32 %v4354_v63, %v6455_v10 }
 0x40c   :  { %v4358_v14 = vpop.eup %4357  ;;  %v2980_v26 = vadd.f32 %v2948_v62, %v2884_v27  ;;  %4373 = vpow2.f32 %v3564_v57  ;;  %v2185_v50 = vadd.f32 1.0, %v4356_v24  ;;  %v3567_v47 = vmul.f32 -1.442695, %v6489_v25  ;;  %v6491_v57 = vld [vmem:[#allocation51_spill] sm:$0xff]  ;;  %v6492_v62 = vld [vmem:[#allocation52_spill] sm:$0xff] }
 0x40d   :  { %v4360_v44 = vpop.eup %4359  ;;  %v3902_v2 = vpack.c.bf16 %v2979_v43, %v2977_v18  ;;  %4375 = vpow2.f32 %v3565_v53  ;;  %v2186_v40 = vadd.f32 1.0, %v4358_v14  ;;  %v3568_v41 = vmul.f32 -1.442695, %v6490_v4  ;;  %v6493_v43 = vld [vmem:[#allocation54_spill] sm:$0xff] }
 0x40e   :  { %v3900_v19 = vpack.c.bf16 %v2980_v26, %v2978_v3  ;;  %v2187_v6 = vadd.f32 1.0, %v4360_v44  ;;  %4377 = vpow2.f32 %v3566_v12  ;;  %v6494_v44 = vld [vmem:[#allocation57_spill] sm:$0xff] }
 0x40f   :  { %4379 = vrcp.f32 %v2185_v50 }
 0x410   :  { %v4362_v21 = vpop.eup %4361  ;;  %3901 = vmatprep.subr.bf16.mxu0 %v3900_v19  ;;  %4381 = vrcp.f32 %v2186_v40  ;;  %v6496_v19 = vld [vmem:[#allocation6_spill] sm:$0xff]  ;;  %v6498_v40 = vld [vmem:[#allocation9_spill] sm:$0xff] }
 0x411   :  { %v4364_v11 = vpop.eup %4363  ;;  %v2949_v59 = vmul.f32 %v4362_v21, %v2917_v35  ;;  %3903 = vmatpush1.bf16.msra.mxu0 %v3902_v2  ;;  %4383 = vrcp.f32 %v2187_v6  ;;  %v6495_v21 = vld [vmem:[#allocation75_spill] sm:$0xff] }
 0x412   :  { %v4366_v60 = vpop.eup %4365  ;;  %v2950_v7 = vmul.f32 %v4364_v11, %v2918_v45  ;;  %4385 = vpow2.f32 %v3567_v47  ;;  %v3569_v39 = vmul.f32 -1.442695, %v6495_v21  ;;  %v3570_v45 = vmul.f32 -1.442695, %v6496_v19  ;;  %v6502_v19 = vld [vmem:[#allocation62_spill] sm:$0xff] }
 0x413   :  { %v4368_v13 = vpop.eup %4367  ;;  %v2951_v9 = vmul.f32 %v4366_v60, %v2919_v54  ;;  %v2981_v30 = vadd.f32 %v2949_v59, %v2885_v55  ;;  %v2764_v61 = vpop.f32.mrb[108].mxu1  ;;  %4387 = vpow2.f32 %v3568_v41 }
 0x414   :  { %v2952_v23 = vmul.f32 %v4368_v13, %v2920_v58  ;;  %v2982_v5 = vadd.f32 %v2950_v7, %v2886_v46  ;;  %v4370_v56 = vpop.eup %4369  ;;  %v2825_v10 = vadd.f32 %v2764_v61, %v6491_v57  ;;  %v2766_v63 = vpop.f32.mrb[109].mxu1  ;;  %v6497_v7 = vld [vmem:[#allocation76_spill] sm:$0xff] }
 0x415   :  { %v2983_v34 = vadd.f32 %v2951_v9, %v2887_v38  ;;  %v4372_v18 = vpop.eup %4371  ;;  %v2826_v3 = vadd.f32 %v2766_v63, %v6492_v62  ;;  %v2768_v24 = vpop.f32.mrb[110].mxu1  ;;  %v2921_v50 = vsub.f32 1.0, %v4370_v56  ;;  %v3571_v13 = vmul.f32 -1.442695, %v6497_v7 }
 0x416   :  { %v2984_v17 = vadd.f32 %v2952_v23, %v2888_v42  ;;  %v4374_v27 = vpop.eup %4373  ;;  %4389 = vtanh.f32 %v2825_v10  ;;  %v2827_v14 = vadd.f32 %v2768_v24, %v6493_v43  ;;  %v2770_v26 = vpop.f32.mrb[111].mxu1  ;;  %v2188_v60 = vadd.f32 1.0, %v4372_v18 }
 0x417   :  { %v3906_v1 = vpack.c.bf16 %v2983_v34, %v2981_v30  ;;  %v4376_v53 = vpop.eup %4375  ;;  %4391 = vtanh.f32 %v2826_v3  ;;  %v2828_v2 = vadd.f32 %v2770_v26, %v6494_v44  ;;  %v2189_v58 = vadd.f32 1.0, %v4374_v27 }
 0x418   :  { %v3904_v51 = vpack.c.bf16 %v2984_v17, %v2982_v5  ;;  %4393 = vtanh.f32 %v2827_v14  ;;  %v4378_v35 = vpop.eup %4377  ;;  %v3572_v38 = vmul.f32 -1.442695, %v6498_v40  ;;  %v2190_v6 = vadd.f32 1.0, %v4376_v53  ;;  %v6499_v53 = vld [vmem:[#allocation59_spill] sm:$0xff] }
 0x419   :  { %4395 = vtanh.f32 %v2828_v2  ;;  %v4380_v12 = vpop.eup %4379  ;;  %v2889_v42 = vmul.f32 %v4370_v56, %v6456_v49  ;;  %v2191_v47 = vadd.f32 1.0, %v4378_v35  ;;  %v6501_v35 = vld [vmem:[#allocation61_spill] sm:$0xff]  ;;  %v6505_v40 = vld [vmem:[#allocation63_spill] sm:$0xff] }
 0x41a   :  { %3905 = vmatprep.subr.bf16.mxu0 %v3904_v51  ;;  %v4382_v11 = vpop.eup %4381  ;;  %4397 = vpow2.f32 %v3569_v39  ;;  %v2922_v9 = vsub.f32 1.0, %v4380_v12  ;;  %v2890_v34 = vmul.f32 %v4380_v12, %v6458_v16 }
 0x41b   :  { %3907 = vmatpush1.bf16.msra.mxu0 %v3906_v1  ;;  %v4384_v55 = vpop.eup %4383  ;;  %4399 = vpow2.f32 %v3570_v45  ;;  %v2923_v23 = vsub.f32 1.0, %v4382_v11  ;;  %v2891_v1 = vmul.f32 %v4382_v11, %v6457_v22 }
 0x41c   :  { %v4386_v54 = vpop.eup %4385  ;;  %v2924_v4 = vsub.f32 1.0, %v4384_v55  ;;  %4401 = vrcp.f32 %v2188_v60  ;;  %v2892_v18 = vmul.f32 %v4384_v55, %v6459_v37  ;;  %v6500_v37 = vld [vmem:[#allocation60_spill] sm:$0xff]  ;;  %v6503_v55 = vld [vmem:[#allocation77_spill] sm:$0xff]  ;;  %v6504_v60 = vld [vmem:[#allocation11_spill] sm:$0xff] }
 0x41d   :  { %v4388_v59 = vpop.eup %4387  ;;  %4403 = vrcp.f32 %v2189_v58  ;;  %v2192_v49 = vadd.f32 1.0, %v4386_v54  ;;  %v3573_v54 = vmul.f32 -1.442695, %v6503_v55 }
 0x41e   :  { %4405 = vrcp.f32 %v2190_v6  ;;  %v2193_v63 = vadd.f32 1.0, %v4388_v59  ;;  %v6506_v6 = vld [vmem:[#allocation64_spill] sm:$0xff] }
 0x41f   :  { %4407 = vrcp.f32 %v2191_v47 }
 0x420   :  { %v4390_v46 = vpop.eup %4389  ;;  %4409 = vpow2.f32 %v3571_v13 }
 0x421   :  { %v4392_v30 = vpop.eup %4391  ;;  %v2953_v5 = vmul.f32 %v4390_v46, %v2921_v50  ;;  %4411 = vpow2.f32 %v3572_v38  ;;  %v3574_v50 = vmul.f32 -1.442695, %v6504_v60 }
 0x422   :  { %v4394_v25 = vpop.eup %4393  ;;  %v2954_v41 = vmul.f32 %v4392_v30, %v2922_v9  ;;  %4413 = vrcp.f32 %v2192_v49 }
 0x423   :  { %v4396_v17 = vpop.eup %4395  ;;  %v2955_v61 = vmul.f32 %v4394_v25, %v2923_v23  ;;  %v2985_v51 = vadd.f32 %v2953_v5, %v2889_v42  ;;  %4415 = vrcp.f32 %v2193_v63  ;;  %v6507_v25 = vld [vmem:[#allocation65_spill] sm:$0xff]  ;;  %v6509_v63 = vld [vmem:[#allocation78_spill] sm:$0xff] }
 0x424   :  { %v2956_v57 = vmul.f32 %v4396_v17, %v2924_v4  ;;  %v2986_v10 = vadd.f32 %v2954_v41, %v2890_v34  ;;  %v4398_v62 = vpop.eup %4397  ;;  %v6508_v41 = vld [vmem:[#allocation66_spill] sm:$0xff] }
 0x425   :  { %v2987_v56 = vadd.f32 %v2955_v61, %v2891_v1  ;;  %v2774_v3 = vpop.f32.mrb[112].mxu1  ;;  %v4400_v22 = vpop.eup %4399  ;;  %v2194_v2 = vadd.f32 1.0, %v4398_v62 }
 0x426   :  { %v2988_v27 = vadd.f32 %v2956_v57, %v2892_v18  ;;  %v2829_v43 = vadd.f32 %v2774_v3, %v6499_v53  ;;  %v2776_v14 = vpop.f32.mrb[113].mxu1  ;;  %v2195_v12 = vadd.f32 1.0, %v4400_v22  ;;  %v4402_v11 = vpop.eup %4401  ;;  %v6510_v22 = vld [vmem:[#allocation12_spill] sm:$0xff] }
 0x427   :  { %v3910_v16 = vpack.c.bf16 %v2987_v56, %v2985_v51  ;;  %v2830_v26 = vadd.f32 %v2776_v14, %v6500_v37  ;;  %v2778_v44 = vpop.f32.mrb[114].mxu1  ;;  %v4404_v59 = vpop.eup %4403  ;;  %v2925_v1 = vsub.f32 1.0, %v4402_v11  ;;  %v2893_v57 = vmul.f32 %v4402_v11, %v6460_v33 }
 0x428   :  { %v3908_v24 = vpack.c.bf16 %v2988_v27, %v2986_v10  ;;  %4417 = vtanh.f32 %v2829_v43  ;;  %v2831_v21 = vadd.f32 %v2778_v44, %v6501_v35  ;;  %v2780_v39 = vpop.f32.mrb[115].mxu1  ;;  %v4406_v46 = vpop.eup %4405  ;;  %v2926_v51 = vsub.f32 1.0, %v4404_v59  ;;  %v6511_v44 = vld [vmem:[#allocation79_spill] sm:$0xff] }
 0x429   :  { %4419 = vtanh.f32 %v2830_v26  ;;  %v2832_v45 = vadd.f32 %v2780_v39, %v6502_v19  ;;  %v4408_v58 = vpop.eup %4407  ;;  %v2927_v10 = vsub.f32 1.0, %v4406_v46  ;;  %v3575_v27 = vmul.f32 -1.442695, %v6509_v63  ;;  %v6515_v63 = vld [vmem:[#allocation67_spill] sm:$0xff] }
 0x42a   :  { %3909 = vmatprep.subr.bf16.mxu0 %v3908_v24  ;;  %4421 = vtanh.f32 %v2831_v21  ;;  %v6094_v13 = vpop.eup %4409  ;;  %v2928_v62 = vsub.f32 1.0, %v4408_v58  ;;  %v3576_v53 = vmul.f32 -1.442695, %v6510_v22  ;;  %v2895_v43 = vmul.f32 %v4406_v46, %v6461_v28 }
 0x42b   :  { %3911 = vmatpush1.bf16.msra.mxu0 %v3910_v16  ;;  %4423 = vtanh.f32 %v2832_v45  ;;  %v6097_v30 = vpop.eup %4411  ;;  %v2894_v16 = vmul.f32 %v4404_v59, %v6462_v52  ;;  %v2896_v33 = vmul.f32 %v4408_v58, %v6463_v8 }
 0x42c   :  { %4425 = vrcp.f32 %v2194_v2  ;;  %v4414_v5 = vpop.eup %4413  ;;  %v3577_v2 = vmul.f32 -1.442695, %v6511_v44  ;;  %v6518_v44 = vld [vmem:[#allocation70_spill] sm:$0xff] }
 0x42d   :  { %4427 = vrcp.f32 %v2195_v12  ;;  %v2784_v7 = vpop.f32.mrb[116].mxu1  ;;  %v4416_v4 = vpop.eup %4415  ;;  %v3578_v12 = vmul.f32 -1.442695, %v5986_v0  ;;  %v2929_v28 = vsub.f32 1.0, %v4414_v5  ;;  %v2897_v8 = vmul.f32 %v4414_v5, %v6464_v15  ;;  %v6512_v0 = vld [vmem:[#allocation39_spill] sm:$0xff] }
 0x42e   :  { %4429 = vpow2.f32 %v3573_v54  ;;  %v2833_v38 = vadd.f32 %v2784_v7, %v6505_v40  ;;  %v2786_v9 = vpop.f32.mrb[117].mxu1  ;;  %v2930_v60 = vsub.f32 1.0, %v4416_v4  ;;  %v2898_v40 = vmul.f32 %v4416_v4, %v6512_v0 }
 0x42f   :  { %4431 = vpow2.f32 %v3574_v50  ;;  %v2834_v42 = vadd.f32 %v2786_v9, %v6506_v6  ;;  %v2788_v23 = vpop.f32.mrb[118].mxu1 }
 0x430   :  { %4433 = vtanh.f32 %v2833_v38  ;;  %v2835_v47 = vadd.f32 %v2788_v23, %v6507_v25  ;;  %v2790_v34 = vpop.f32.mrb[119].mxu1  ;;  %v6513_v23 = vld [vmem:[#allocation37_spill] sm:$0xff] }
 0x431   :  { %4435 = vtanh.f32 %v2834_v42  ;;  %v2836_v17 = vadd.f32 %v2790_v34, %v6508_v41  ;;  %v2196_v42 = vadd.f32 1.0, %v6094_v13  ;;  %v2197_v41 = vadd.f32 1.0, %v6097_v30 }
 0x432   :  { %v4418_v61 = vpop.eup %4417  ;;  %4437 = vtanh.f32 %v2835_v47 }
 0x433   :  { %v4420_v18 = vpop.eup %4419  ;;  %4439 = vtanh.f32 %v2836_v17  ;;  %v2957_v49 = vmul.f32 %v4418_v61, %v2925_v1  ;;  %v6514_v17 = vld [vmem:[#allocation40_spill] sm:$0xff] }
 0x434   :  { %v4422_v56 = vpop.eup %4421  ;;  %v2958_v3 = vmul.f32 %v4420_v18, %v2926_v51  ;;  %4441 = vpow2.f32 %v3575_v27 }
 0x435   :  { %v4424_v24 = vpop.eup %4423  ;;  %v2959_v14 = vmul.f32 %v4422_v56, %v2927_v10  ;;  %v2989_v37 = vadd.f32 %v2957_v49, %v2893_v57  ;;  %4443 = vpow2.f32 %v3576_v53 }
 0x436   :  { %v4426_v26 = vpop.eup %4425  ;;  %v2960_v35 = vmul.f32 %v4424_v24, %v2928_v62  ;;  %v2990_v21 = vadd.f32 %v2958_v3, %v2894_v16  ;;  %4445 = vpow2.f32 %v3577_v2  ;;  %v6516_v62 = vld [vmem:[#allocation68_spill] sm:$0xff] }
 0x437   :  { %v4428_v39 = vpop.eup %4427  ;;  %v2991_v52 = vadd.f32 %v2959_v14, %v2895_v43  ;;  %4447 = vpow2.f32 %v3578_v12  ;;  %v2931_v46 = vsub.f32 1.0, %v4426_v26  ;;  %v2899_v25 = vmul.f32 %v4426_v26, %v6513_v23  ;;  %v6517_v43 = vld [vmem:[#allocation69_spill] sm:$0xff]  ;;  %v6519_v12 = vld [vmem:[#allocation71_spill] sm:$0xff] }
 0x438   :  { %v4430_v19 = vpop.eup %4429  ;;  %v2992_v45 = vadd.f32 %v2960_v35, %v2896_v33  ;;  %v2932_v38 = vsub.f32 1.0, %v4428_v39  ;;  %v2900_v15 = vmul.f32 %v4428_v39, %v6514_v17  ;;  %4449 = vrcp.f32 %v2196_v42 }
 0x439   :  { %v4432_v11 = vpop.eup %4431  ;;  %v3914_v55 = vpack.c.bf16 %v2991_v52, %v2989_v37  ;;  %v2198_v61 = vadd.f32 1.0, %v4430_v19  ;;  %4451 = vrcp.f32 %v2197_v41 }
 0x43a   :  { %v4434_v54 = vpop.eup %4433  ;;  %v3912_v59 = vpack.c.bf16 %v2992_v45, %v2990_v21  ;;  %v2199_v18 = vadd.f32 1.0, %v4432_v11  ;;  %v2794_v13 = vpop.f32.mrb[120].mxu1  ;;  %v6520_v11 = vld [vmem:[#allocation72_spill] sm:$0xff] }
 0x43b   :  { %v4436_v50 = vpop.eup %4435  ;;  %v2961_v58 = vmul.f32 %v4434_v54, %v2929_v28  ;;  %4453 = vrcp.f32 %v2198_v61  ;;  %v2837_v27 = vadd.f32 %v2794_v13, %v6515_v63  ;;  %v2796_v16 = vpop.f32.mrb[121].mxu1 }
 0x43c   :  { %v4438_v7 = vpop.eup %4437  ;;  %3913 = vmatprep.subr.bf16.mxu0 %v3912_v59  ;;  %v2962_v9 = vmul.f32 %v4436_v50, %v2930_v60  ;;  %4455 = vrcp.f32 %v2199_v18  ;;  %v2838_v3 = vadd.f32 %v2796_v16, %v6516_v62  ;;  %v2798_v24 = vpop.f32.mrb[122].mxu1  ;;  %v6521_v59 = vld [vmem:[#allocation73_spill] sm:$0xff] }
 0x43d   :  { %v4440_v6 = vpop.eup %4439  ;;  %3915 = vmatpush1.bf16.msra.mxu0 %v3914_v55  ;;  %v2963_v47 = vmul.f32 %v4438_v7, %v2931_v46  ;;  %v2993_v34 = vadd.f32 %v2961_v58, %v2897_v8  ;;  %4457 = vtanh.f32 %v2837_v27  ;;  %v2839_v14 = vadd.f32 %v2798_v24, %v6517_v43  ;;  %v2800_v37 = vpop.f32.mrb[123].mxu1  ;;  %v6522_v46 = vld [vmem:[#allocation74_spill] sm:$0xff] }
 0x43e   :  { %v2964_v5 = vmul.f32 %v4440_v6, %v2932_v38  ;;  %v2994_v1 = vadd.f32 %v2962_v9, %v2898_v40  ;;  %v4442_v10 = vpop.eup %4441  ;;  %4459 = vtanh.f32 %v2838_v3  ;;  %v2840_v2 = vadd.f32 %v2800_v37, %v6518_v44  ;;  %v6523_v9 = vld [vmem:[#allocation50_spill] sm:$0xff] }
 0x43f   :  { %v2995_v51 = vadd.f32 %v2963_v47, %v2899_v25  ;;  %v4444_v56 = vpop.eup %4443  ;;  %v2200_v53 = vadd.f32 1.0, %v4442_v10  ;;  %4461 = vtanh.f32 %v2839_v14 }
 0x440   :  { %v2996_v4 = vadd.f32 %v2964_v5, %v2900_v15  ;;  %v4446_v30 = vpop.eup %4445  ;;  %v2201_v26 = vadd.f32 1.0, %v4444_v56  ;;  %4463 = vtanh.f32 %v2840_v2  ;;  %v6524_v15 = vld [vmem:[#allocation45_spill] sm:$0xff] }
 0x441   :  { %v3918_v57 = vpack.c.bf16 %v2995_v51, %v2993_v34  ;;  %v4448_v22 = vpop.eup %4447  ;;  %v2202_v33 = vadd.f32 1.0, %v4446_v30  ;;  %4465 = vrcp.f32 %v2200_v53 }
 0x442   :  { %v3916_v49 = vpack.c.bf16 %v2996_v4, %v2994_v1  ;;  %v2203_v35 = vadd.f32 1.0, %v4448_v22  ;;  %4467 = vrcp.f32 %v2201_v26  ;;  %v2804_v21 = vpop.f32.mrb[124].mxu1  ;;  %v4450_v39 = vpop.eup %4449 }
 0x443   :  { %4469 = vrcp.f32 %v2202_v33  ;;  %v2841_v52 = vadd.f32 %v2804_v21, %v6519_v12  ;;  %v2806_v19 = vpop.f32.mrb[125].mxu1  ;;  %v4452_v45 = vpop.eup %4451  ;;  %v2933_v7 = vsub.f32 1.0, %v4450_v39  ;;  %v2901_v6 = vmul.f32 %v4450_v39, %v6523_v9  ;;  %v4160_v9 = vld [vmem:[%s6269_s10 + $0x38] sm:$0xff]  }
 0x444   :  { %3917 = vmatprep.subr.bf16.mxu0 %v3916_v49  ;;  %4471 = vrcp.f32 %v2203_v35  ;;  %v2842_v55 = vadd.f32 %v2806_v19, %v6520_v11  ;;  %v2808_v28 = vpop.f32.mrb[126].mxu1  ;;  %v2934_v40 = vsub.f32 1.0, %v4452_v45  ;;  %v2902_v47 = vmul.f32 %v4452_v45, %v6470_v36  ;;  %v4147_v45 = vld [vmem:[%s6269_s10 + $0x48] sm:$0xff]  }
 0x445   :  { %3919 = vmatpush1.bf16.msra.mxu0 %v3918_v57  ;;  %v4454_v54 = vpop.eup %4453  ;;  %4473 = vtanh.f32 %v2841_v52  ;;  %v2843_v60 = vadd.f32 %v2808_v28, %v6521_v59  ;;  %v2810_v50 = vpop.f32.mrb[127].mxu1  ;;  %v6525_v11 = vmov 0.0   ;;  %v4148_v28 = vld [vmem:[%s6269_s10 + $0x8] sm:$0xff]   ;;  %v4150_v59 = vld [vmem:[%s6269_s10 + $0x10] sm:$0xff]  }
 0x446   :  { %v4456_v8 = vpop.eup %4455  ;;  %4475 = vtanh.f32 %v2842_v55  ;;  %v2844_v58 = vadd.f32 %v2810_v50, %v6522_v46  ;;  %v2935_v42 = vsub.f32 1.0, %v4454_v54  ;;  %v2903_v5 = vmul.f32 %v4454_v54, %v6524_v15  ;;  %v3006_v55 = vld [vmem:[%s6261_s2 + $0x8] sm:$0xff]  ;;  %v4149_v54 = vld [vmem:[%s6269_s10 + $0x50] sm:$0xff]   ;;  %v4152_v50 = vld [vmem:[%s6269_s10 + $0x18] sm:$0xff]  }
 0x447   :  { %v4458_v0 = vpop.eup %4457  ;;  %4477 = vtanh.f32 %v2843_v60  ;;  %v2936_v34 = vsub.f32 1.0, %v4456_v8  ;;  %v2904_v18 = vmul.f32 %v4456_v8, %v6471_v31  ;;  %v4151_v60 = vld [vmem:[%s6269_s10 + $0x58] sm:$0xff]   ;;  %v4153_v8 = vld [vmem:[%s6269_s10 + $0x60] sm:$0xff]  }
 0x448   :  { %v4460_v38 = vpop.eup %4459  ;;  %4479 = vtanh.f32 %v2844_v58  ;;  %v2965_v23 = vmul.f32 %v4458_v0, %v2933_v7  ;;  %v4154_v46 = vld [vmem:[%s6269_s10 + $0x20] sm:$0xff]   ;;  %v4155_v58 = vld [vmem:[%s6269_s10 + $0x68] sm:$0xff]   ;;  %v4157_v0 = vld [vmem:[%s6269_s10 + $0x70] sm:$0xff]  }
 0x449   :  { %v4462_v25 = vpop.eup %4461  ;;  %v2966_v41 = vmul.f32 %v4460_v38, %v2934_v40  ;;  %v4156_v7 = vld [vmem:[%s6269_s10 + $0x28] sm:$0xff]   ;;  %v4158_v40 = vld [vmem:[%s6269_s10 + $0x30] sm:$0xff]   ;;  %v4159_v38 = vld [vmem:[%s6269_s10 + $0x78] sm:$0xff]  }
 0x44a   :  { %v4464_v17 = vpop.eup %4463  ;;  %v2967_v1 = vmul.f32 %v4462_v25, %v2935_v42  ;;  %v2997_v61 = vadd.f32 %v2965_v23, %v2901_v6  ;;  %v3272_v6 = vld [vmem:[%s6271_s12] sm:$0xff]  ;;  %v3273_v42 = vld [vmem:[%s6271_s12 + $0x8] sm:$0xff]  ;;  %v3274_v23 = vld [vmem:[%s6271_s12 + $0x10] sm:$0xff] }
 0x44b   :  { %v4466_v51 = vpop.eup %4465  ;;  %v2968_v4 = vmul.f32 %v4464_v17, %v2936_v34  ;;  %v2998_v57 = vadd.f32 %v2966_v41, %v2902_v47  ;;  %v3928_v25 = vpack.c.bf16 %v3273_v42, %v3272_v6  ;;  %v3275_v47 = vld [vmem:[%s6271_s12 + $0x18] sm:$0xff]  ;;  %v3276_v41 = vld [vmem:[%s6271_s12 + $0x20] sm:$0xff]  ;;  %v3277_v17 = vld [vmem:[%s6271_s12 + $0x28] sm:$0xff] }
 0x44c   :  { %v4468_v10 = vpop.eup %4467  ;;  %v2999_v13 = vadd.f32 %v2967_v1, %v2903_v5  ;;  %v2937_v16 = vsub.f32 1.0, %v4466_v51  ;;  %v2905_v24 = vmul.f32 %v4466_v51, %v6472_v32  ;;  %v3932_v34 = vpack.c.bf16 %v3275_v47, %v3274_v23  ;;  %v3278_v5 = vld [vmem:[%s6271_s12 + $0x30] sm:$0xff]  ;;  %v3279_v1 = vld [vmem:[%s6271_s12 + $0x38] sm:$0xff]  ;;  %v3280_v51 = vld [vmem:[%s6271_s12 + $0x40] sm:$0xff] }
 0x44d   :  { %v4470_v49 = vpop.eup %4469  ;;  %v3000_v56 = vadd.f32 %v2968_v4, %v2904_v18  ;;  %v2938_v62 = vsub.f32 1.0, %v4468_v10  ;;  %v2906_v31 = vmul.f32 %v4468_v10, %v6474_v48  ;;  %v4145_v48 = vld [vmem:[%s6269_s10 + $0x40] sm:$0xff]   ;;  %3929 = vmatprep.subr.bf16.mxu1 %v3928_v25  ;;  %v3936_v15 = vpack.c.bf16 %v3277_v17, %v3276_v41  ;;  %v3281_v18 = vld [vmem:[%s6271_s12 + $0x48] sm:$0xff]  ;;  %v3283_v10 = vld [vmem:[%s6271_s12 + $0x58] sm:$0xff] }
 0x44e   :  { %v4472_v63 = vpop.eup %4471  ;;  %v3922_v27 = vpack.c.bf16 %v2999_v13, %v2997_v61  ;;  %v2939_v22 = vsub.f32 1.0, %v4470_v49  ;;  %v2907_v44 = vmul.f32 %v4470_v49, %v6473_v20  ;;  %v3005_v20 = vld [vmem:[%s6261_s2] sm:$0xff]  ;;  %3931 = vmatpush3.bf16.msra.mxu1 %v3928_v25  ;;  %v3940_v61 = vpack.c.bf16 %v3279_v1, %v3278_v5 }
 0x44f   :  { %v4474_v36 = vpop.eup %4473  ;;  %v3920_v30 = vpack.c.bf16 %v3000_v56, %v2998_v57  ;;  %v2940_v14 = vsub.f32 1.0, %v4472_v63  ;;  %v2908_v35 = vmul.f32 %v4472_v63, %v6475_v29  ;;  %v4146_v29 = vld [vmem:[%s6269_s10] sm:$0xff]   ;;  %3933 = vmatprep.subr.bf16.mxu1 %v3932_v34  ;;  %v3944_v4 = vpack.c.bf16 %v3281_v18, %v3280_v51  ;;  %v3282_v57 = vld [vmem:[%s6271_s12 + $0x50] sm:$0xff]  ;;  %v3285_v56 = vld [vmem:[%s6271_s12 + $0x68] sm:$0xff] }
 0x450   :  { %v4476_v3 = vpop.eup %4475  ;;  %v2969_v53 = vmul.f32 %v4474_v36, %v2937_v16  ;;  %v3948_v13 = vpack.c.bf16 %v3283_v10, %v3282_v57  ;;  %v3284_v49 = vld [vmem:[%s6271_s12 + $0x60] sm:$0xff] }
 0x451   :  { %v4478_v43 = vpop.eup %4477  ;;  %3921 = vmatprep.subr.bf16.mxu0 %v3920_v30  ;;  %v2970_v37 = vmul.f32 %v4476_v3, %v2938_v62  ;;  %v3952_v63 = vpack.c.bf16 %v3285_v56, %v3284_v49 }
 0x452   :  { %v4480_v26 = vpop.eup %4479  ;;  %3923 = vmatpush1.bf16.msra.mxu0 %v3922_v27  ;;  %v2971_v2 = vmul.f32 %v4478_v43, %v2939_v22  ;;  %v3001_v33 = vadd.f32 %v2969_v53, %v2905_v24  ;;  %3935 = vmatpush3.bf16.msra.mxu1 %v3932_v34 }
 0x453   :  { %v2972_v21 = vmul.f32 %v4480_v26, %v2940_v14  ;;  %v3002_v39 = vadd.f32 %v2970_v37, %v2906_v31  ;;  %3937 = vmatprep.subr.bf16.mxu1 %v3936_v15  ;;  %v3286_v31 = vld [vmem:[%s6271_s12 + $0x70] sm:$0xff]  ;;  %v3287_v14 = vld [vmem:[%s6271_s12 + $0x78] sm:$0xff]  ;;  %s4506_s12 = smov [#allocation2]  }
 0x454   :  { %v3003_v12 = vadd.f32 %v2971_v2, %v2907_v44  ;;  %v3956_v37 = vpack.c.bf16 %v3287_v14, %v3286_v31  ;;  %v3643_v44 = vld [vmem:[%s6270_s11] ss:$0 sm:$0xff]  ;;  %s3380_s10 = sshll.u32 %s4506_s12, 4  ;;  %s3381_s10 = int_to_ptr.vmem [resolvable:$true] %s3380_s10 }
 0x455   :  { %v3004_v32 = vadd.f32 %v2972_v21, %v2908_v35  ;;  %s4481_s6 = scalar_lea.vmem %s3381_s10, 512  ;;  %p4486_p1 = scmp.lt.s32.totalorder %s3381_s10, %s3381_s10 }
 0x456   :  { %v3926_v52 = vpack.c.bf16 %v3003_v12, %v3001_v33  ;;  %3939 = vmatpush3.bf16.msra.mxu1 %v3936_v15  ;;  %p4482_p0 = scmp.ne.s32.totalorder %s3381_s10, %s4481_s6  ;;  %p4487_p2 = scmp.lt.s32.totalorder %s4481_s6, %s4481_s6 }
 0x457   :  { %v3924_v19 = vpack.c.bf16 %v3004_v32, %v3002_v39  ;;  %3941 = vmatprep.subr.bf16.mxu1 %v3940_v61 }
 0x458   :  { %p4488_p3 = por %p4487_p2, %p4486_p1 }
 0x459   :  { %3925 = vmatprep.subr.bf16.mxu0 %v3924_v19 }
 0x45a   :  { %3927 = vmatpush1.bf16.msra.mxu0 %v3926_v52  ;;  %3943 = vmatpush3.bf16.msra.mxu1 %v3940_v61  ;;  %p4489_p4 = pnand %p4488_p3, %p4482_p0 }
 0x45b   :  { %3709 = vmatprep.subr.bf16.mxu0 %v4145_v48  ;;  %3945 = vmatprep.subr.bf16.mxu1 %v3944_v4 }
 0x45d   :  { %3072 = vmatmul.mubr.f32.vlgmr.msra.gmra.mrb[128].mxu0 %v3005_v20 }
 0x45e   :  { %3077 = vmatprep.mubr.f32.mxu0 %v6525_v11  ;;  %3710 = vmatpush3.bf16.msra.mxu0 %v4146_v29 }
 0x45f   :  { %3711 = vmatprep.subr.bf16.mxu0 %v4147_v45  ;;  %3947 = vmatpush3.bf16.msra.mxu1 %v3944_v4 }
 0x460   :  { %3949 = vmatprep.subr.bf16.mxu1 %v3948_v13 }
 0x461   :  { %3078 = vmatmul.mubr.f32.gmra.mrb[130].mxu0 %v3006_v55 }
 0x462   :  { %3712 = vmatpush3.bf16.msra.mxu0 %v4148_v28 }
 0x463   :  { %3713 = vmatprep.subr.bf16.mxu0 %v4149_v54  ;;  %3951 = vmatpush3.bf16.msra.mxu1 %v3948_v13 }
 0x464   :  { %3953 = vmatprep.subr.bf16.mxu1 %v3952_v63 }
 0x466   :  { %3714 = vmatpush3.bf16.msra.mxu0 %v4150_v59 }
 0x467   :  { %3715 = vmatprep.subr.bf16.mxu0 %v4151_v60  ;;  %3955 = vmatpush3.bf16.msra.mxu1 %v3952_v63 }
 0x468   :  { %3957 = vmatprep.subr.bf16.mxu1 %v3956_v37 }
 0x46a   :  { %3716 = vmatpush3.bf16.msra.mxu0 %v4152_v50 }
 0x46b   :  { %3717 = vmatprep.subr.bf16.mxu0 %v4153_v8  ;;  %3959 = vmatpush3.bf16.msra.mxu1 %v3956_v37 }
 0x46e   :  { %3718 = vmatpush3.bf16.msra.mxu0 %v4154_v46 }
 0x46f   :  { %3719 = vmatprep.subr.bf16.mxu0 %v4155_v58 }
 0x472   :  { %3720 = vmatpush3.bf16.msra.mxu0 %v4156_v7 }
 0x473   :  { %3721 = vmatprep.subr.bf16.mxu0 %v4157_v0 }
 0x476   :  { %3722 = vmatpush3.bf16.msra.mxu0 %v4158_v40 }
 0x477   :  { %3723 = vmatprep.subr.bf16.mxu0 %v4159_v38 }
 0x47a   :  { %3724 = vmatpush3.bf16.msra.mxu0 %v4160_v9 }
 0x530   :  { %v3073_v27 = vpop.f32.mrb[128].mxu0 }
 0x531   :  { %3084 = vst [vmem:[#allocation2] sm:$0xff] %v3073_v27  ;;  %v3075_v16 = vpop.f32.mrb[129].mxu0  ;;  %v3088_v30 = vmax.f32 %v3073_v27, 0.0 }
 0x532   :  { %3085 = vst [vmem:[#allocation2 + $0x8] sm:$0xff] %v3075_v16  ;;  %v3089_v24 = vmax.f32 %v3075_v16, 0.0 }
 0x534   :  { %v3079_v36 = vpop.f32.mrb[130].mxu0 }
 0x535   :  { %3086 = vst [vmem:[#allocation2 + $0x10] sm:$0xff] %v3079_v36  ;;  %v3090_v62 = vmax.f32 %v3079_v36, 0.0  ;;  %v3081_v3 = vpop.f32.mrb[131].mxu0 }
 0x536   :  { %3087 = vst [vmem:[#allocation2 + $0x18] sm:$0xff] %v3081_v3  ;;  %v3091_v22 = vmax.f32 %v3081_v3, 0.0 }
 0x537   :  { %v3092_v53 = vpack.c.bf16 %v3090_v62, %v3088_v30 }
 0x538   :  { %v3093_v43 = vpack.c.bf16 %v3091_v22, %v3089_v24 }
 0x53a   :  { %3261 = vmatprep.mubr.bf16.mxu0 %v3093_v43 }
 0x53b   :  { %3262 = vmatmul.mubr.bf16.vlgmr.msra.gmra.mrb[132].mxu0 %v3092_v53 }
 0x60e   :  { %v3725_v26 = vpop.f32.mrb[132].mxu0 }
 0x60f   :  { %v3726_v2 = vpop.f32.mrb[133].mxu0 }
 0x610   :  { %v3727_v33 = vadd.f32 %v3726_v2, %v3725_v26  ;;  %v3728_v35 = vpop.f32.mrb[134].mxu0 }
 0x611   :  { %v3729_v21 = vpop.f32.mrb[135].mxu0 }
 0x612   :  { %v3264_v39 = vadd.f32 %v3727_v33, %v3643_v44  ;;  %v3730_v12 = vadd.f32 %v3729_v21, %v3728_v35 }
 0x614   :  { %v3270_v32 = vmax.f32 %v3264_v39, 0.0  ;;  %v3267_v52 = vadd.f32 %v3730_v12, %v3643_v44 }
 0x616   :  { %v3271_v19 = vmax.f32 %v3267_v52, 0.0  ;;  %3861 = vmatprep.mubr.f32.mxu1 %v3270_v32 }
 0x618   :  { %3862 = vmatmul.mubr.f32.vlgmr.msra.gmra.mrb[128].mxu1 %v3271_v19 }
 0x619   :  { %4492 = shalt.err (!%p4489_p4)
}
 0x61a   :  { %s4493_s28 = scalar_lea.hbm %s6274_s15, 512 }
 0x61b   :  { %p4494_p5 = scmp.ne.s32.totalorder %s6274_s15, %s4493_s28  ;;  %p4497_p6 = scmp.lt.u32.totalorder %s4493_s28, %s6274_s15 }
 0x61d   :  { %p4499_p7 = pnand %p4497_p6, %p4494_p5 }
 0x61f   :  { %4502 = shalt.err (!%p4499_p7)
}
 0x620   :  { %s4507_s17 = smov 256   ;;  %s4508_s18 = smov 16   ;;  %v3660_v48 = vld [vmem:[%s6272_s13] ss:$0 sm:$0xff]  ;;  %vm3370_vm2 = vcmask 64512  }
 0x621   :  { %3386 = dma.vmem_to_hbm [thread:$0]  %s3381_s10, 512, %s6274_s15, [#allocation3], %s4507_s17, %s4507_s17, %s4508_s18  }
 0x6eb   :  { %v3863_v20 = vpop.f32.mrb[128].mxu1 }
 0x6ec   :  { %v3367_v29 = vadd.f32 %v3863_v20, %v3660_v48  ;;  %v3361_v45 = vpop.f32.mrb[129].mxu1 }
 0x6ed   :  { %v3362_v11 = vadd.f32 %v3660_v48, %v3361_v45 }
 0x6ee   :  { %3372 = vst.msk [vmem:[%s6273_s14 + $0x8] sm:$0xff] %vm3370_vm2, %v3367_v29 }
 0x6ef   :  { %3371 = vst.msk [vmem:[%s6273_s14] sm:$0xff] %vm3370_vm2, %v3362_v11 }
 0x6f0   :  { %4503 = dma.done.wait [#allocation3], 512  }
 0x6f1   :  { %4504 = vsyncadd [#allocation3], 4294966784 }
 0x6f2   :  { %3392 = vsyncpa [#allocation3], 1 }

</bundles_post_ra>
